<compile_context>
chip_gen: v7x
topology: tpu7x:2x2x1
jax: 0.10.0
libtpu: 0.0.40
codegen_flags: <defaults>
</compile_context>

<pallas_src>
import math
import functools

import jax
import jax.numpy as jnp
from jax.experimental import pallas as pl
from jax.experimental.pallas import tpu as pltpu


# ----------------------------- shared helpers --------------------------------

def _layer_norm(x, gamma, beta, eps=1e-6):
    # nn.LayerNorm(d_model, eps=1e-06) in the reference module
    mean = jnp.mean(x, axis=-1, keepdims=True)
    var = jnp.mean((x - mean) ** 2, axis=-1, keepdims=True)
    return (x - mean) * jax.lax.rsqrt(var + eps) * gamma + beta


def positional_encoding(n_position, d_hid):
    # matches the module: pos / 10000**(2*i/d_hid), sin on even i, cos on odd i
    pos = jnp.arange(n_position, dtype=jnp.float32)[:, None]
    i = jnp.arange(d_hid, dtype=jnp.float32)[None, :]
    angles = pos / jnp.power(10000.0, 2.0 * i / d_hid)
    even = (jnp.arange(d_hid) % 2) == 0
    return jnp.where(even[None, :], jnp.sin(angles), jnp.cos(angles))


# ----------------------- fused encoder kernel (all layers) -------------------

def _encoder_kernel(n_head, d_k,
                    emb_ref, pe_ref, preln_ref, mask_ref,
                    wqkv_ref, wo_ref, w1_ref, b1_ref, w2_ref, lnb_ref,
                    out_ref, x_ref, attn_ref):
    """Grid = (batch_block, layer). Activation lives in x_ref across layers."""
    l = pl.program_id(1)
    BB, S, D = out_ref.shape
    R = BB * S
    bf16 = jnp.bfloat16

    # ---- fused prelude at the first layer step: x = LN(emb + pos_enc) ----
    @pl.when(l == 0)
    def _():
        x0 = emb_ref[...] + pe_ref[...]                       # (BB,S,D) + (S,D)
        x0 = _layer_norm(x0, preln_ref[0:1, :], preln_ref[1:2, :])
        x_ref[...] = x0.reshape(R, D)

    x = x_ref[...]                                            # (R, D) f32 resident
    m = mask_ref[...].reshape(R, 1)                           # (R, 1) padding mask

    # ------------------------------ MHA ----------------------------------
    # q/k/v projections have no bias, so masking x pre-projection is exactly
    # q*mask, k*mask, v*mask of the reference module.
    xm = (x * m).astype(bf16)
    qkv = jnp.dot(xm, wqkv_ref[...],
                  preferred_element_type=jnp.float32)         # (R, 3D) fused proj
    qkv = qkv.reshape(BB, S, 3 * D)

    scale = 1.0 / math.sqrt(d_k)
    for h in range(n_head):        # static loop; matmuls batched over the batch dim
        lo = h * d_k
        q_h = qkv[:, :, lo:lo + d_k].astype(bf16)             # (BB, S, d_k)
        k_h = qkv[:, :, D + lo:D + lo + d_k].astype(bf16)
        v_h = qkv[:, :, 2 * D + lo:2 * D + lo + d_k].astype(bf16)
        s = jnp.einsum('bqd,bkd->bqk', q_h, k_h,
                       preferred_element_type=jnp.float32) * scale   # (BB, S, S)
        s = s - jnp.max(s, axis=-1, keepdims=True)
        p = jnp.exp(s)
        p = p * pl.reciprocal(jnp.sum(p, axis=-1, keepdims=True), approx=True)
        o_h = jnp.einsum('bqk,bkd->bqd', p.astype(bf16), v_h,
                         preferred_element_type=jnp.float32)  # (BB, S, d_k)
        attn_ref[:, lo:lo + d_k] = o_h.reshape(R, d_k)        # head slab write

    proj = jnp.dot(attn_ref[...].astype(bf16), wo_ref[...],
                   preferred_element_type=jnp.float32)        # (R, D)
    x1 = _layer_norm(proj + x, lnb_ref[0:1, :], lnb_ref[1:2, :])

    # ------------------------------ FFN ----------------------------------
    h1 = jnp.dot(x1.astype(bf16), w1_ref[...],
                 preferred_element_type=jnp.float32) + b1_ref[...]   # (R, H)
    h1 = jnp.maximum(h1, 0.0).astype(bf16)
    h2 = jnp.dot(h1, w2_ref[...],
                 preferred_element_type=jnp.float32) + lnb_ref[4:5, :]  # + b2
    y = _layer_norm(h2 + x1, lnb_ref[2:3, :], lnb_ref[3:4, :])

    x_ref[...] = y                                            # stays resident

    @pl.when(l == pl.num_programs(1) - 1)
    def _():
        out_ref[...] = y.reshape(BB, S, D)


# ----------------------------- forward pass (Pallas) -------------------------

@functools.partial(jax.jit, static_argnums=(3,))
def encoder_forward(src_seq, src_mask, params, n_head):
    B, S = src_seq.shape
    D = params["emb"].shape[1]
    L, _, Hid = params["w1"].shape
    d_k = D // n_head

    # embedding gather stays as JAX glue; everything else is in the kernel
    emb = jnp.take(params["emb"], src_seq, axis=0)            # (B, S, D)
    pe = params["pe"][:S]                                     # (S, D)

    # fold several batch elements into the sublane axis per grid step
    # (for larger B keep B // BB >= 2 so v7x's two TensorCores both get work)
    BB = 1
    for cand in range(1, B + 1):
        if B % cand == 0 and cand * S <= max(S, 256):
            BB = cand
    grid = (B // BB, L)

    return pl.pallas_call(
        functools.partial(_encoder_kernel, n_head, d_k),
        out_shape=jax.ShapeDtypeStruct((B, S, D), jnp.float32),
        grid=grid,
        in_specs=[
            pl.BlockSpec((BB, S, D), lambda b, l: (b, 0, 0)),        # emb
            pl.BlockSpec((S, D), lambda b, l: (0, 0)),               # pos enc
            pl.BlockSpec((8, D), lambda b, l: (0, 0)),               # prelude LN
            pl.BlockSpec((BB, S, 1), lambda b, l: (b, 0, 0)),        # mask
            pl.BlockSpec((None, D, 3 * D), lambda b, l: (l, 0, 0)),  # wqkv (bf16)
            pl.BlockSpec((None, D, D), lambda b, l: (l, 0, 0)),      # wo   (bf16)
            pl.BlockSpec((None, D, Hid), lambda b, l: (l, 0, 0)),    # w1   (bf16)
            pl.BlockSpec((None, 1, Hid), lambda b, l: (l, 0, 0)),    # b1
            pl.BlockSpec((None, Hid, D), lambda b, l: (l, 0, 0)),    # w2   (bf16)
            pl.BlockSpec((None, 8, D), lambda b, l: (l, 0, 0)),      # packed LN/b2
        ],
        out_specs=pl.BlockSpec((BB, S, D), lambda b, l: (b, 0, 0)),
        scratch_shapes=[
            pltpu.VMEM((BB * S, D), jnp.float32),    # resident activation
            pltpu.VMEM((BB * S, D), jnp.float32),    # attention head-output slab
        ],
        compiler_params=pltpu.CompilerParams(
            dimension_semantics=("parallel", "arbitrary"),
            vmem_limit_bytes=64 * 1024 * 1024),
    )(emb, pe, params["preln"], src_mask,
      params["wqkv"], params["wo"], params["w1"], params["b1"],
      params["w2"], params["lnb"])


# ----------------------------- parameter setup -------------------------------

def init_params(key, n_src_vocab, d_model, n_head, n_layers, d_hid, pad_idx,
                n_position):
    keys = jax.random.split(key, 1 + n_layers)

    emb = jax.random.normal(keys[0], (n_src_vocab, d_model), jnp.float32)
    emb = emb.at[pad_idx].set(0.0)                        # padding_idx row zeroed

    def lin(kk, fan_in, fan_out):
        bound = 1.0 / math.sqrt(fan_in)
        return jax.random.uniform(kk, (fan_in, fan_out), jnp.float32, -bound, bound)

    def bias(kk, fan_in, fan_out):
        bound = 1.0 / math.sqrt(fan_in)
        return jax.random.uniform(kk, (1, fan_out), jnp.float32, -bound, bound)

    wqkv, wo, w1, b1, w2, lnb = [], [], [], [], [], []
    for layer in range(n_layers):
        k = jax.random.split(keys[1 + layer], 8)
        wq = lin(k[0], d_model, d_model)
        wk = lin(k[1], d_model, d_model)
        wv = lin(k[2], d_model, d_model)
        wqkv.append(jnp.concatenate([wq, wk, wv], axis=1))       # fused (D, 3D)
        wo.append(lin(k[3], d_model, d_model))
        w1.append(lin(k[4], d_model, d_hid))
        b1.append(bias(k[5], d_model, d_hid))
        w2.append(lin(k[6], d_hid, d_model))
        b2 = bias(k[7], d_hid, d_model)
        # packed per-layer small params: rows = [ln1g, ln1b, ln2g, ln2b, b2, 0,0,0]
        lnb.append(jnp.concatenate([
            jnp.ones((1, d_model), jnp.float32),
            jnp.zeros((1, d_model), jnp.float32),
            jnp.ones((1, d_model), jnp.float32),
            jnp.zeros((1, d_model), jnp.float32),
            b2,
            jnp.zeros((3, d_model), jnp.float32),
        ], axis=0))

    preln = jnp.concatenate([jnp.ones((1, d_model), jnp.float32),
                             jnp.zeros((7, d_model), jnp.float32)], axis=0)

    return dict(
        emb=emb,
        pe=positional_encoding(n_position, d_model),
        preln=preln,                                           # rows: gamma, beta
        wqkv=jnp.stack(wqkv).astype(jnp.bfloat16),             # (L, D, 3D)
        wo=jnp.stack(wo).astype(jnp.bfloat16),                 # (L, D, D)
        w1=jnp.stack(w1).astype(jnp.bfloat16),                 # (L, D, H)
        b1=jnp.stack(b1),                                      # (L, 1, H) f32
        w2=jnp.stack(w2).astype(jnp.bfloat16),                 # (L, H, D)
        lnb=jnp.stack(lnb),                                    # (L, 8, D) f32
    )


# ----------------------------- pure-JAX reference ----------------------------

def encoder_reference(src_seq, src_mask, params, n_head):
    """Mirrors the module semantics (with the same bf16 matmul precision)."""
    B, S = src_seq.shape
    D = params["emb"].shape[1]
    L = params["wqkv"].shape[0]
    d_k = D // n_head
    bf16 = jnp.bfloat16

    x = jnp.take(params["emb"], src_seq, axis=0) + params["pe"][:S][None]
    x = _layer_norm(x, params["preln"][0:1, :], params["preln"][1:2, :])

    for l in range(L):
        wqkv, wo = params["wqkv"][l], params["wo"][l]
        w1, b1, w2 = params["w1"][l], params["b1"][l], params["w2"][l]
        lnb = params["lnb"][l]
        residual = x
        xb = x.astype(bf16)
        q = jnp.dot(xb, wqkv[:, :D], preferred_element_type=jnp.float32) * src_mask
        k = jnp.dot(xb, wqkv[:, D:2 * D], preferred_element_type=jnp.float32) * src_mask
        v = jnp.dot(xb, wqkv[:, 2 * D:], preferred_element_type=jnp.float32) * src_mask
        qh = q.reshape(B, S, n_head, d_k).transpose(0, 2, 1, 3).astype(bf16)
        kh = k.reshape(B, S, n_head, d_k).transpose(0, 2, 1, 3).astype(bf16)
        vh = v.reshape(B, S, n_head, d_k).transpose(0, 2, 1, 3).astype(bf16)
        s = jnp.einsum("bhqd,bhkd->bhqk", qh, kh,
                       preferred_element_type=jnp.float32) / math.sqrt(d_k)
        p = jax.nn.softmax(s, axis=-1)
        o = jnp.einsum("bhqk,bhkd->bhqd", p.astype(bf16), vh,
                       preferred_element_type=jnp.float32)
        o = o.transpose(0, 2, 1, 3).reshape(B, S, D)
        x1 = _layer_norm(
            jnp.dot(o.astype(bf16), wo, preferred_element_type=jnp.float32) + residual,
            lnb[0:1], lnb[1:2])
        h = jax.nn.relu(
            jnp.dot(x1.astype(bf16), w1, preferred_element_type=jnp.float32) + b1)
        x = _layer_norm(
            jnp.dot(h.astype(bf16), w2, preferred_element_type=jnp.float32)
            + lnb[4:5] + x1,
            lnb[2:3], lnb[3:4])
    return x


# ----------------------------------- main ------------------------------------

if __name__ == "__main__":
    # small, deterministic configuration
    n_src_vocab = 50
    n_layers = 2
    n_head = 4
    d_model = 128          # d_word_vec == d_model
    d_hid = 2048           # PositionwiseFeedForward default
    pad_idx = 0
    n_position = 200
    B, S = 2, 8

    key = jax.random.PRNGKey(0)
    k_params, k_seq = jax.random.split(key)

    params = init_params(k_params, n_src_vocab, d_model, n_head, n_layers,
                         d_hid, pad_idx, n_position)

    src_seq = jax.random.randint(k_seq, (B, S), 1, n_src_vocab, dtype=jnp.int32)
    src_seq = src_seq.at[1, 6:].set(pad_idx)                      # padding tokens
    src_mask = (src_seq != pad_idx).astype(jnp.float32)[:, :, None]   # (B, S, 1)

    out = encoder_forward(src_seq, src_mask, params, n_head)
    out = jax.block_until_ready(out)

    assert out.shape == (B, S, d_model)
    assert bool(jnp.all(jnp.isfinite(out)))

    ref = encoder_reference(src_seq, src_mask, params, n_head)
    max_err = float(jnp.max(jnp.abs(out - ref)))
    # bf16 MXU matmuls + approx-reciprocal softmax vs bf16-matched XLA reference
    assert max_err < 5e-2, f"kernel/reference mismatch: max_err={max_err}"

    print("KERNEL_OK")
</pallas_src>

<mosaic_0001>
module attributes {stable_mosaic.version = 11 : i64} {
  func.func @_encoder_kernel(%arg0: i32, %arg1: i32, %arg2: memref<2x8x128xf32, #tpu.memory_space<vmem>>, %arg3: memref<8x128xf32, #tpu.memory_space<vmem>>, %arg4: memref<8x128xf32, #tpu.memory_space<vmem>>, %arg5: memref<2x8x1xf32, #tpu.memory_space<vmem>>, %arg6: memref<1x128x384xbf16, #tpu.memory_space<vmem>>, %arg7: memref<1x128x128xbf16, #tpu.memory_space<vmem>>, %arg8: memref<1x128x2048xbf16, #tpu.memory_space<vmem>>, %arg9: memref<1x1x2048xf32, #tpu.memory_space<vmem>>, %arg10: memref<1x2048x128xbf16, #tpu.memory_space<vmem>>, %arg11: memref<1x8x128xf32, #tpu.memory_space<vmem>>, %arg12: memref<2x8x128xf32, #tpu.memory_space<vmem>>, %arg13: memref<16x128xf32, #tpu.memory_space<vmem>>, %arg14: memref<16x128xf32, #tpu.memory_space<vmem>>) attributes {dimension_semantics = [#tpu.dimension_semantics<parallel>, #tpu.dimension_semantics<arbitrary>], iteration_bounds = array<i64: 1, 2>, scalar_prefetch = 0 : i64, scratch_operands = 2 : i64, tpu.core_type = #tpu.core_type<tc>, window_params = [{transform_indices = @transform_0, window_bounds = array<i64: 2, 8, 128>}, {pipeline_mode = #tpu.pipeline_mode<synchronous>, transform_indices = @transform_1, window_bounds = array<i64: 8, 128>}, {pipeline_mode = #tpu.pipeline_mode<synchronous>, transform_indices = @transform_2, window_bounds = array<i64: 8, 128>}, {transform_indices = @transform_3, window_bounds = array<i64: 2, 8, 1>}, {transform_indices = @transform_4, window_bounds = array<i64: 1, 128, 384>}, {transform_indices = @transform_5, window_bounds = array<i64: 1, 128, 128>}, {transform_indices = @transform_6, window_bounds = array<i64: 1, 128, 2048>}, {transform_indices = @transform_7, window_bounds = array<i64: 1, 1, 2048>}, {transform_indices = @transform_8, window_bounds = array<i64: 1, 2048, 128>}, {transform_indices = @transform_9, window_bounds = array<i64: 1, 8, 128>}, {transform_indices = @transform_10, window_bounds = array<i64: 2, 8, 128>}]} {
    %c0_i32 = arith.constant 0 : i32
    %0 = arith.cmpi eq, %arg1, %c0_i32 : i32
    %1 = arith.extui %0 : i1 to i32
    %c0_i32_0 = arith.constant 0 : i32
    %2 = arith.cmpi ne, %1, %c0_i32_0 : i32
    scf.if %2 {
      %c0_75 = arith.constant 0 : index
      %c0_76 = arith.constant 0 : index
      %c0_77 = arith.constant 0 : index
      %186 = vector.load %arg2[%c0_75, %c0_76, %c0_77] : memref<2x8x128xf32, #tpu.memory_space<vmem>>, vector<2x8x128xf32>
      %c0_78 = arith.constant 0 : index
      %c0_79 = arith.constant 0 : index
      %187 = vector.load %arg3[%c0_78, %c0_79] : memref<8x128xf32, #tpu.memory_space<vmem>>, vector<8x128xf32>
      %188 = vector.shape_cast %187 : vector<8x128xf32> to vector<1x8x128xf32>
      %189 = vector.broadcast %188 : vector<1x8x128xf32> to vector<2x8x128xf32>
      %190 = arith.addf %186, %189 : vector<2x8x128xf32>
      %c0_80 = arith.constant 0 : index
      %c0_81 = arith.constant 0 : index
      %191 = vector.load %arg4[%c0_80, %c0_81] : memref<8x128xf32, #tpu.memory_space<vmem>>, vector<1x128xf32>
      %c1_82 = arith.constant 1 : index
      %c0_83 = arith.constant 0 : index
      %192 = vector.load %arg4[%c1_82, %c0_83] : memref<8x128xf32, #tpu.memory_space<vmem>>, vector<1x128xf32>
      %cst_84 = arith.constant dense<0.000000e+00> : vector<2x8xf32>
      %193 = vector.multi_reduction <add>, %190, %cst_84 [2] : vector<2x8x128xf32> to vector<2x8xf32>
      %194 = vector.shape_cast %193 : vector<2x8xf32> to vector<2x8x1xf32>
      %cst_85 = arith.constant 1.280000e+02 : f32
      %195 = vector.broadcast %cst_85 : f32 to vector<2x8x1xf32>
      %196 = arith.divf %194, %195 : vector<2x8x1xf32>
      %197 = vector.broadcast %196 : vector<2x8x1xf32> to vector<2x8x128xf32>
      %198 = arith.subf %190, %197 : vector<2x8x128xf32>
      %199 = arith.mulf %198, %198 : vector<2x8x128xf32>
      %cst_86 = arith.constant dense<0.000000e+00> : vector<2x8xf32>
      %200 = vector.multi_reduction <add>, %199, %cst_86 [2] : vector<2x8x128xf32> to vector<2x8xf32>
      %201 = vector.shape_cast %200 : vector<2x8xf32> to vector<2x8x1xf32>
      %cst_87 = arith.constant 1.280000e+02 : f32
      %202 = vector.broadcast %cst_87 : f32 to vector<2x8x1xf32>
      %203 = arith.divf %201, %202 : vector<2x8x1xf32>
      %204 = vector.broadcast %196 : vector<2x8x1xf32> to vector<2x8x128xf32>
      %205 = arith.subf %190, %204 : vector<2x8x128xf32>
      %cst_88 = arith.constant 9.99999997E-7 : f32
      %206 = vector.broadcast %cst_88 : f32 to vector<2x8x1xf32>
      %207 = arith.addf %203, %206 : vector<2x8x1xf32>
      %208 = math.rsqrt %207 : vector<2x8x1xf32>
      %209 = vector.broadcast %208 : vector<2x8x1xf32> to vector<2x8x128xf32>
      %210 = arith.mulf %205, %209 : vector<2x8x128xf32>
      %211 = vector.shape_cast %191 : vector<1x128xf32> to vector<1x1x128xf32>
      %212 = vector.broadcast %211 : vector<1x1x128xf32> to vector<2x8x128xf32>
      %213 = arith.mulf %210, %212 : vector<2x8x128xf32>
      %214 = vector.shape_cast %192 : vector<1x128xf32> to vector<1x1x128xf32>
      %215 = vector.broadcast %214 : vector<1x1x128xf32> to vector<2x8x128xf32>
      %216 = arith.addf %213, %215 : vector<2x8x128xf32>
      %217 = vector.shape_cast %216 : vector<2x8x128xf32> to vector<16x128xf32>
      %c0_89 = arith.constant 0 : index
      %c0_90 = arith.constant 0 : index
      %218 = vector.load %arg13[%c0_89, %c0_90] : memref<16x128xf32, #tpu.memory_space<vmem>>, vector<16x128xf32>
      tpu.vector_store %arg13[%c0_89, %c0_90], %217 {strides = array<i32>} : memref<16x128xf32, #tpu.memory_space<vmem>>, vector<16x128xf32>,
    } else {
    }
    %c0 = arith.constant 0 : index
    %c0_1 = arith.constant 0 : index
    %3 = vector.load %arg13[%c0, %c0_1] : memref<16x128xf32, #tpu.memory_space<vmem>>, vector<16x128xf32>
    %c0_2 = arith.constant 0 : index
    %c0_3 = arith.constant 0 : index
    %c0_4 = arith.constant 0 : index
    %4 = vector.load %arg5[%c0_2, %c0_3, %c0_4] : memref<2x8x1xf32, #tpu.memory_space<vmem>>, vector<2x8x1xf32>
    %5 = vector.shape_cast %4 : vector<2x8x1xf32> to vector<16x1xf32>
    %6 = vector.broadcast %5 : vector<16x1xf32> to vector<16x128xf32>
    %7 = arith.mulf %3, %6 : vector<16x128xf32>
    %8 = arith.truncf %7 : vector<16x128xf32> to vector<16x128xbf16>
    %c0_5 = arith.constant 0 : index
    %c0_6 = arith.constant 0 : index
    %c0_7 = arith.constant 0 : index
    %9 = vector.load %arg6[%c0_5, %c0_6, %c0_7] : memref<1x128x384xbf16, #tpu.memory_space<vmem>>, vector<1x128x384xbf16>
    %10 = vector.shape_cast %9 : vector<1x128x384xbf16> to vector<128x384xbf16>
    %cst = arith.constant dense<0.000000e+00> : vector<16x384xf32>
    %11 = tpu.matmul %8, %10, %cst {dimension_numbers = #tpu.dot_dimension_numbers<[1], [0], [0], [1], [0, 0, 1, 1], [], []>} : vector<16x128xbf16>, vector<128x384xbf16>, vector<16x384xf32> -> vector<16x384xf32>
    %12 = vector.shape_cast %11 : vector<16x384xf32> to vector<2x8x384xf32>
    %13 = vector.extract_strided_slice %12 {offsets = [0, 0, 0], sizes = [2, 8, 32], strides = [1, 1, 1]} : vector<2x8x384xf32> to vector<2x8x32xf32>
    %14 = arith.truncf %13 : vector<2x8x32xf32> to vector<2x8x32xbf16>
    %15 = vector.extract_strided_slice %12 {offsets = [0, 0, 128], sizes = [2, 8, 32], strides = [1, 1, 1]} : vector<2x8x384xf32> to vector<2x8x32xf32>
    %16 = arith.truncf %15 : vector<2x8x32xf32> to vector<2x8x32xbf16>
    %17 = vector.extract_strided_slice %12 {offsets = [0, 0, 256], sizes = [2, 8, 32], strides = [1, 1, 1]} : vector<2x8x384xf32> to vector<2x8x32xf32>
    %18 = arith.truncf %17 : vector<2x8x32xf32> to vector<2x8x32xbf16>
    "tpu.trace_start"() <{level = 10 : i32, message = "bqd,bkd->bqk"}> : () -> ()
    %cst_8 = arith.constant dense<0.000000e+00> : vector<2x8x8xf32>
    %19 = tpu.matmul %14, %16, %cst_8 {dimension_numbers = #tpu.dot_dimension_numbers<[2], [2], [1], [1], [0, 0, 0, 1, 1, 1], [0], [0]>} : vector<2x8x32xbf16>, vector<2x8x32xbf16>, vector<2x8x8xf32> -> vector<2x8x8xf32>
    "tpu.trace_stop"() : () -> ()
    %cst_9 = arith.constant 0.176776692 : f32
    %20 = vector.broadcast %cst_9 : f32 to vector<2x8x8xf32>
    %21 = arith.mulf %19, %20 : vector<2x8x8xf32>
    %cst_10 = arith.constant dense<0xFF800000> : vector<2x8xf32>
    %22 = vector.multi_reduction <maximumf>, %21, %cst_10 [2] : vector<2x8x8xf32> to vector<2x8xf32>
    %23 = vector.shape_cast %22 : vector<2x8xf32> to vector<2x8x1xf32>
    %24 = vector.broadcast %23 : vector<2x8x1xf32> to vector<2x8x8xf32>
    %25 = arith.subf %21, %24 : vector<2x8x8xf32>
    %26 = math.exp %25 : vector<2x8x8xf32>
    %cst_11 = arith.constant dense<0.000000e+00> : vector<2x8xf32>
    %27 = vector.multi_reduction <add>, %26, %cst_11 [2] : vector<2x8x8xf32> to vector<2x8xf32>
    %28 = vector.shape_cast %27 : vector<2x8xf32> to vector<2x8x1xf32>
    %29 = tpu.reciprocal %28 {approx = true} : vector<2x8x1xf32> -> vector<2x8x1xf32>
    %30 = vector.broadcast %29 : vector<2x8x1xf32> to vector<2x8x8xf32>
    %31 = arith.mulf %26, %30 : vector<2x8x8xf32>
    %32 = arith.truncf %31 : vector<2x8x8xf32> to vector<2x8x8xbf16>
    "tpu.trace_start"() <{level = 10 : i32, message = "bqk,bkd->bqd"}> : () -> ()
    %cst_12 = arith.constant dense<0.000000e+00> : vector<2x8x32xf32>
    %33 = tpu.matmul %32, %18, %cst_12 {dimension_numbers = #tpu.dot_dimension_numbers<[2], [1], [1], [2], [0, 0, 0, 1, 1, 2], [0], [0]>} : vector<2x8x8xbf16>, vector<2x8x32xbf16>, vector<2x8x32xf32> -> vector<2x8x32xf32>
    "tpu.trace_stop"() : () -> ()
    %34 = vector.shape_cast %33 : vector<2x8x32xf32> to vector<16x32xf32>
    %c0_13 = arith.constant 0 : index
    %c0_14 = arith.constant 0 : index
    %35 = vector.load %arg14[%c0_13, %c0_14] : memref<16x128xf32, #tpu.memory_space<vmem>>, vector<16x32xf32>
    tpu.vector_store %arg14[%c0_13, %c0_14], %34 {strides = array<i32>} : memref<16x128xf32, #tpu.memory_space<vmem>>, vector<16x32xf32>,
    %36 = vector.extract_strided_slice %12 {offsets = [0, 0, 32], sizes = [2, 8, 32], strides = [1, 1, 1]} : vector<2x8x384xf32> to vector<2x8x32xf32>
    %37 = arith.truncf %36 : vector<2x8x32xf32> to vector<2x8x32xbf16>
    %38 = vector.extract_strided_slice %12 {offsets = [0, 0, 160], sizes = [2, 8, 32], strides = [1, 1, 1]} : vector<2x8x384xf32> to vector<2x8x32xf32>
    %39 = arith.truncf %38 : vector<2x8x32xf32> to vector<2x8x32xbf16>
    %40 = vector.extract_strided_slice %12 {offsets = [0, 0, 288], sizes = [2, 8, 32], strides = [1, 1, 1]} : vector<2x8x384xf32> to vector<2x8x32xf32>
    %41 = arith.truncf %40 : vector<2x8x32xf32> to vector<2x8x32xbf16>
    "tpu.trace_start"() <{level = 10 : i32, message = "bqd,bkd->bqk"}> : () -> ()
    %cst_15 = arith.constant dense<0.000000e+00> : vector<2x8x8xf32>
    %42 = tpu.matmul %37, %39, %cst_15 {dimension_numbers = #tpu.dot_dimension_numbers<[2], [2], [1], [1], [0, 0, 0, 1, 1, 1], [0], [0]>} : vector<2x8x32xbf16>, vector<2x8x32xbf16>, vector<2x8x8xf32> -> vector<2x8x8xf32>
    "tpu.trace_stop"() : () -> ()
    %cst_16 = arith.constant 0.176776692 : f32
    %43 = vector.broadcast %cst_16 : f32 to vector<2x8x8xf32>
    %44 = arith.mulf %42, %43 : vector<2x8x8xf32>
    %cst_17 = arith.constant dense<0xFF800000> : vector<2x8xf32>
    %45 = vector.multi_reduction <maximumf>, %44, %cst_17 [2] : vector<2x8x8xf32> to vector<2x8xf32>
    %46 = vector.shape_cast %45 : vector<2x8xf32> to vector<2x8x1xf32>
    %47 = vector.broadcast %46 : vector<2x8x1xf32> to vector<2x8x8xf32>
    %48 = arith.subf %44, %47 : vector<2x8x8xf32>
    %49 = math.exp %48 : vector<2x8x8xf32>
    %cst_18 = arith.constant dense<0.000000e+00> : vector<2x8xf32>
    %50 = vector.multi_reduction <add>, %49, %cst_18 [2] : vector<2x8x8xf32> to vector<2x8xf32>
    %51 = vector.shape_cast %50 : vector<2x8xf32> to vector<2x8x1xf32>
    %52 = tpu.reciprocal %51 {approx = true} : vector<2x8x1xf32> -> vector<2x8x1xf32>
    %53 = vector.broadcast %52 : vector<2x8x1xf32> to vector<2x8x8xf32>
    %54 = arith.mulf %49, %53 : vector<2x8x8xf32>
    %55 = arith.truncf %54 : vector<2x8x8xf32> to vector<2x8x8xbf16>
    "tpu.trace_start"() <{level = 10 : i32, message = "bqk,bkd->bqd"}> : () -> ()
    %cst_19 = arith.constant dense<0.000000e+00> : vector<2x8x32xf32>
    %56 = tpu.matmul %55, %41, %cst_19 {dimension_numbers = #tpu.dot_dimension_numbers<[2], [1], [1], [2], [0, 0, 0, 1, 1, 2], [0], [0]>} : vector<2x8x8xbf16>, vector<2x8x32xbf16>, vector<2x8x32xf32> -> vector<2x8x32xf32>
    "tpu.trace_stop"() : () -> ()
    %57 = vector.shape_cast %56 : vector<2x8x32xf32> to vector<16x32xf32>
    %c0_20 = arith.constant 0 : index
    %c32 = arith.constant 32 : index
    %58 = vector.load %arg14[%c0_20, %c32] : memref<16x128xf32, #tpu.memory_space<vmem>>, vector<16x32xf32>
    tpu.vector_store %arg14[%c0_20, %c32], %57 {strides = array<i32>} : memref<16x128xf32, #tpu.memory_space<vmem>>, vector<16x32xf32>,
    %59 = vector.extract_strided_slice %12 {offsets = [0, 0, 64], sizes = [2, 8, 32], strides = [1, 1, 1]} : vector<2x8x384xf32> to vector<2x8x32xf32>
    %60 = arith.truncf %59 : vector<2x8x32xf32> to vector<2x8x32xbf16>
    %61 = vector.extract_strided_slice %12 {offsets = [0, 0, 192], sizes = [2, 8, 32], strides = [1, 1, 1]} : vector<2x8x384xf32> to vector<2x8x32xf32>
    %62 = arith.truncf %61 : vector<2x8x32xf32> to vector<2x8x32xbf16>
    %63 = vector.extract_strided_slice %12 {offsets = [0, 0, 320], sizes = [2, 8, 32], strides = [1, 1, 1]} : vector<2x8x384xf32> to vector<2x8x32xf32>
    %64 = arith.truncf %63 : vector<2x8x32xf32> to vector<2x8x32xbf16>
    "tpu.trace_start"() <{level = 10 : i32, message = "bqd,bkd->bqk"}> : () -> ()
    %cst_21 = arith.constant dense<0.000000e+00> : vector<2x8x8xf32>
    %65 = tpu.matmul %60, %62, %cst_21 {dimension_numbers = #tpu.dot_dimension_numbers<[2], [2], [1], [1], [0, 0, 0, 1, 1, 1], [0], [0]>} : vector<2x8x32xbf16>, vector<2x8x32xbf16>, vector<2x8x8xf32> -> vector<2x8x8xf32>
    "tpu.trace_stop"() : () -> ()
    %cst_22 = arith.constant 0.176776692 : f32
    %66 = vector.broadcast %cst_22 : f32 to vector<2x8x8xf32>
    %67 = arith.mulf %65, %66 : vector<2x8x8xf32>
    %cst_23 = arith.constant dense<0xFF800000> : vector<2x8xf32>
    %68 = vector.multi_reduction <maximumf>, %67, %cst_23 [2] : vector<2x8x8xf32> to vector<2x8xf32>
    %69 = vector.shape_cast %68 : vector<2x8xf32> to vector<2x8x1xf32>
    %70 = vector.broadcast %69 : vector<2x8x1xf32> to vector<2x8x8xf32>
    %71 = arith.subf %67, %70 : vector<2x8x8xf32>
    %72 = math.exp %71 : vector<2x8x8xf32>
    %cst_24 = arith.constant dense<0.000000e+00> : vector<2x8xf32>
    %73 = vector.multi_reduction <add>, %72, %cst_24 [2] : vector<2x8x8xf32> to vector<2x8xf32>
    %74 = vector.shape_cast %73 : vector<2x8xf32> to vector<2x8x1xf32>
    %75 = tpu.reciprocal %74 {approx = true} : vector<2x8x1xf32> -> vector<2x8x1xf32>
    %76 = vector.broadcast %75 : vector<2x8x1xf32> to vector<2x8x8xf32>
    %77 = arith.mulf %72, %76 : vector<2x8x8xf32>
    %78 = arith.truncf %77 : vector<2x8x8xf32> to vector<2x8x8xbf16>
    "tpu.trace_start"() <{level = 10 : i32, message = "bqk,bkd->bqd"}> : () -> ()
    %cst_25 = arith.constant dense<0.000000e+00> : vector<2x8x32xf32>
    %79 = tpu.matmul %78, %64, %cst_25 {dimension_numbers = #tpu.dot_dimension_numbers<[2], [1], [1], [2], [0, 0, 0, 1, 1, 2], [0], [0]>} : vector<2x8x8xbf16>, vector<2x8x32xbf16>, vector<2x8x32xf32> -> vector<2x8x32xf32>
    "tpu.trace_stop"() : () -> ()
    %80 = vector.shape_cast %79 : vector<2x8x32xf32> to vector<16x32xf32>
    %c0_26 = arith.constant 0 : index
    %c64 = arith.constant 64 : index
    %81 = vector.load %arg14[%c0_26, %c64] : memref<16x128xf32, #tpu.memory_space<vmem>>, vector<16x32xf32>
    tpu.vector_store %arg14[%c0_26, %c64], %80 {strides = array<i32>} : memref<16x128xf32, #tpu.memory_space<vmem>>, vector<16x32xf32>,
    %82 = vector.extract_strided_slice %12 {offsets = [0, 0, 96], sizes = [2, 8, 32], strides = [1, 1, 1]} : vector<2x8x384xf32> to vector<2x8x32xf32>
    %83 = arith.truncf %82 : vector<2x8x32xf32> to vector<2x8x32xbf16>
    %84 = vector.extract_strided_slice %12 {offsets = [0, 0, 224], sizes = [2, 8, 32], strides = [1, 1, 1]} : vector<2x8x384xf32> to vector<2x8x32xf32>
    %85 = arith.truncf %84 : vector<2x8x32xf32> to vector<2x8x32xbf16>
    %86 = vector.extract_strided_slice %12 {offsets = [0, 0, 352], sizes = [2, 8, 32], strides = [1, 1, 1]} : vector<2x8x384xf32> to vector<2x8x32xf32>
    %87 = arith.truncf %86 : vector<2x8x32xf32> to vector<2x8x32xbf16>
    "tpu.trace_start"() <{level = 10 : i32, message = "bqd,bkd->bqk"}> : () -> ()
    %cst_27 = arith.constant dense<0.000000e+00> : vector<2x8x8xf32>
    %88 = tpu.matmul %83, %85, %cst_27 {dimension_numbers = #tpu.dot_dimension_numbers<[2], [2], [1], [1], [0, 0, 0, 1, 1, 1], [0], [0]>} : vector<2x8x32xbf16>, vector<2x8x32xbf16>, vector<2x8x8xf32> -> vector<2x8x8xf32>
    "tpu.trace_stop"() : () -> ()
    %cst_28 = arith.constant 0.176776692 : f32
    %89 = vector.broadcast %cst_28 : f32 to vector<2x8x8xf32>
    %90 = arith.mulf %88, %89 : vector<2x8x8xf32>
    %cst_29 = arith.constant dense<0xFF800000> : vector<2x8xf32>
    %91 = vector.multi_reduction <maximumf>, %90, %cst_29 [2] : vector<2x8x8xf32> to vector<2x8xf32>
    %92 = vector.shape_cast %91 : vector<2x8xf32> to vector<2x8x1xf32>
    %93 = vector.broadcast %92 : vector<2x8x1xf32> to vector<2x8x8xf32>
    %94 = arith.subf %90, %93 : vector<2x8x8xf32>
    %95 = math.exp %94 : vector<2x8x8xf32>
    %cst_30 = arith.constant dense<0.000000e+00> : vector<2x8xf32>
    %96 = vector.multi_reduction <add>, %95, %cst_30 [2] : vector<2x8x8xf32> to vector<2x8xf32>
    %97 = vector.shape_cast %96 : vector<2x8xf32> to vector<2x8x1xf32>
    %98 = tpu.reciprocal %97 {approx = true} : vector<2x8x1xf32> -> vector<2x8x1xf32>
    %99 = vector.broadcast %98 : vector<2x8x1xf32> to vector<2x8x8xf32>
    %100 = arith.mulf %95, %99 : vector<2x8x8xf32>
    %101 = arith.truncf %100 : vector<2x8x8xf32> to vector<2x8x8xbf16>
    "tpu.trace_start"() <{level = 10 : i32, message = "bqk,bkd->bqd"}> : () -> ()
    %cst_31 = arith.constant dense<0.000000e+00> : vector<2x8x32xf32>
    %102 = tpu.matmul %101, %87, %cst_31 {dimension_numbers = #tpu.dot_dimension_numbers<[2], [1], [1], [2], [0, 0, 0, 1, 1, 2], [0], [0]>} : vector<2x8x8xbf16>, vector<2x8x32xbf16>, vector<2x8x32xf32> -> vector<2x8x32xf32>
    "tpu.trace_stop"() : () -> ()
    %103 = vector.shape_cast %102 : vector<2x8x32xf32> to vector<16x32xf32>
    %c0_32 = arith.constant 0 : index
    %c96 = arith.constant 96 : index
    %104 = vector.load %arg14[%c0_32, %c96] : memref<16x128xf32, #tpu.memory_space<vmem>>, vector<16x32xf32>
    tpu.vector_store %arg14[%c0_32, %c96], %103 {strides = array<i32>} : memref<16x128xf32, #tpu.memory_space<vmem>>, vector<16x32xf32>,
    %c0_33 = arith.constant 0 : index
    %c0_34 = arith.constant 0 : index
    %105 = vector.load %arg14[%c0_33, %c0_34] : memref<16x128xf32, #tpu.memory_space<vmem>>, vector<16x128xf32>
    %106 = arith.truncf %105 : vector<16x128xf32> to vector<16x128xbf16>
    %c0_35 = arith.constant 0 : index
    %c0_36 = arith.constant 0 : index
    %c0_37 = arith.constant 0 : index
    %107 = vector.load %arg7[%c0_35, %c0_36, %c0_37] : memref<1x128x128xbf16, #tpu.memory_space<vmem>>, vector<1x128x128xbf16>
    %108 = vector.shape_cast %107 : vector<1x128x128xbf16> to vector<128x128xbf16>
    %cst_38 = arith.constant dense<0.000000e+00> : vector<16x128xf32>
    %109 = tpu.matmul %106, %108, %cst_38 {dimension_numbers = #tpu.dot_dimension_numbers<[1], [0], [0], [1], [0, 0, 1, 1], [], []>} : vector<16x128xbf16>, vector<128x128xbf16>, vector<16x128xf32> -> vector<16x128xf32>
    %110 = arith.addf %109, %3 : vector<16x128xf32>
    %c0_39 = arith.constant 0 : index
    %c0_40 = arith.constant 0 : index
    %c0_41 = arith.constant 0 : index
    %111 = vector.load %arg11[%c0_39, %c0_40, %c0_41] : memref<1x8x128xf32, #tpu.memory_space<vmem>>, vector<1x1x128xf32>
    %112 = vector.shape_cast %111 : vector<1x1x128xf32> to vector<1x128xf32>
    %c0_42 = arith.constant 0 : index
    %c1 = arith.constant 1 : index
    %c0_43 = arith.constant 0 : index
    %113 = vector.load %arg11[%c0_42, %c1, %c0_43] : memref<1x8x128xf32, #tpu.memory_space<vmem>>, vector<1x1x128xf32>
    %114 = vector.shape_cast %113 : vector<1x1x128xf32> to vector<1x128xf32>
    %cst_44 = arith.constant dense<0.000000e+00> : vector<16xf32>
    %115 = vector.multi_reduction <add>, %110, %cst_44 [1] : vector<16x128xf32> to vector<16xf32>
    %116 = vector.shape_cast %115 : vector<16xf32> to vector<16x1xf32>
    %cst_45 = arith.constant 1.280000e+02 : f32
    %117 = vector.broadcast %cst_45 : f32 to vector<16x1xf32>
    %118 = arith.divf %116, %117 : vector<16x1xf32>
    %119 = vector.broadcast %118 : vector<16x1xf32> to vector<16x128xf32>
    %120 = arith.subf %110, %119 : vector<16x128xf32>
    %121 = arith.mulf %120, %120 : vector<16x128xf32>
    %cst_46 = arith.constant dense<0.000000e+00> : vector<16xf32>
    %122 = vector.multi_reduction <add>, %121, %cst_46 [1] : vector<16x128xf32> to vector<16xf32>
    %123 = vector.shape_cast %122 : vector<16xf32> to vector<16x1xf32>
    %cst_47 = arith.constant 1.280000e+02 : f32
    %124 = vector.broadcast %cst_47 : f32 to vector<16x1xf32>
    %125 = arith.divf %123, %124 : vector<16x1xf32>
    %126 = vector.broadcast %118 : vector<16x1xf32> to vector<16x128xf32>
    %127 = arith.subf %110, %126 : vector<16x128xf32>
    %cst_48 = arith.constant 9.99999997E-7 : f32
    %128 = vector.broadcast %cst_48 : f32 to vector<16x1xf32>
    %129 = arith.addf %125, %128 : vector<16x1xf32>
    %130 = math.rsqrt %129 : vector<16x1xf32>
    %131 = vector.broadcast %130 : vector<16x1xf32> to vector<16x128xf32>
    %132 = arith.mulf %127, %131 : vector<16x128xf32>
    %133 = vector.broadcast %112 : vector<1x128xf32> to vector<16x128xf32>
    %134 = arith.mulf %132, %133 : vector<16x128xf32>
    %135 = vector.broadcast %114 : vector<1x128xf32> to vector<16x128xf32>
    %136 = arith.addf %134, %135 : vector<16x128xf32>
    %137 = arith.truncf %136 : vector<16x128xf32> to vector<16x128xbf16>
    %c0_49 = arith.constant 0 : index
    %c0_50 = arith.constant 0 : index
    %c0_51 = arith.constant 0 : index
    %138 = vector.load %arg8[%c0_49, %c0_50, %c0_51] : memref<1x128x2048xbf16, #tpu.memory_space<vmem>>, vector<1x128x2048xbf16>
    %139 = vector.shape_cast %138 : vector<1x128x2048xbf16> to vector<128x2048xbf16>
    %cst_52 = arith.constant dense<0.000000e+00> : vector<16x2048xf32>
    %140 = tpu.matmul %137, %139, %cst_52 {dimension_numbers = #tpu.dot_dimension_numbers<[1], [0], [0], [1], [0, 0, 1, 1], [], []>} : vector<16x128xbf16>, vector<128x2048xbf16>, vector<16x2048xf32> -> vector<16x2048xf32>
    %c0_53 = arith.constant 0 : index
    %c0_54 = arith.constant 0 : index
    %c0_55 = arith.constant 0 : index
    %141 = vector.load %arg9[%c0_53, %c0_54, %c0_55] : memref<1x1x2048xf32, #tpu.memory_space<vmem>>, vector<1x1x2048xf32>
    %142 = vector.shape_cast %141 : vector<1x1x2048xf32> to vector<1x2048xf32>
    %143 = vector.broadcast %142 : vector<1x2048xf32> to vector<16x2048xf32>
    %144 = arith.addf %140, %143 : vector<16x2048xf32>
    %cst_56 = arith.constant 0.000000e+00 : f32
    %145 = vector.broadcast %cst_56 : f32 to vector<16x2048xf32>
    %146 = arith.maximumf %144, %145 : vector<16x2048xf32>
    %147 = arith.truncf %146 : vector<16x2048xf32> to vector<16x2048xbf16>
    %c0_57 = arith.constant 0 : index
    %c0_58 = arith.constant 0 : index
    %c0_59 = arith.constant 0 : index
    %148 = vector.load %arg10[%c0_57, %c0_58, %c0_59] : memref<1x2048x128xbf16, #tpu.memory_space<vmem>>, vector<1x2048x128xbf16>
    %149 = vector.shape_cast %148 : vector<1x2048x128xbf16> to vector<2048x128xbf16>
    %cst_60 = arith.constant dense<0.000000e+00> : vector<16x128xf32>
    %150 = tpu.matmul %147, %149, %cst_60 {dimension_numbers = #tpu.dot_dimension_numbers<[1], [0], [0], [1], [0, 0, 1, 1], [], []>} : vector<16x2048xbf16>, vector<2048x128xbf16>, vector<16x128xf32> -> vector<16x128xf32>
    %c0_61 = arith.constant 0 : index
    %c4 = arith.constant 4 : index
    %c0_62 = arith.constant 0 : index
    %151 = vector.load %arg11[%c0_61, %c4, %c0_62] : memref<1x8x128xf32, #tpu.memory_space<vmem>>, vector<1x1x128xf32>
    %152 = vector.shape_cast %151 : vector<1x1x128xf32> to vector<1x128xf32>
    %153 = vector.broadcast %152 : vector<1x128xf32> to vector<16x128xf32>
    %154 = arith.addf %150, %153 : vector<16x128xf32>
    %155 = arith.addf %154, %136 : vector<16x128xf32>
    %c0_63 = arith.constant 0 : index
    %c2 = arith.constant 2 : index
    %c0_64 = arith.constant 0 : index
    %156 = vector.load %arg11[%c0_63, %c2, %c0_64] : memref<1x8x128xf32, #tpu.memory_space<vmem>>, vector<1x1x128xf32>
    %157 = vector.shape_cast %156 : vector<1x1x128xf32> to vector<1x128xf32>
    %c0_65 = arith.constant 0 : index
    %c3 = arith.constant 3 : index
    %c0_66 = arith.constant 0 : index
    %158 = vector.load %arg11[%c0_65, %c3, %c0_66] : memref<1x8x128xf32, #tpu.memory_space<vmem>>, vector<1x1x128xf32>
    %159 = vector.shape_cast %158 : vector<1x1x128xf32> to vector<1x128xf32>
    %cst_67 = arith.constant dense<0.000000e+00> : vector<16xf32>
    %160 = vector.multi_reduction <add>, %155, %cst_67 [1] : vector<16x128xf32> to vector<16xf32>
    %161 = vector.shape_cast %160 : vector<16xf32> to vector<16x1xf32>
    %cst_68 = arith.constant 1.280000e+02 : f32
    %162 = vector.broadcast %cst_68 : f32 to vector<16x1xf32>
    %163 = arith.divf %161, %162 : vector<16x1xf32>
    %164 = vector.broadcast %163 : vector<16x1xf32> to vector<16x128xf32>
    %165 = arith.subf %155, %164 : vector<16x128xf32>
    %166 = arith.mulf %165, %165 : vector<16x128xf32>
    %cst_69 = arith.constant dense<0.000000e+00> : vector<16xf32>
    %167 = vector.multi_reduction <add>, %166, %cst_69 [1] : vector<16x128xf32> to vector<16xf32>
    %168 = vector.shape_cast %167 : vector<16xf32> to vector<16x1xf32>
    %cst_70 = arith.constant 1.280000e+02 : f32
    %169 = vector.broadcast %cst_70 : f32 to vector<16x1xf32>
    %170 = arith.divf %168, %169 : vector<16x1xf32>
    %171 = vector.broadcast %163 : vector<16x1xf32> to vector<16x128xf32>
    %172 = arith.subf %155, %171 : vector<16x128xf32>
    %cst_71 = arith.constant 9.99999997E-7 : f32
    %173 = vector.broadcast %cst_71 : f32 to vector<16x1xf32>
    %174 = arith.addf %170, %173 : vector<16x1xf32>
    %175 = math.rsqrt %174 : vector<16x1xf32>
    %176 = vector.broadcast %175 : vector<16x1xf32> to vector<16x128xf32>
    %177 = arith.mulf %172, %176 : vector<16x128xf32>
    %178 = vector.broadcast %157 : vector<1x128xf32> to vector<16x128xf32>
    %179 = arith.mulf %177, %178 : vector<16x128xf32>
    %180 = vector.broadcast %159 : vector<1x128xf32> to vector<16x128xf32>
    %181 = arith.addf %179, %180 : vector<16x128xf32>
    %c0_72 = arith.constant 0 : index
    %c0_73 = arith.constant 0 : index
    %182 = vector.load %arg13[%c0_72, %c0_73] : memref<16x128xf32, #tpu.memory_space<vmem>>, vector<16x128xf32>
    tpu.vector_store %arg13[%c0_72, %c0_73], %181 {strides = array<i32>} : memref<16x128xf32, #tpu.memory_space<vmem>>, vector<16x128xf32>,
    %c1_i32 = arith.constant 1 : i32
    %183 = arith.cmpi eq, %arg1, %c1_i32 : i32
    %184 = arith.extui %183 : i1 to i32
    %c0_i32_74 = arith.constant 0 : i32
    %185 = arith.cmpi ne, %184, %c0_i32_74 : i32
    scf.if %185 {
      %186 = vector.shape_cast %181 : vector<16x128xf32> to vector<2x8x128xf32>
      %c0_75 = arith.constant 0 : index
      %c0_76 = arith.constant 0 : index
      %c0_77 = arith.constant 0 : index
      %187 = vector.load %arg12[%c0_75, %c0_76, %c0_77] : memref<2x8x128xf32, #tpu.memory_space<vmem>>, vector<2x8x128xf32>
      tpu.vector_store %arg12[%c0_75, %c0_76, %c0_77], %186 {strides = array<i32>} : memref<2x8x128xf32, #tpu.memory_space<vmem>>, vector<2x8x128xf32>,
    } else {
    }
    return
  }
  func.func @transform_0(%arg0: i32, %arg1: i32) -> (i32, i32, i32) {
    %c0_i32 = arith.constant 0 : i32
    %c0_i32_0 = arith.constant 0 : i32
    %c0_i32_1 = arith.constant 0 : i32
    return %arg0, %c0_i32, %c0_i32_0 : i32, i32, i32
  }
  func.func @transform_1(%arg0: i32, %arg1: i32) -> (i32, i32) {
    %c0_i32 = arith.constant 0 : i32
    %c0_i32_0 = arith.constant 0 : i32
    %c0_i32_1 = arith.constant 0 : i32
    return %c0_i32, %c0_i32_0 : i32, i32
  }
  func.func @transform_2(%arg0: i32, %arg1: i32) -> (i32, i32) {
    %c0_i32 = arith.constant 0 : i32
    %c0_i32_0 = arith.constant 0 : i32
    %c0_i32_1 = arith.constant 0 : i32
    return %c0_i32, %c0_i32_0 : i32, i32
  }
  func.func @transform_3(%arg0: i32, %arg1: i32) -> (i32, i32, i32) {
    %c0_i32 = arith.constant 0 : i32
    %c0_i32_0 = arith.constant 0 : i32
    %c0_i32_1 = arith.constant 0 : i32
    return %arg0, %c0_i32, %c0_i32_0 : i32, i32, i32
  }
  func.func @transform_4(%arg0: i32, %arg1: i32) -> (i32, i32, i32) {
    %c0_i32 = arith.constant 0 : i32
    %c0_i32_0 = arith.constant 0 : i32
    %c0_i32_1 = arith.constant 0 : i32
    return %arg1, %c0_i32, %c0_i32_0 : i32, i32, i32
  }
  func.func @transform_5(%arg0: i32, %arg1: i32) -> (i32, i32, i32) {
    %c0_i32 = arith.constant 0 : i32
    %c0_i32_0 = arith.constant 0 : i32
    %c0_i32_1 = arith.constant 0 : i32
    return %arg1, %c0_i32, %c0_i32_0 : i32, i32, i32
  }
  func.func @transform_6(%arg0: i32, %arg1: i32) -> (i32, i32, i32) {
    %c0_i32 = arith.constant 0 : i32
    %c0_i32_0 = arith.constant 0 : i32
    %c0_i32_1 = arith.constant 0 : i32
    return %arg1, %c0_i32, %c0_i32_0 : i32, i32, i32
  }
  func.func @transform_7(%arg0: i32, %arg1: i32) -> (i32, i32, i32) {
    %c0_i32 = arith.constant 0 : i32
    %c0_i32_0 = arith.constant 0 : i32
    %c0_i32_1 = arith.constant 0 : i32
    return %arg1, %c0_i32, %c0_i32_0 : i32, i32, i32
  }
  func.func @transform_8(%arg0: i32, %arg1: i32) -> (i32, i32, i32) {
    %c0_i32 = arith.constant 0 : i32
    %c0_i32_0 = arith.constant 0 : i32
    %c0_i32_1 = arith.constant 0 : i32
    return %arg1, %c0_i32, %c0_i32_0 : i32, i32, i32
  }
  func.func @transform_9(%arg0: i32, %arg1: i32) -> (i32, i32, i32) {
    %c0_i32 = arith.constant 0 : i32
    %c0_i32_0 = arith.constant 0 : i32
    %c0_i32_1 = arith.constant 0 : i32
    return %arg1, %c0_i32, %c0_i32_0 : i32, i32, i32
  }
  func.func @transform_10(%arg0: i32, %arg1: i32) -> (i32, i32, i32) {
    %c0_i32 = arith.constant 0 : i32
    %c0_i32_0 = arith.constant 0 : i32
    %c0_i32_1 = arith.constant 0 : i32
    return %arg0, %c0_i32, %c0_i32_0 : i32, i32, i32
  }
}

</mosaic_0001>

<bundles_post_ra>
// kernel: encoder_forward.1
= control target key start
LH: loop header
LB: loop body
LE: loop exit
PB: predicated region body
PF: predicated region fallthrough
CT: control target
= control target key end

     0   :  { %s7466_s0 = inlined_call_operand.hbm [shape: f32[2,8,128], index: 0, kind: input, shape index: {}]   ;;  %s7467_s1 = inlined_call_operand.hbm [shape: f32[8,128], index: 1, kind: input, shape index: {}]   ;;  %s7468_s2 = inlined_call_operand.hbm [shape: f32[8,128], index: 2, kind: input, shape index: {}]   ;;  %s7469_s3 = inlined_call_operand.hbm [shape: f32[2,8,1], index: 3, kind: input, shape index: {}]   ;;  %s7470_s4 = inlined_call_operand.hbm [shape: bf16[2,128,384], index: 4, kind: input, shape index: {}]   ;;  %s7471_s5 = inlined_call_operand.hbm [shape: bf16[2,128,128], index: 5, kind: input, shape index: {}]   ;;  %s7472_s6 = inlined_call_operand.hbm [shape: bf16[2,128,2048], index: 6, kind: input, shape index: {}]   ;;  %s7473_s7 = inlined_call_operand.hbm [shape: f32[2,1,2048], index: 7, kind: input, shape index: {}]   ;;  %s7474_s8 = inlined_call_operand.hbm [shape: bf16[2,2048,128], index: 8, kind: input, shape index: {}]   ;;  %s7475_s9 = inlined_call_operand.hbm [shape: f32[2,8,128], index: 9, kind: input, shape index: {}]   ;;  %s7476_s10 = inlined_call_operand.hbm [shape: f32[2,8,128], index: 10, kind: output, shape index: {}]  }
   0x1   :  { %7499 = sst [smem:[#allocation30_spill]] %s7466_s0 }
   0x2   :  { %7500 = sst [smem:[#allocation31_spill]] %s7467_s1 }
   0x3   :  { %7501 = sst [smem:[#allocation32_spill]] %s7470_s4 }
   0x4   :  { %7502 = sst [smem:[#allocation33_spill]] %s7471_s5 }
   0x5   :  { %7503 = sst [smem:[#allocation34_spill]] %s7476_s10 }
   0x6   :  { %15 = vsyncpa [#allocation5], 0 }
   0x7   :  { %16 = vsyncpa [#allocation8], 0 }
   0x8   :  { %17 = vsyncpa [#allocation11], 0 }
   0x9   :  { %18 = vsyncpa [#allocation6], 0  ;;  %s6419_s13 = smov 0   ;;  %s6421_s14 = smov 0  }
   0xa   :  { %s6423_s15 = smov 0   ;;  %s6425_s16 = smov 0  }
   0xb   :  { %s6427_s17 = smov 0   ;;  %s6429_s18 = smov 0  }
   0xc LB: > { %7504 = sst [smem:[#allocation24_spill]] %s6320_s14  ;;  %s6448_s19 = sadd.s32 4294967295, %s6336_s18   ;;  %s6336_s18 = sphi %s6429_s18, %s24_s18   ;;  %s6332_s17 = sphi %s6427_s17, %s7556_s17   ;;  %s6328_s16 = sphi %s6425_s16, %s7555_s16   ;;  %s6324_s15 = sphi %s6423_s15, %s7553_s15   ;;  %s6320_s14 = sphi %s6421_s14, %s7552_s14   ;;  %s6316_s13 = sphi %s6419_s13, %s7551_s13  }
   0xd   : > { %7505 = sst [smem:[#allocation25_spill]] %s6324_s15  ;;  %p144_p0 = scmp.ne.s32.totalorder %s6324_s15, %s6320_s14 }
   0xe   : > { %7506 = sst [smem:[#allocation26_spill]] %s6328_s16  ;;  %p145_p1 = scmp.eq.s32.totalorder %s6336_s18, 0 }
   0xf   : > { %p150_p2 = scmp.ne.s32.totalorder %s6320_s14, %s6316_s13  ;;  %p7478_p3 = scmp.eq.s32.totalorder %s6448_s19, 0 }
  0x10   : > { %p6456_p4 = por %p145_p1, %p144_p0  ;;  %p4879_p5 = scmp.ge.s32.totalorder %s6336_s18, 1 }
  0x11   : > { %p6463_p6 = por %p7478_p3, %p150_p2  ;;  %p317_p7 = scmp.lt.s32.totalorder %s6336_s18, 3 }
  0x12   : > { %s7507_s21 = scalar_select %p6456_p4, 1, 0 }
  0x13   : > { %s7508_s22 = scalar_select %p6463_p6, 1, 0 }
  0x14   : > { %p6468_p8 = pnand %p4879_p5, %p317_p7  ;;  %s6338_s24 = smov [#allocation4]  }
  0x15   : > { %7509 = sst [smem:[#allocation27_spill]] %s7508_s22  ;;  %s332_s25 = sshll.u32 %s6338_s24, 4  ;;  %s333_s25 = int_to_ptr.vmem [resolvable:$true] %s332_s25 }
  0x16   : > { %s7510_s23 = scalar_select %p6468_p8, 1, 0 }
  0x17   : > { %p5628_p9 = pneg %p6468_p8  ;;  %s33_s27 = sadd.s32 1, %s6332_s17 }
  0x18   : > { %p6482_p12 = scmp.ge.s32.totalorder %s33_s27, 2  ;;  %s7513_s0 = sld [smem:[#allocation30_spill]] }
  0x19   : > { %p6476_p10 = pnand %p5628_p9, %p7478_p3 }
  0x1a   : > { %s7512_s28 = scalar_select %p6482_p12, 1, 0 }
  0x1b   : > { %s7511_s26 = scalar_select %p6476_p10, 1, 0 }
  0x1c   : > { %p6494_p0 = pneg %p6476_p10 }
  0x1e   : > { %s5952_s11 = scalar_lea.hbm %s7513_s0, 256 }
  0x1f   : > { %p5953_p13 = scmp.ne.s32.totalorder %s7513_s0, %s5952_s11  ;;  %p5959_p5 = scmp.lt.u32.totalorder %s5952_s11, %s7513_s0 }
  0x20   : > { %s7514_s24 = scalar_select %p6494_p0, 1, 0 }
  0x21   : > { %p5955_p1 = pnand %p6494_p0, %p5953_p13 }
  0x23   : > { %p5956_p2 = pneg %p5955_p1 }
  0x25   : > { %p5961_p7 = pnand %p5959_p5, %p5956_p2 }
  0x27   : > { %5964 = shalt.err (!%p5961_p7)
}
  0x28   : > { %s5965_s29 = scalar_lea.vmem %s333_s25, 256  ;;  %p5973_p6 = scmp.lt.s32.totalorder %s333_s25, %s333_s25 }
  0x29   : > { %p5966_p9 = scmp.ne.s32.totalorder %s333_s25, %s5965_s29  ;;  %p5974_p8 = scmp.lt.s32.totalorder %s5965_s29, %s5965_s29 }
  0x2b   : > { %p5968_p3 = pnand %p5966_p9, %p6494_p0  ;;  %p5975_p4 = por %p5974_p8, %p5973_p6 }
  0x2d   : > { %p5969_p11 = pneg %p5968_p3 }
  0x2f   : > { %p5976_p12 = pnand %p5975_p4, %p5969_p11 }
  0x31   : > { %5979 = shalt.err (!%p5976_p12)
}
  0x32   : > { %s7484_s30 = smov 128   ;;  %s7485_s10 = smov 8  }
  0x33   : > { %5631 = dma.hbm_to_vmem [thread:$0]  (!%p6476_p10), %s7513_s0, 256, %s333_s25, [#allocation5], %s7484_s30, %s7484_s30, %s7485_s10  }
  0x34   : > { %p7515_p3 = scmp.ne.s32.totalorder %s7512_s28, 0  ;;  %s384_s12 = sand.u32 1, %s6336_s18  }
  0x35   : > { %s6519_s13 = sand.u32 1, %s6324_s15   ;;  %s5594_s22 = smul.u32 3072, %s6332_s17 }
  0x36   : > { %s7558_s27 = smov (%p7515_p3, %s33_s27), 0  ;;  %s5593_s16 = smul.u32 192, %s6519_s13 }
  0x37   : > { %7516 = sst [smem:[#allocation28_spill]] %s7558_s27  ;;  %s134_s29 = ssub.s32 %s6332_s17, %s7558_s27 }
  0x38   : > { %p135_p4 = scmp.eq.s32.totalorder %s134_s29, 0  ;;  %p7517_p6 = scmp.ne.s32.totalorder %s7507_s21, 0 }
  0x39   : > { %p7518_p8 = scmp.lt.s32.totalorder %s6336_s18, 2  ;;  %s7520_s25 = sadd.s32 1, %s6324_s15 }
  0x3a   : > { %s6536_s28 = scalar_select %p135_p4, %s6324_s15, %s7520_s25  }
  0x3b   : > { %p6529_p11 = pnand %p7518_p8, %p7517_p6  ;;  %s7522_s4 = sld [smem:[#allocation32_spill]] }
  0x3c   : > { %7521 = sst [smem:[#allocation29_spill]] %s6536_s28  ;;  %s388_s29 = scalar_lea.vmem [#allocation12], %s5593_s16 }
  0x3d   : > { %s7519_s14 = scalar_select %p6529_p11, 1, 0 }
  0x3e   : > { %s395_s21 = sshll.u32 %s388_s29, 4  ;;  %s6546_s0 = scalar_lea.sflag [#allocation5], %s384_s12  ;;  %s6543_s21 = int_to_ptr.vmem [resolvable:$true] %s395_s21 }
  0x3f   : > { %p6552_p13 = pneg %p6529_p11 }
  0x41   : > { %s6541_s30 = scalar_lea.hbm %s7522_s4, %s5594_s22  ;;  %s5985_s16 = scalar_lea.hbm %s7522_s4, 6144 }
  0x42   : > { %s5980_s27 = scalar_lea.hbm %s6541_s30, 3072  ;;  %p5986_p5 = scmp.lt.u32.totalorder %s6541_s30, %s7522_s4 }
  0x43   : > { %p5981_p12 = scmp.ne.s32.totalorder %s6541_s30, %s5980_s27  ;;  %p5987_p7 = scmp.lt.u32.totalorder %s5985_s16, %s5980_s27 }
  0x44   : > { %s7523_s25 = scalar_select %p6552_p13, 1, 0 }
  0x45   : > { %p5983_p1 = pnand %p6552_p13, %p5981_p12  ;;  %p5988_p9 = por %p5987_p7, %p5986_p5 }
  0x46   : > { %p5989_p3 = scmp.lt.u32.totalorder %s5980_s27, %s6541_s30 }
  0x47   : > { %p5984_p2 = pneg %p5983_p1 }
  0x48   : > { %p5990_p4 = por %p5989_p3, %p5988_p9 }
  0x4a   : > { %p5991_p6 = pnand %p5990_p4, %p5984_p2 }
  0x4c   : > { %5994 = shalt.err (!%p5991_p6)
}
  0x4d   : > { %s5995_s12 = scalar_lea.vmem %s6543_s21, 3072  ;;  %s6341_s22 = smov [#allocation12]  }
  0x4e   : > { %p5996_p8 = scmp.ne.s32.totalorder %s6543_s21, %s5995_s12  ;;  %s6000_s20 = sshll.u32 %s6341_s22, 4  ;;  %s6001_s20 = int_to_ptr.vmem [resolvable:$false] %s6000_s20 }
  0x4f   : > { %s6002_s11 = scalar_lea.vmem %s6001_s20, 6144  ;;  %p6003_p10 = scmp.lt.s32.totalorder %s6543_s21, %s6001_s20 }
  0x50   : > { %p5998_p12 = pnand %p5996_p8, %p6552_p13  ;;  %p6004_p0 = scmp.lt.s32.totalorder %s6002_s11, %s5995_s12 }
  0x52   : > { %p5999_p1 = pneg %p5998_p12  ;;  %p6005_p5 = por %p6004_p0, %p6003_p10 }
  0x54   : > { %p6006_p7 = pnand %p6005_p5, %p5999_p1 }
  0x56   : > { %6009 = shalt.err (!%p6006_p7)
}
  0x57   : > { %s6342_s27 = smov 192   ;;  %s6343_s16 = smov 12  }
  0x58   : > { %5644 = dma.hbm_to_vmem [thread:$0]  (!%p6529_p11), %s6541_s30, 3072, %s6543_s21, %s6546_s0, %s6342_s27, %s6342_s27, %s6343_s16  }
  0x59   : > { %s5227_s29 = sshll.u32 %s6332_s17, 10  ;;  %s7524_s5 = sld [smem:[#allocation33_spill]] }
  0x5a   : > { %s7525_s20 = sshll.u32 %s6519_s13, 6  ;;  %s7493_s28 = sshll.u32 %s6519_s13, 10 }
  0x5b   : > { %s409_s11 = scalar_lea.vmem [#allocation13], %s7525_s20 }
  0x5c   : > { %s416_s4 = sshll.u32 %s409_s11, 4  ;;  %s6584_s4 = int_to_ptr.vmem [resolvable:$true] %s416_s4 }
  0x5f   : > { %s6580_s12 = scalar_lea.hbm %s7524_s5, %s5227_s29  ;;  %s6015_s10 = scalar_lea.hbm %s7524_s5, 2048 }
  0x60   : > { %s6010_s15 = scalar_lea.hbm %s6580_s12, 1024  ;;  %p6016_p9 = scmp.lt.u32.totalorder %s6580_s12, %s7524_s5 }
  0x61   : > { %p6011_p10 = scmp.ne.s32.totalorder %s6580_s12, %s6010_s15  ;;  %p6017_p3 = scmp.lt.u32.totalorder %s6015_s10, %s6010_s15 }
  0x62   : > { %p6019_p6 = scmp.lt.u32.totalorder %s6010_s15, %s6580_s12 }
  0x63   : > { %p6013_p0 = pnand %p6011_p10, %p6552_p13  ;;  %p6018_p4 = por %p6017_p3, %p6016_p9 }
  0x65   : > { %p6014_p2 = pneg %p6013_p0  ;;  %p6020_p8 = por %p6019_p6, %p6018_p4 }
  0x67   : > { %p6021_p12 = pnand %p6020_p8, %p6014_p2 }
  0x69   : > { %6024 = shalt.err (!%p6021_p12)
}
  0x6a   : > { %s6025_s29 = scalar_lea.vmem %s6584_s4, 1024  ;;  %s6344_s22 = smov [#allocation13]  }
  0x6b   : > { %p6026_p1 = scmp.ne.s32.totalorder %s6584_s4, %s6025_s29  ;;  %s6030_s20 = sshll.u32 %s6344_s22, 4  ;;  %s6031_s20 = int_to_ptr.vmem [resolvable:$false] %s6030_s20 }
  0x6c   : > { %s6032_s11 = scalar_lea.vmem %s6031_s20, 2048  ;;  %p6033_p10 = scmp.lt.s32.totalorder %s6584_s4, %s6031_s20 }
  0x6d   : > { %p6028_p5 = pnand %p6026_p1, %p6552_p13  ;;  %p6034_p0 = scmp.lt.s32.totalorder %s6032_s11, %s6025_s29 }
  0x6f   : > { %p6029_p7 = pneg %p6028_p5  ;;  %p6035_p9 = por %p6034_p0, %p6033_p10 }
  0x71   : > { %p6036_p3 = pnand %p6035_p9, %p6029_p7 }
  0x73   : > { %6039 = shalt.err (!%p6036_p3)
}
  0x74   : > { %s6345_s15 = smov 64   ;;  %s7492_s30 = smov 4  }
  0x75   : > { %5647 = dma.hbm_to_vmem [thread:$0]  (!%p6529_p11), %s6580_s12, 1024, %s6584_s4, %s6546_s0, %s6345_s15, %s6345_s15, %s7492_s30  }
  0x76   : > { %s7494_s21 = sshll.u32 %s6332_s17, 14  ;;  %s430_s29 = scalar_lea.vmem [#allocation14], %s7493_s28 }
  0x77   : > { %s6618_s16 = scalar_lea.hbm %s7472_s6, %s7494_s21  ;;  %s437_s22 = sshll.u32 %s430_s29, 4  ;;  %s6622_s22 = int_to_ptr.vmem [resolvable:$true] %s437_s22 }
  0x78   : > { %s6040_s20 = scalar_lea.hbm %s6618_s16, 16384  ;;  %s6045_s11 = scalar_lea.hbm %s7472_s6, 32768 }
  0x79   : > { %p6041_p2 = scmp.ne.s32.totalorder %s6618_s16, %s6040_s20  ;;  %p6046_p8 = scmp.lt.u32.totalorder %s6618_s16, %s7472_s6 }
  0x7a   : > { %p6047_p12 = scmp.lt.u32.totalorder %s6045_s11, %s6040_s20  ;;  %p6049_p5 = scmp.lt.u32.totalorder %s6040_s20, %s6618_s16 }
  0x7b   : > { %p6043_p4 = pnand %p6041_p2, %p6552_p13 }
  0x7c   : > { %p6048_p1 = por %p6047_p12, %p6046_p8 }
  0x7d   : > { %p6044_p6 = pneg %p6043_p4 }
  0x7e   : > { %p6050_p7 = por %p6049_p5, %p6048_p1 }
  0x80   : > { %p6051_p10 = pnand %p6050_p7, %p6044_p6 }
  0x82   : > { %6054 = shalt.err (!%p6051_p10)
}
  0x83   : > { %s6055_s29 = scalar_lea.vmem %s6622_s22, 16384  ;;  %s6347_s4 = smov [#allocation14]  }
  0x84   : > { %p6056_p0 = scmp.ne.s32.totalorder %s6622_s22, %s6055_s29  ;;  %s6060_s12 = sshll.u32 %s6347_s4, 4  ;;  %s6061_s12 = int_to_ptr.vmem [resolvable:$false] %s6060_s12 }
  0x85   : > { %s6062_s10 = scalar_lea.vmem %s6061_s12, 32768  ;;  %p6063_p2 = scmp.lt.s32.totalorder %s6622_s22, %s6061_s12 }
  0x86   : > { %p6058_p9 = pnand %p6056_p0, %p6552_p13  ;;  %p6064_p4 = scmp.lt.s32.totalorder %s6062_s10, %s6055_s29 }
  0x88   : > { %p6059_p3 = pneg %p6058_p9  ;;  %p6065_p8 = por %p6064_p4, %p6063_p2 }
  0x8a   : > { %p6066_p12 = pnand %p6065_p8, %p6059_p3 }
  0x8c   : > { %6069 = shalt.err (!%p6066_p12)
}
  0x8d   : > { %s6348_s20 = smov 1024   ;;  %s4892_s11 = sshll.u32 %s6519_s13, 4 }
  0x8e   : > { %5650 = dma.hbm_to_vmem [thread:$0]  (!%p6529_p11), %s6618_s16, 16384, %s6622_s22, %s6546_s0, %s6348_s20, %s6348_s20, %s6345_s15  }
  0x8f   : > { %s5229_s27 = sshll.u32 %s6332_s17, 8  ;;  %s451_s12 = scalar_lea.vmem [#allocation15], %s4892_s11 }
  0x90   : > { %s6652_s29 = scalar_lea.hbm %s7473_s7, %s5229_s27  ;;  %s459_s10 = sshll.u32 %s451_s12, 4  ;;  %s6654_s10 = int_to_ptr.vmem [resolvable:$true] %s459_s10 }
  0x91   : > { %s6349_s28 = smov [#allocation7]   ;;  %s6070_s5 = scalar_lea.hbm %s6652_s29, 256 }
  0x92   : > { %s346_s21 = sshll.u32 %s6349_s28, 4  ;;  %p6071_p6 = scmp.ne.s32.totalorder %s6652_s29, %s6070_s5  ;;  %s347_s21 = int_to_ptr.vmem [resolvable:$true] %s346_s21 }
  0x93   : > { %s6075_s30 = scalar_lea.hbm %s7473_s7, 512  ;;  %p6076_p7 = scmp.lt.u32.totalorder %s6652_s29, %s7473_s7 }
  0x94   : > { %p6073_p1 = pnand %p6071_p6, %p6552_p13  ;;  %p6077_p10 = scmp.lt.u32.totalorder %s6075_s30, %s6070_s5 }
  0x95   : > { %p6079_p9 = scmp.lt.u32.totalorder %s6070_s5, %s6652_s29 }
  0x96   : > { %p6074_p5 = pneg %p6073_p1  ;;  %p6078_p0 = por %p6077_p10, %p6076_p7 }
  0x98   : > { %p6080_p3 = por %p6079_p9, %p6078_p0 }
  0x9a   : > { %p6081_p2 = pnand %p6080_p3, %p6074_p5 }
  0x9c   : > { %6084 = shalt.err (!%p6081_p2)
}
  0x9d   : > { %s6085_s28 = scalar_lea.vmem %s6654_s10, 256  ;;  %s6350_s11 = smov [#allocation15]  }
  0x9e   : > { %p6086_p4 = scmp.ne.s32.totalorder %s6654_s10, %s6085_s28  ;;  %s6090_s4 = sshll.u32 %s6350_s11, 4  ;;  %s6091_s4 = int_to_ptr.vmem [resolvable:$false] %s6090_s4 }
  0x9f   : > { %s6092_s12 = scalar_lea.vmem %s6091_s4, 512  ;;  %p6093_p6 = scmp.lt.s32.totalorder %s6654_s10, %s6091_s4 }
  0xa0   : > { %p6088_p8 = pnand %p6086_p4, %p6552_p13  ;;  %p6094_p1 = scmp.lt.s32.totalorder %s6092_s12, %s6085_s28 }
  0xa2   : > { %p6089_p12 = pneg %p6088_p8  ;;  %p6095_p7 = por %p6094_p1, %p6093_p6 }
  0xa4   : > { %p6096_p10 = pnand %p6095_p7, %p6089_p12 }
  0xa6   : > { %6099 = shalt.err (!%p6096_p10)
}
  0xa7   : > { %5653 = dma.hbm_to_vmem [thread:$0]  (!%p6529_p11), %s6652_s29, 256, %s6654_s10, %s6546_s0  }
  0xa8   : > { %s7526_s1 = sld [smem:[#allocation31_spill]]  ;;  %p7527_p0 = scmp.ne.s32.totalorder %s7514_s24, 0 }
  0xae   : > { %s6100_s22 = scalar_lea.hbm %s7526_s1, 128 }
  0xaf   : > { %p6101_p5 = scmp.ne.s32.totalorder %s7526_s1, %s6100_s22  ;;  %p6107_p2 = scmp.lt.u32.totalorder %s6100_s22, %s7526_s1 }
  0xb1   : > { %p6103_p9 = pnand %p6101_p5, %p7527_p0 }
  0xb3   : > { %p6104_p3 = pneg %p6103_p9 }
  0xb5   : > { %p6109_p4 = pnand %p6107_p2, %p6104_p3 }
  0xb7   : > { %6112 = shalt.err (!%p6109_p4)
}
  0xb8   : > { %s6113_s11 = scalar_lea.vmem %s347_s21, 128  ;;  %p6121_p1 = scmp.lt.s32.totalorder %s347_s21, %s347_s21 }
  0xb9   : > { %p6114_p8 = scmp.ne.s32.totalorder %s347_s21, %s6113_s11  ;;  %p6122_p7 = scmp.lt.s32.totalorder %s6113_s11, %s6113_s11 }
  0xbb   : > { %p6116_p12 = pnand %p6114_p8, %p7527_p0  ;;  %p6123_p10 = por %p6122_p7, %p6121_p1 }
  0xbd   : > { %p6117_p6 = pneg %p6116_p12 }
  0xbf   : > { %p6124_p11 = pnand %p6123_p10, %p6117_p6 }
  0xc1   : > { %6127 = shalt.err (!%p6124_p11)
}
  0xc2   : > { %p7528_p5 = scmp.ne.s32.totalorder %s7511_s26, 0  ;;  %s7529_s4 = sshll.u32 %s6332_s17, 14 }
  0xc3   : > { %s6701_s16 = scalar_lea.hbm %s7474_s8, %s7529_s4  ;;  %s7530_s22 = sshll.u32 %s6519_s13, 10 }
  0xc4   : > { %5634 = dma.hbm_to_vmem [thread:$0]  (!%p7528_p5), %s7526_s1, 128, %s347_s21, [#allocation8]  }
  0xc5   : > { %s470_s30 = scalar_lea.vmem [#allocation16], %s7530_s22  ;;  %s6128_s27 = scalar_lea.hbm %s6701_s16, 16384 }
  0xc6   : > { %s477_s20 = sshll.u32 %s470_s30, 4  ;;  %p6129_p11 = scmp.ne.s32.totalorder %s6701_s16, %s6128_s27  ;;  %s6705_s20 = int_to_ptr.vmem [resolvable:$true] %s477_s20 }
  0xc7   : > { %s6133_s11 = scalar_lea.hbm %s7474_s8, 32768  ;;  %p6134_p2 = scmp.lt.u32.totalorder %s6701_s16, %s7474_s8 }
  0xc8   : > { %p6131_p9 = pnand %p6129_p11, %p6552_p13  ;;  %p6135_p4 = scmp.lt.u32.totalorder %s6133_s11, %s6128_s27 }
  0xc9   : > { %p6137_p12 = scmp.lt.u32.totalorder %s6128_s27, %s6701_s16 }
  0xca   : > { %p6132_p3 = pneg %p6131_p9  ;;  %p6136_p8 = por %p6135_p4, %p6134_p2 }
  0xcc   : > { %p6138_p6 = por %p6137_p12, %p6136_p8 }
  0xce   : > { %p6139_p1 = pnand %p6138_p6, %p6132_p3 }
  0xd0   : > { %6142 = shalt.err (!%p6139_p1)
}
  0xd1   : > { %s6143_s4 = scalar_lea.vmem %s6705_s20, 16384  ;;  %s6351_s12 = smov [#allocation16]  }
  0xd2   : > { %p6144_p7 = scmp.ne.s32.totalorder %s6705_s20, %s6143_s4  ;;  %s6148_s5 = sshll.u32 %s6351_s12, 4  ;;  %s6149_s5 = int_to_ptr.vmem [resolvable:$false] %s6148_s5 }
  0xd3   : > { %s6150_s22 = scalar_lea.vmem %s6149_s5, 32768  ;;  %p6151_p9 = scmp.lt.s32.totalorder %s6705_s20, %s6149_s5 }
  0xd4   : > { %p6146_p10 = pnand %p6144_p7, %p6552_p13  ;;  %p6152_p5 = scmp.lt.s32.totalorder %s6150_s22, %s6143_s4 }
  0xd6   : > { %p6147_p11 = pneg %p6146_p10  ;;  %p6153_p2 = por %p6152_p5, %p6151_p9 }
  0xd8   : > { %p6154_p4 = pnand %p6153_p2, %p6147_p11 }
  0xda   : > { %6157 = shalt.err (!%p6154_p4)
}
  0xdb   : > { %p7531_p3 = scmp.ne.s32.totalorder %s7519_s14, 0  ;;  %s7532_s30 = smov 4  }
  0xdc   : > { %s6352_s27 = smov [#allocation9]   ;;  %s6353_s28 = smov [#allocation10]  }
  0xdd   : > { %5656 = dma.hbm_to_vmem [thread:$0]  (!%p7531_p3), %s6701_s16, 16384, %s6705_s20, %s6546_s0, %s6345_s15, %s6345_s15, %s7532_s30  }
  0xde   : > { %s357_s21 = sshll.u32 %s6352_s27, 4  ;;  %s370_s11 = sshll.u32 %s6353_s28, 4  ;;  %s358_s21 = int_to_ptr.vmem [resolvable:$true] %s357_s21  ;;  %s371_s11 = int_to_ptr.vmem [resolvable:$true] %s370_s11 }
  0xdf   : > { %s6158_s4 = scalar_lea.hbm %s7468_s2, 128 }
  0xe0   : > { %p6159_p5 = scmp.ne.s32.totalorder %s7468_s2, %s6158_s4  ;;  %p6165_p6 = scmp.lt.u32.totalorder %s6158_s4, %s7468_s2 }
  0xe2   : > { %p6161_p8 = pnand %p6159_p5, %p7527_p0 }
  0xe4   : > { %p6162_p12 = pneg %p6161_p8 }
  0xe6   : > { %p6167_p1 = pnand %p6165_p6, %p6162_p12 }
  0xe8   : > { %6170 = shalt.err (!%p6167_p1)
}
  0xe9   : > { %s6171_s15 = scalar_lea.vmem %s358_s21, 128  ;;  %p6179_p9 = scmp.lt.s32.totalorder %s358_s21, %s358_s21 }
  0xea   : > { %p6172_p7 = scmp.ne.s32.totalorder %s358_s21, %s6171_s15  ;;  %p6180_p2 = scmp.lt.s32.totalorder %s6171_s15, %s6171_s15 }
  0xec   : > { %p6174_p10 = pnand %p6172_p7, %p7527_p0  ;;  %p6181_p4 = por %p6180_p2, %p6179_p9 }
  0xee   : > { %p6175_p11 = pneg %p6174_p10 }
  0xf0   : > { %p6182_p3 = pnand %p6181_p4, %p6175_p11 }
  0xf2   : > { %6185 = shalt.err (!%p6182_p3)
}
  0xf3   : > { %p7533_p5 = scmp.ne.s32.totalorder %s7511_s26, 0  ;;  %s4898_s1 = sshll.u32 %s6519_s13, 3 }
  0xf4   : > { %s6186_s28 = scalar_lea.hbm %s7469_s3, 256 }
  0xf5   : > { %5637 = dma.hbm_to_vmem [thread:$0]  (!%p7533_p5), %s7468_s2, 128, %s358_s21, [#allocation8]  }
  0xf6   : > { %p6187_p8 = scmp.ne.s32.totalorder %s7469_s3, %s6186_s28  ;;  %p6193_p6 = scmp.lt.u32.totalorder %s6186_s28, %s7469_s3 }
  0xf8   : > { %p6189_p3 = pnand %p6187_p8, %p7527_p0 }
  0xfa   : > { %p6190_p12 = pneg %p6189_p3 }
  0xfc   : > { %p6195_p1 = pnand %p6193_p6, %p6190_p12 }
  0xfe   : > { %6198 = shalt.err (!%p6195_p1)
}
  0xff   : > { %s6199_s21 = scalar_lea.vmem %s371_s11, 256  ;;  %p6207_p9 = scmp.lt.s32.totalorder %s371_s11, %s371_s11 }
 0x100   : > { %p6200_p7 = scmp.ne.s32.totalorder %s371_s11, %s6199_s21  ;;  %p6208_p2 = scmp.lt.s32.totalorder %s6199_s21, %s6199_s21 }
 0x102   : > { %p6202_p10 = pnand %p6200_p7, %p7527_p0  ;;  %p6209_p4 = por %p6208_p2, %p6207_p9 }
 0x104   : > { %p6203_p11 = pneg %p6202_p10 }
 0x106   : > { %p6210_p13 = pnand %p6209_p4, %p6203_p11 }
 0x108   : > { %6213 = shalt.err (!%p6210_p13)
}
 0x109   : > { %s7534_s13 = smov 8   ;;  %s7535_s5 = smov 128  }
 0x10a   : > { %5640 = dma.hbm_to_vmem [thread:$0]  (!%p7533_p5), %s7469_s3, 256, %s371_s11, [#allocation11], %s7535_s5, %s7535_s5, %s7534_s13  }
 0x10b   : > { %s4899_s16 = sshll.u32 %s6332_s17, 7  ;;  %s491_s26 = scalar_lea.vmem [#allocation17], %s4898_s1 }
 0x10c   : > { %s6776_s30 = scalar_lea.hbm %s7475_s9, %s4899_s16  ;;  %s498_s27 = sshll.u32 %s491_s26, 4  ;;  %s499_s27 = int_to_ptr.vmem [resolvable:$true] %s498_s27 }
 0x10d   : > { %s6214_s28 = scalar_lea.hbm %s6776_s30, 128  ;;  %p7536_p0 = scmp.ne.s32.totalorder %s7523_s25, 0 }
 0x10e   : > { %p6215_p13 = scmp.ne.s32.totalorder %s6776_s30, %s6214_s28  ;;  %s6219_s10 = scalar_lea.hbm %s7475_s9, 256 }
 0x10f   : > { %p6220_p5 = scmp.lt.u32.totalorder %s6776_s30, %s7475_s9  ;;  %p6221_p12 = scmp.lt.u32.totalorder %s6219_s10, %s6214_s28 }
 0x110   : > { %p6217_p8 = pnand %p6215_p13, %p7536_p0  ;;  %p6223_p1 = scmp.lt.u32.totalorder %s6214_s28, %s6776_s30 }
 0x111   : > { %p6222_p6 = por %p6221_p12, %p6220_p5 }
 0x112   : > { %p6218_p3 = pneg %p6217_p8 }
 0x113   : > { %p6224_p7 = por %p6223_p1, %p6222_p6 }
 0x115   : > { %p6225_p10 = pnand %p6224_p7, %p6218_p3 }
 0x117   : > { %6228 = shalt.err (!%p6225_p10)
}
 0x118   : > { %s6229_s1 = scalar_lea.vmem %s499_s27, 128  ;;  %s6354_s21 = smov [#allocation17]  }
 0x119   : > { %p6230_p11 = scmp.ne.s32.totalorder %s499_s27, %s6229_s1  ;;  %s6234_s13 = sshll.u32 %s6354_s21, 4  ;;  %s6235_s13 = int_to_ptr.vmem [resolvable:$false] %s6234_s13 }
 0x11a   : > { %s6236_s5 = scalar_lea.vmem %s6235_s13, 256  ;;  %p6237_p4 = scmp.lt.s32.totalorder %s499_s27, %s6235_s13 }
 0x11b   : > { %p6232_p9 = pnand %p6230_p11, %p7536_p0  ;;  %p6238_p13 = scmp.lt.s32.totalorder %s6236_s5, %s6229_s1 }
 0x11d   : > { %p6233_p2 = pneg %p6232_p9  ;;  %p6239_p8 = por %p6238_p13, %p6237_p4 }
 0x11f   : > { %p6240_p5 = pnand %p6239_p8, %p6233_p2 }
 0x121   : > { %6243 = shalt.err (!%p6240_p5)
}
 0x122   : > { %p7537_p12 = scmp.ne.s32.totalorder %s7519_s14, 0  ;;  %p7538_p3 = scmp.ne.s32.totalorder %s7510_s23, 0 }
 0x123   : > { %p7539_p0 = scmp.eq.s32.totalorder (!%p7538_p3), %s6448_s19, 0 }
 0x124   : > { %5659 = dma.hbm_to_vmem [thread:$0]  (!%p7537_p12), %s6776_s30, 128, %s499_s27, %s6546_s0  }
 0x125   : > { %507 = sbr.rel (%p7538_p3) target bundleno = 4992 (0x1380), region = 60 }
 0x12c   : > { %6295 = dma.done.wait (%p7539_p0), [#allocation5], 256   ;;  %p7540_p6 = pmov %p7539_p0 }
 0x12d   : > { %p7541_p1 = pmov %p7539_p0 }
 0x12e   : > { %6297 = vsyncadd (%p7540_p6), [#allocation5], 4294967040 }
 0x12f   : > { %6299 = dma.done.wait (%p7541_p1), [#allocation8], 256   ;;  %p7542_p7 = pmov %p7539_p0 }
 0x130   : > { %p7543_p10 = pmov %p7539_p0 }
 0x131   : > { %6301 = vsyncadd (%p7542_p7), [#allocation8], 4294967040 }
 0x132   : > { %6303 = dma.done.wait (%p7543_p10), [#allocation11], 256   ;;  %p7544_p11 = pmov %p7539_p0 }
 0x133   : > { %s7545_s0 = sld [smem:[#allocation24_spill]]  ;;  %s7546_s14 = sld [smem:[#allocation27_spill]] }
 0x134   : > { %6305 = vsyncadd (%p7544_p11), [#allocation11], 4294967040  ;;  %s525_s23 = sand.u32 1, %s6448_s19  }
 0x135   : > { %s526_s15 = scalar_lea.sflag [#allocation5], %s525_s23 }
 0x139   : > { %s527_s25 = sand.u32 1, %s7545_s0   ;;  %p7547_p9 = scmp.ne.s32.totalorder %s7546_s14, 0 }
 0x13a   : > { %s5595_s22 = smul.u32 192, %s527_s25 }
 0x13c   : > { %s6812_s16 = scalar_lea.vmem [#allocation12], %s5595_s22 }
 0x13d   : > { %6307 = dma.done.wait (%p7547_p9), %s526_s15, 37248  }
 0x13e   : > { %6309 = vsyncadd (%p7547_p9), %s526_s15, 4294930048  ;;  %s4905_s24 = sshll.u32 %s527_s25, 6  ;;  %s4906_s20 = sshll.u32 %s527_s25, 10 }
 0x13f   : > { %s4907_s30 = sshll.u32 %s527_s25, 4  ;;  %s4909_s26 = sshll.u32 %s527_s25, 3 }
 0x140   : > { %s6818_s27 = scalar_lea.vmem [#allocation13], %s4905_s24  ;;  %s6820_s28 = scalar_lea.vmem [#allocation14], %s4906_s20 }
 0x141   : > { %s6822_s29 = scalar_lea.vmem [#allocation15], %s4907_s30  ;;  %s6824_s11 = scalar_lea.vmem [#allocation16], %s4906_s20 }
 0x142   : > { %s6826_s10 = scalar_lea.vmem [#allocation17], %s4909_s26  ;;  %s7548_s4 = sld [smem:[#allocation26_spill]] }
 0x148   : > { %p4910_p2 = scmp.ne.s32.totalorder %s7548_s4, 0 }
 0x149   : > { %v639_v0 = vld [vmem:[#allocation4] sm:$0xff] (!%p4910_p2)  ;;  %v641_v1 = vld [vmem:[#allocation7] sm:$0xff] (!%p4910_p2)  ;;  %v640_v2 = vld [vmem:[#allocation4 + $0x8] sm:$0xff] (!%p4910_p2) }
 0x14a   : > { %638 = sbr.rel (%p4910_p2) target bundleno = 648 (0x288), region = 104  ;;  %v642_v3 = vadd.f32 (!%p4910_p2), %v641_v1, %v639_v0  ;;  %v643_v4 = vadd.f32 (!%p4910_p2), %v641_v1, %v640_v2  ;;  %v4911_v20 = vld [vmem:[#allocation9] ss:$0 sm:$0xff] (!%p4910_p2)  ;;  %v4912_v22 = vld [vmem:[#allocation9 + $0x1] ss:$0 sm:$0xff] (!%p4910_p2) }
 0x14c   : > { %646 = vadd.xlane.f32.xlu0 (!%p4910_p2), %v642_v3 }
 0x150   : > { %648 = vadd.xlane.f32.xlu0 (!%p4910_p2), %v643_v4 }
 0x1d9   : > { %v647_v5 = vpop.xlane.xlu0 %646 }
 0x1da   : > { %v651_v6 = vmul.f32 0.0078125, %v647_v5 }
 0x1dc   : > { %v653_v7 = vsub.f32 %v642_v3, %v651_v6 }
 0x1dd   : > { %v649_v8 = vpop.xlane.xlu0 %648 }
 0x1de   : > { %v652_v9 = vmul.f32 0.0078125, %v649_v8  ;;  %v655_v10 = vmul.f32 %v653_v7, %v653_v7 }
 0x1e0   : > { %v654_v11 = vsub.f32 %v643_v4, %v652_v9  ;;  %657 = vadd.xlane.f32.xlu1 %v655_v10 }
 0x1e2   : > { %v656_v12 = vmul.f32 %v654_v11, %v654_v11 }
 0x1e4   : > { %659 = vadd.xlane.f32.xlu1 %v656_v12 }
 0x26d   : > { %v658_v13 = vpop.xlane.xlu1 %657 }
 0x26e   : > { %v661_v14 = vmul.f32 0.0078125, %v658_v13 }
 0x270   : > { %v663_v15 = vadd.f32 1e-06, %v661_v14 }
 0x271   : > { %v660_v16 = vpop.xlane.xlu1 %659 }
 0x272   : > { %5739 = vrsqrt.f32 %v663_v15  ;;  %v662_v17 = vmul.f32 0.0078125, %v660_v16 }
 0x274   : > { %v664_v18 = vadd.f32 1e-06, %v662_v17 }
 0x276   : > { %5741 = vrsqrt.f32 %v664_v18 }
 0x27c   : > { %v5740_v19 = vpop.eup %5739 }
 0x27d   : > { %v667_v21 = vmul.f32 %v5740_v19, %v653_v7 }
 0x27f   : > { %v673_v23 = vmul.f32 %v4911_v20, %v667_v21 }
 0x280   : > { %v5742_v24 = vpop.eup %5741 }
 0x281   : > { %v679_v25 = vadd.f32 %v4912_v22, %v673_v23  ;;  %v668_v26 = vmul.f32 %v5742_v24, %v654_v11 }
 0x283   : > { %681 = vst [vmem:[#allocation2] sm:$0xff] %v679_v25  ;;  %v674_v27 = vmul.f32 %v4911_v20, %v668_v26 }
 0x285   : > { %v680_v28 = vadd.f32 %v4912_v22, %v674_v27 }
 0x287   : > { %682 = vst [vmem:[#allocation2 + $0x8] sm:$0xff] %v680_v28 }
 0x288 PF: > { %v685_v29 = vld [vmem:[#allocation10] sm:$0xff]  ;;  %v6355_v30 = vmov 0   ;;  %v686_v31 = vld [vmem:[#allocation10 + $0x8] sm:$0xff]  ;;  %v6356_v33 = vmov 0.0   ;;  %v5746_v34 = vld [vmem:[%s6812_s16] ss:$12 sps:$4 sm:$0xff]  }
 0x289   : > { %5743 = vset.pattern.permute.xlu0 %v6355_v30  ;;  %v5744_v32 = vld [vmem:[%s6812_s16 + $0x4] ss:$12 sps:$4 sm:$0xff]   ;;  %5457 = vmatprep.subr.bf16.mxu1 %v6356_v33  ;;  %v5747_v35 = vld [vmem:[%s6812_s16 + $0x8] ss:$12 sps:$4 sm:$0xff]   ;;  %v5751_v38 = vld [vmem:[%s6812_s16 + $0x20] ss:$12 sps:$4 sm:$0xff]  }
 0x28a   : > { %689 = vperm.xlu0 %5743, %v685_v29   ;;  %892 = vmatprep.mubr.bf16.mxu0 %v6355_v30  ;;  %v5748_v36 = vld [vmem:[%s6812_s16 + $0x1c] ss:$12 sps:$4 sm:$0xff]   ;;  %v5750_v37 = vld [vmem:[%s6812_s16 + $0x18] ss:$12 sps:$4 sm:$0xff]   ;;  %v5752_v39 = vld [vmem:[%s6812_s16 + $0x34] ss:$12 sps:$4 sm:$0xff]  }
 0x28b   : > { %860 = vmatprep.subr.bf16.mxu0 %v5744_v32  ;;  %5458 = vmatpush3.bf16.msra.mxu1 %v5747_v35  ;;  %v5754_v40 = vld [vmem:[%s6812_s16 + $0x30] ss:$12 sps:$4 sm:$0xff]   ;;  %v5755_v41 = vld [vmem:[%s6812_s16 + $0x38] ss:$12 sps:$4 sm:$0xff]   ;;  %vm6357_vm0 = vmmov 0   ;;  %vm950_vm1 = vcmask 261120  }
 0x28c   : > { %861 = vmatpush1.bf16.msra.mxu0 %v5746_v34  ;;  %5459 = vmatprep.subr.bf16.mxu1 %v6356_v33  ;;  %v5756_v42 = vld [vmem:[%s6812_s16 + $0x4c] ss:$12 sps:$4 sm:$0xff]   ;;  %v5758_v43 = vld [vmem:[%s6812_s16 + $0x48] ss:$12 sps:$4 sm:$0xff]   ;;  %v5759_v44 = vld [vmem:[%s6812_s16 + $0x50] ss:$12 sps:$4 sm:$0xff]  }
 0x28d   : > { %862 = vmatprep.subr.bf16.mxu0 %v5748_v36  ;;  %5473 = vmatprep.mubr.msk.bf16.mxu1 %vm6357_vm0, %v6356_v33  ;;  %v5760_v45 = vld [vmem:[%s6812_s16 + $0x64] ss:$12 sps:$4 sm:$0xff]   ;;  %v5762_v46 = vld [vmem:[%s6812_s16 + $0x60] ss:$12 sps:$4 sm:$0xff]   ;;  %v5763_v47 = vld [vmem:[%s6812_s16 + $0x68] ss:$12 sps:$4 sm:$0xff]  }
 0x28e   : > { %694 = vperm.xlu0 %5743, %v686_v31   ;;  %v5764_v48 = vld [vmem:[%s6812_s16 + $0x7c] ss:$12 sps:$4 sm:$0xff]   ;;  %v5766_v49 = vld [vmem:[%s6812_s16 + $0x78] ss:$12 sps:$4 sm:$0xff]   ;;  %v5767_v50 = vld [vmem:[%s6812_s16 + $0x80] ss:$12 sps:$4 sm:$0xff]  }
 0x28f   : > { %5460 = vmatpush3.bf16.msra.mxu1 %v5751_v38  ;;  %v5768_v51 = vld [vmem:[%s6812_s16 + $0x94] ss:$12 sps:$4 sm:$0xff]   ;;  %v5770_v52 = vld [vmem:[%s6812_s16 + $0x90] ss:$12 sps:$4 sm:$0xff]   ;;  %v5771_v53 = vld [vmem:[%s6812_s16 + $0x98] ss:$12 sps:$4 sm:$0xff]  }
 0x290   : > { %863 = vmatpush1.bf16.msra.mxu0 %v5750_v37  ;;  %5461 = vmatprep.subr.bf16.mxu1 %v6356_v33  ;;  %v5772_v54 = vld [vmem:[%s6812_s16 + $0xac] ss:$12 sps:$4 sm:$0xff]   ;;  %v5774_v55 = vld [vmem:[%s6812_s16 + $0xa8] ss:$12 sps:$4 sm:$0xff]   ;;  %v5775_v56 = vld [vmem:[%s6812_s16 + $0xb0] ss:$12 sps:$4 sm:$0xff]  }
 0x291   : > { %864 = vmatprep.subr.bf16.mxu0 %v5752_v39  ;;  %v6867_v58 = vld [vmem:[#allocation2] sm:$0xff]  ;;  %v6869_v59 = vld [vmem:[#allocation2 + $0x8] sm:$0xff]  ;;  %vm1073_vm2 = vcmask 1043456   ;;  %vm1045_vm3 = vcmask 64512   ;;  %s6358_s12 = smov 96   ;;  %s6359_s1 = smov 64  }
 0x292   : > { %s6360_s21 = smov 32   ;;  %vm1401_vm4 = vcmask 523520   ;;  %vm1634_vm5 = vcmask 785920   ;;  %vm1867_vm6 = vcmask 1048320   ;;  %s7549_s13 = sld [smem:[#allocation26_spill]] }
 0x293   : > { %5462 = vmatpush3.bf16.msra.mxu1 %v5755_v41 }
 0x294   : > { %865 = vmatpush1.bf16.msra.mxu0 %v5754_v40  ;;  %5463 = vmatprep.subr.bf16.mxu1 %v6356_v33 }
 0x295   : > { %866 = vmatprep.subr.bf16.mxu0 %v5756_v42 }
 0x297   : > { %5464 = vmatpush3.bf16.msra.mxu1 %v5759_v44 }
 0x298   : > { %867 = vmatpush1.bf16.msra.mxu0 %v5758_v43  ;;  %5465 = vmatprep.subr.bf16.mxu1 %v6356_v33  ;;  %p5222_p4 = scmp.ne.s32.totalorder %s7549_s13, 1 }
 0x299   : > { %868 = vmatprep.subr.bf16.mxu0 %v5760_v45 }
 0x29b   : > { %5466 = vmatpush3.bf16.msra.mxu1 %v5763_v47 }
 0x29c   : > { %869 = vmatpush1.bf16.msra.mxu0 %v5762_v46  ;;  %5467 = vmatprep.subr.bf16.mxu1 %v6356_v33 }
 0x29d   : > { %870 = vmatprep.subr.bf16.mxu0 %v5764_v48 }
 0x29f   : > { %5468 = vmatpush3.bf16.msra.mxu1 %v5767_v50 }
 0x2a0   : > { %871 = vmatpush1.bf16.msra.mxu0 %v5766_v49  ;;  %5469 = vmatprep.subr.bf16.mxu1 %v6356_v33 }
 0x2a1   : > { %872 = vmatprep.subr.bf16.mxu0 %v5768_v51 }
 0x2a3   : > { %5470 = vmatpush3.bf16.msra.mxu1 %v5771_v53 }
 0x2a4   : > { %873 = vmatpush1.bf16.msra.mxu0 %v5770_v52  ;;  %5471 = vmatprep.subr.bf16.mxu1 %v6356_v33 }
 0x2a5   : > { %874 = vmatprep.subr.bf16.mxu0 %v5772_v54 }
 0x2a7   : > { %5472 = vmatpush3.bf16.msra.mxu1 %v5775_v56 }
 0x2a8   : > { %875 = vmatpush1.bf16.msra.mxu0 %v5774_v55  ;;  %5477 = vmatprep.subr.bf16.mxu1 %v6356_v33 }
 0x2a9   : > { %5501 = vmatprep.subr.bf16.mxu0 %v6356_v33 }
 0x309   : > { %v690_v57 = vpop.permute.xlu0 %689 }
 0x30a   : > { %v697_v61 = vmul.f32 %v690_v57, %v6867_v58 }
 0x30d   : > { %v695_v60 = vpop.permute.xlu0 %694 }
 0x30e   : > { %v698_v62 = vmul.f32 %v695_v60, %v6869_v59 }
 0x310   : > { %v699_v63 = vpack.c.bf16 %v698_v62, %v697_v61 }
 0x312   : > { %893 = vmatmul.mubr.bf16.vlgmr.msra.gmra.mrb[0].mxu0 %v699_v63  ;;  %5474 = vmatmul.mubr.bf16.vlgmr.msra.gmra.mrb[0].mxu1 %v699_v63 }
 0x313   : > { %5479 = vmatprep.mubr.msk.bf16.mxu1 %vm6357_vm0, %v6356_v33  ;;  %5503 = vmatprep.mubr.msk.bf16.mxu0 %vm6357_vm0, %v6356_v33 }
 0x3e5   : > { %v894_v0 = vpop.f32.mrb[0].mxu0  ;;  %v937_v1 = vpop.f32.mrb[0].mxu1 }
 0x3e6   : > { %v896_v2 = vpop.f32.mrb[1].mxu0  ;;  %v5475_v3 = vpop.f32.mrb[1].mxu1  ;;  %v6886_v11 = vpack.c.bf16 %v894_v0, %v894_v0  ;;  %v6895_v13 = vpack.c.bf16 %v937_v1, %v937_v1 }
 0x3e7   : > { %v6877_v4 = vpack.c.bf16 %v896_v2, %v896_v2  ;;  %v898_v5 = vpop.f32.mrb[2].mxu0  ;;  %v6879_v6 = vpop.f32.mrb[2].mxu1 }
 0x3e8   : > { %v900_v7 = vpop.f32.mrb[3].mxu0  ;;  %v5476_v8 = vpop.f32.mrb[3].mxu1  ;;  %v6897_v14 = vpack.c.bf16 %v898_v5, %v898_v5  ;;  %v1075_v15 = vsel %vm1073_vm2, %v6895_v13, 0  ;;  %v6922_v46 = vpack.c.bf16 %v6879_v6, %v6879_v6 }
 0x3e9   : > { %v955_v9 = vsel %vm950_vm1, %v6877_v4, 0  ;;  %v6884_v10 = vpack.c.bf16 %v900_v7, %v900_v7 }
 0x3ea   : > { %5478 = vmatpush3.bf16.xpose.msra.mxu1 %v955_v9  ;;  %v1121_v50 = vsel %vm1073_vm2, %v6922_v46, 0 }
 0x3eb   : > { %5483 = vmatprep.subr.bf16.mxu1 %v6356_v33  ;;  %v1001_v12 = vsel %vm950_vm1, %v6884_v10, 0 }
 0x3f1   : > { %5480 = vmatmul.mubr.msk.bf16.vlgmr.msra.gmra.mrb[4].mxu1 %vm950_vm1, %v6886_v11 }
 0x3f2   : > { %5484 = vmatpush3.bf16.xpose.msra.mxu1 %v1001_v12  ;;  %5485 = vmatprep.mubr.msk.bf16.mxu1 %vm6357_vm0, %v6356_v33 }
 0x3f3   : > { %5489 = vmatprep.subr.bf16.mxu1 %v6356_v33 }
 0x3f9   : > { %5486 = vmatmul.mubr.msk.bf16.vlgmr.msra.gmra.mrb[8].mxu1 %vm950_vm1, %v6897_v14 }
 0x3fa   : > { %5490 = vmatpush3.bf16.msra.mxu1 %v1075_v15  ;;  %5491 = vmatprep.mubr.msk.bf16.mxu1 %vm6357_vm0, %v6356_v33 }
 0x3fb   : > { %5495 = vmatprep.subr.bf16.mxu1 %v6356_v33 }
 0x4c4   : > { %v991_v16 = vpop.f32.mrb[4].mxu1 }
 0x4c5   : > { %v1043_v17 = vmul.f32 0.17677669, %v991_v16  ;;  %v5481_v18 = vpop.f32.mrb[5].mxu1 }
 0x4c6   : > { %v994_v19 = vpop.f32.mrb[6].mxu1 }
 0x4c7   : > { %v5482_v20 = vpop.f32.mrb[7].mxu1  ;;  %v1046_v21 = vsel %vm1045_vm3, %v1043_v17, -inf }
 0x4c8   : > { %1047 = vmax.xlane.f32.xlu1 %v1046_v21 }
 0x4cc   : > { %v1037_v22 = vpop.f32.mrb[8].mxu1 }
 0x4cd   : > { %v1044_v23 = vmul.f32 0.17677669, %v1037_v22  ;;  %v5487_v24 = vpop.f32.mrb[9].mxu1 }
 0x4ce   : > { %v1040_v25 = vpop.f32.mrb[10].mxu1 }
 0x4cf   : > { %v5488_v26 = vpop.f32.mrb[11].mxu1  ;;  %v1049_v27 = vsel %vm1045_vm3, %v1044_v23, -inf }
 0x4d0   : > { %1050 = vmax.xlane.f32.xlu1 %v1049_v27 }
 0x4e1   : > { %1169 = vrot.lane.b32.xlu1 %v6877_v4, %s6358_s12 }
 0x4e5   : > { %1221 = vrot.lane.b32.xlu1 %v6884_v10, %s6358_s12 }
 0x555   : > { %v1048_v28 = vpop.xlane.xlu1 %1047 }
 0x556   : > { %v1052_v29 = vsub.f32 %v1043_v17, %v1048_v28 }
 0x558   : > { %v1054_v31 = vmul.f32 1.442695, %v1052_v29 }
 0x55a   : > { %5912 = vpow2.f32 %v1054_v31 }
 0x55d   : > { %v1051_v32 = vpop.xlane.xlu1 %1050 }
 0x55e   : > { %v1053_v34 = vsub.f32 %v1044_v23, %v1051_v32 }
 0x560   : > { %v1056_v35 = vmul.f32 1.442695, %v1053_v34 }
 0x561   : > { %v1170_v36 = vpop.permute.xlu1 %1169 }
 0x562   : > { %5914 = vpow2.f32 %v1056_v35  ;;  %v1175_v37 = vsel %vm950_vm1, %v1170_v36, 0 }
 0x563   : > { %5502 = vmatpush3.bf16.xpose.msra.mxu0 %v1175_v37 }
 0x564   : > { %v5913_v38 = vpop.eup %5912  ;;  %5513 = vmatprep.subr.bf16.mxu0 %v6356_v33 }
 0x565   : > { %v1058_v39 = vsel %vm1045_vm3, %v5913_v38, 0.0  ;;  %v1222_v43 = vpop.permute.xlu1 %1221 }
 0x566   : > { %1059 = vadd.xlane.f32.xlu0 %v1058_v39  ;;  %v1227_v54 = vsel %vm950_vm1, %v1222_v43, 0 }
 0x56c   : > { %v5915_v40 = vpop.eup %5914 }
 0x56d   : > { %v1061_v41 = vsel %vm1045_vm3, %v5915_v40, 0.0 }
 0x56e   : > { %1062 = vadd.xlane.f32.xlu1 %v1061_v41 }
 0x57f   : > { %1166 = vrot.lane.b32.xlu1 %v6886_v11, %s6358_s12 }
 0x583   : > { %1218 = vrot.lane.b32.xlu1 %v6897_v14, %s6358_s12 }
 0x5f3   : > { %v1060_v42 = vpop.xlane.xlu0 %1059 }
 0x5f4   : > { %5916 = vrcp.f32 %v1060_v42 }
 0x5fb   : > { %v1063_v44 = vpop.xlane.xlu1 %1062 }
 0x5fc   : > { %5918 = vrcp.f32 %v1063_v44 }
 0x5fe   : > { %v5917_v45 = vpop.eup %5916 }
 0x5ff   : > { %v1066_v47 = vmul.f32 %v5917_v45, %v5913_v38  ;;  %v1167_v48 = vpop.permute.xlu1 %1166 }
 0x600   : > { %5504 = vmatmul.mubr.msk.bf16.vlgmr.msra.gmra.mrb[4].mxu0 %vm950_vm1, %v1167_v48 }
 0x601   : > { %v1068_v49 = vpack.c.bf16 %v1066_v47, %v1066_v47  ;;  %5515 = vmatprep.mubr.msk.bf16.mxu0 %vm6357_vm0, %v6356_v33 }
 0x603   : > { %5492 = vmatmul.mubr.msk.bf16.vlgmr.msra.gmra.mrb[12].mxu1 %vm1045_vm3, %v1068_v49  ;;  %v1219_v55 = vpop.permute.xlu1 %1218 }
 0x604   : > { %5496 = vmatpush3.bf16.msra.mxu1 %v1121_v50  ;;  %5497 = vmatprep.mubr.msk.bf16.mxu1 %vm6357_vm0, %v6356_v33 }
 0x605   : > { %5507 = vmatprep.subr.bf16.mxu1 %v6356_v33 }
 0x606   : > { %v5919_v51 = vpop.eup %5918 }
 0x607   : > { %v1067_v52 = vmul.f32 %v5919_v51, %v5915_v40 }
 0x609   : > { %v1069_v53 = vpack.c.bf16 %v1067_v52, %v1067_v52 }
 0x60b   : > { %5498 = vmatmul.mubr.msk.bf16.vlgmr.msra.gmra.mrb[16].mxu1 %vm1045_vm3, %v1069_v53 }
 0x60c   : > { %5509 = vmatprep.mubr.msk.bf16.mxu1 %vm6357_vm0, %v6356_v33 }
 0x60d   : > { %5508 = vmatpush3.bf16.xpose.msra.mxu1 %v1227_v54 }
 0x60e   : > { %5519 = vmatprep.subr.bf16.mxu1 %v6356_v33 }
 0x614   : > { %5510 = vmatmul.mubr.msk.bf16.vlgmr.msra.gmra.mrb[20].mxu1 %vm950_vm1, %v1219_v55 }
 0x615   : > { %5521 = vmatprep.mubr.msk.bf16.mxu1 %vm6357_vm0, %v6356_v33 }
 0x6d3   : > { %v1211_v56 = vpop.f32.mrb[4].mxu0 }
 0x6d4   : > { %v1269_v57 = vmul.f32 0.17677669, %v1211_v56  ;;  %v5505_v60 = vpop.f32.mrb[5].mxu0 }
 0x6d5   : > { %v1214_v61 = vpop.f32.mrb[6].mxu0 }
 0x6d6   : > { %v1111_v62 = vpop.f32.mrb[12].mxu1  ;;  %v5506_v63 = vpop.f32.mrb[7].mxu0  ;;  %v1271_v0 = vsel %vm1045_vm3, %v1269_v57, -inf }
 0x6d7   : > { %1163 = vst.msk [vmem:[#allocation3] sm:$0xff] %vm950_vm1, %v1111_v62  ;;  %1272 = vmax.xlane.f32.xlu0 %v1271_v0  ;;  %v5493_v1 = vpop.f32.mrb[13].mxu1 }
 0x6d8   : > { %v1114_v2 = vpop.f32.mrb[14].mxu1 }
 0x6d9   : > { %v5494_v3 = vpop.f32.mrb[15].mxu1 }
 0x6de   : > { %v1157_v5 = vpop.f32.mrb[16].mxu1 }
 0x6df   : > { %1164 = vst.msk [vmem:[#allocation3 + $0x8] sm:$0xff] %vm950_vm1, %v1157_v5  ;;  %v5499_v6 = vpop.f32.mrb[17].mxu1 }
 0x6e0   : > { %v1160_v7 = vpop.f32.mrb[18].mxu1 }
 0x6e1   : > { %v5500_v8 = vpop.f32.mrb[19].mxu1 }
 0x6e7   : > { %v1263_v9 = vpop.f32.mrb[20].mxu1 }
 0x6e8   : > { %v1270_v12 = vmul.f32 0.17677669, %v1263_v9  ;;  %v5511_v15 = vpop.f32.mrb[21].mxu1 }
 0x6e9   : > { %v1266_v16 = vpop.f32.mrb[22].mxu1 }
 0x6ea   : > { %v5512_v17 = vpop.f32.mrb[23].mxu1  ;;  %v1274_v18 = vsel %vm1045_vm3, %v1270_v12, -inf }
 0x6eb   : > { %1275 = vmax.xlane.f32.xlu1 %v1274_v18 }
 0x6fc   : > { %1456 = vrot.lane.b32.xlu1 %v6884_v10, %s6359_s1 }
 0x764   : > { %v1273_v19 = vpop.xlane.xlu0 %1272 }
 0x765   : > { %v1277_v20 = vsub.f32 %v1269_v57, %v1273_v19 }
 0x767   : > { %v1279_v21 = vmul.f32 1.442695, %v1277_v20 }
 0x769   : > { %5920 = vpow2.f32 %v1279_v21 }
 0x773   : > { %v5921_v22 = vpop.eup %5920 }
 0x774   : > { %v1283_v23 = vsel %vm1045_vm3, %v5921_v22, 0.0 }
 0x775   : > { %1284 = vadd.xlane.f32.xlu0 %v1283_v23 }
 0x778   : > { %v1276_v24 = vpop.xlane.xlu1 %1275 }
 0x779   : > { %v1278_v25 = vsub.f32 %v1270_v12, %v1276_v24 }
 0x77b   : > { %v1281_v26 = vmul.f32 1.442695, %v1278_v25 }
 0x77c   : > { %v1457_v45 = vpop.permute.xlu1 %1456 }
 0x77d   : > { %5922 = vpow2.f32 %v1281_v26  ;;  %v1462_v48 = vsel %vm950_vm1, %v1457_v45, 0 }
 0x787   : > { %v5923_v27 = vpop.eup %5922 }
 0x788   : > { %v1286_v28 = vsel %vm1045_vm3, %v5923_v27, 0.0 }
 0x78b   : > { %1296 = vrot.lane.b32.xlu0 %v6895_v13, %s6358_s12 }
 0x78f   : > { %1345 = vrot.lane.b32.xlu0 %v6922_v46, %s6358_s12 }
 0x7ae   : > { %1287 = vadd.xlane.f32.xlu0 %v1286_v28 }
 0x7c4   : > { %1406 = vrot.lane.b32.xlu0 %v6877_v4, %s6359_s1 }
 0x7c8   : > { %1404 = vrot.lane.b32.xlu0 %v6886_v11, %s6359_s1 }
 0x7cc   : > { %1454 = vrot.lane.b32.xlu0 %v6897_v14, %s6359_s1 }
 0x802   : > { %v1285_v29 = vpop.xlane.xlu0 %1284 }
 0x803   : > { %5924 = vrcp.f32 %v1285_v29 }
 0x806   : > { %v1297_v31 = vpop.permute.xlu0 %1296 }
 0x807   : > { %v1302_v32 = vsel %vm1073_vm2, %v1297_v31, 0 }
 0x808   : > { %5514 = vmatpush3.bf16.msra.mxu0 %v1302_v32 }
 0x809   : > { %5525 = vmatprep.subr.bf16.mxu0 %v6356_v33 }
 0x80a   : > { %v1346_v34 = vpop.permute.xlu0 %1345 }
 0x80b   : > { %v1351_v35 = vsel %vm1073_vm2, %v1346_v34, 0 }
 0x80c   : > { %5520 = vmatpush3.bf16.msra.mxu1 %v1351_v35 }
 0x80d   : > { %v5925_v36 = vpop.eup %5924  ;;  %5531 = vmatprep.subr.bf16.mxu1 %v6356_v33 }
 0x80e   : > { %v1291_v37 = vmul.f32 %v5925_v36, %v5921_v22 }
 0x810   : > { %v1293_v38 = vpack.c.bf16 %v1291_v37, %v1291_v37 }
 0x812   : > { %5516 = vmatmul.mubr.msk.bf16.vlgmr.msra.gmra.mrb[8].mxu0 %vm1045_vm3, %v1293_v38 }
 0x813   : > { %5527 = vmatprep.mubr.msk.bf16.mxu0 %vm6357_vm0, %v6356_v33 }
 0x83b   : > { %v1288_v39 = vpop.xlane.xlu0 %1287 }
 0x83c   : > { %5926 = vrcp.f32 %v1288_v39 }
 0x83f   : > { %v1407_v40 = vpop.permute.xlu0 %1406 }
 0x840   : > { %v1412_v41 = vsel %vm950_vm1, %v1407_v40, 0 }
 0x841   : > { %5526 = vmatpush3.bf16.xpose.msra.mxu0 %v1412_v41 }
 0x842   : > { %5537 = vmatprep.subr.bf16.mxu0 %v6356_v33 }
 0x843   : > { %v1405_v44 = vpop.permute.xlu0 %1404 }
 0x846   : > { %v5927_v42 = vpop.eup %5926 }
 0x847   : > { %v1292_v43 = vmul.f32 %v5927_v42, %v5923_v27  ;;  %v1455_v49 = vpop.permute.xlu0 %1454 }
 0x848   : > { %5528 = vmatmul.mubr.msk.bf16.vlgmr.msra.gmra.mrb[12].mxu0 %vm950_vm1, %v1405_v44 }
 0x849   : > { %v1294_v47 = vpack.c.bf16 %v1292_v43, %v1292_v43  ;;  %5539 = vmatprep.mubr.msk.bf16.mxu0 %vm6357_vm0, %v6356_v33 }
 0x84b   : > { %5522 = vmatmul.mubr.msk.bf16.vlgmr.msra.gmra.mrb[24].mxu1 %vm1045_vm3, %v1294_v47 }
 0x84c   : > { %5532 = vmatpush3.bf16.xpose.msra.mxu1 %v1462_v48  ;;  %5533 = vmatprep.mubr.msk.bf16.mxu1 %vm6357_vm0, %v6356_v33 }
 0x84d   : > { %5543 = vmatprep.subr.bf16.mxu1 %v6356_v33 }
 0x853   : > { %5534 = vmatmul.mubr.msk.bf16.vlgmr.msra.gmra.mrb[28].mxu1 %vm950_vm1, %v1455_v49 }
 0x854   : > { %5545 = vmatprep.mubr.msk.bf16.mxu1 %vm6357_vm0, %v6356_v33 }
 0x8e5   : > { %v6979_v50 = vpop.f32.mrb[8].mxu0 }
 0x8e6   : > { %v5517_v51 = vpop.f32.mrb[9].mxu0 }
 0x8e7   : > { %v1341_v52 = vpop.f32.mrb[10].mxu0 }
 0x8e8   : > { %v5518_v53 = vpop.f32.mrb[11].mxu0 }
 0x91b   : > { %v1448_v54 = vpop.f32.mrb[12].mxu0 }
 0x91c   : > { %v1504_v55 = vmul.f32 0.17677669, %v1448_v54  ;;  %v5529_v56 = vpop.f32.mrb[13].mxu0 }
 0x91d   : > { %v1451_v57 = vpop.f32.mrb[14].mxu0 }
 0x91e   : > { %v6981_v60 = vpop.f32.mrb[24].mxu1  ;;  %v5530_v61 = vpop.f32.mrb[15].mxu0  ;;  %v1506_v62 = vsel %vm1045_vm3, %v1504_v55, -inf }
 0x91f   : > { %1507 = vmax.xlane.f32.xlu0 %v1506_v62  ;;  %v5523_v63 = vpop.f32.mrb[25].mxu1 }
 0x920   : > { %v1390_v0 = vpop.f32.mrb[26].mxu1 }
 0x921   : > { %v5524_v1 = vpop.f32.mrb[27].mxu1 }
 0x926   : > { %v1498_v2 = vpop.f32.mrb[28].mxu1 }
 0x927   : > { %v1505_v3 = vmul.f32 0.17677669, %v1498_v2  ;;  %v5535_v5 = vpop.f32.mrb[29].mxu1 }
 0x928   : > { %v1501_v6 = vpop.f32.mrb[30].mxu1 }
 0x929   : > { %v5536_v7 = vpop.f32.mrb[31].mxu1  ;;  %v1509_v8 = vsel %vm1045_vm3, %v1505_v3, -inf }
 0x92a   : > { %1510 = vmax.xlane.f32.xlu1 %v1509_v8 }
 0x93b   : > { %1578 = vrot.lane.b32.xlu1 %v6922_v46, %s6359_s1 }
 0x93f   : > { %1639 = vrot.lane.b32.xlu1 %v6877_v4, %s6360_s21 }
 0x943   : > { %1637 = vrot.lane.b32.xlu1 %v6886_v11, %s6360_s21 }
 0x9ac   : > { %v1508_v9 = vpop.xlane.xlu0 %1507 }
 0x9ad   : > { %v1512_v12 = vsub.f32 %v1504_v55, %v1508_v9 }
 0x9af   : > { %v1514_v15 = vmul.f32 1.442695, %v1512_v12 }
 0x9b1   : > { %5928 = vpow2.f32 %v1514_v15 }
 0x9b7   : > { %v1511_v16 = vpop.xlane.xlu1 %1510 }
 0x9b8   : > { %v1513_v4 = vsub.f32 %v1505_v3, %v1511_v16 }
 0x9ba   : > { %v1516_v11 = vmul.f32 1.442695, %v1513_v4 }
 0x9bb   : > { %v5929_v17 = vpop.eup %5928  ;;  %v1579_v18 = vpop.permute.xlu1 %1578 }
 0x9bc   : > { %v1584_v19 = vsel %vm1073_vm2, %v1579_v18, 0  ;;  %v1518_v20 = vsel %vm1045_vm3, %v5929_v17, 0.0  ;;  %5930 = vpow2.f32 %v1516_v11 }
 0x9bd   : > { %1519 = vadd.xlane.f32.xlu0 %v1518_v20  ;;  %5544 = vmatpush3.bf16.msra.mxu1 %v1584_v19 }
 0x9be   : > { %5555 = vmatprep.subr.bf16.mxu1 %v6356_v33 }
 0x9bf   : > { %v1640_v28 = vpop.permute.xlu1 %1639 }
 0x9c0   : > { %v1645_v31 = vsel %vm950_vm1, %v1640_v28, 0  ;;  %v5779_v28 = vld [vmem:[%s6818_s27 + $0x18] sm:$0xff]  }
 0x9c6   : > { %v5931_v21 = vpop.eup %5930 }
 0x9c7   : > { %v1521_v22 = vsel %vm1045_vm3, %v5931_v21, 0.0 }
 0x9d3   : > { %1530 = vrot.lane.b32.xlu0 %v6895_v13, %s6359_s1 }
 0x9f2   : > { %1522 = vadd.xlane.f32.xlu0 %v1521_v22 }
 0xa08   : > { %1689 = vrot.lane.b32.xlu0 %v6884_v10, %s6360_s21  ;;  %v1638_v10 = vpop.permute.xlu1 %1637 }
 0xa0c   : > { %1687 = vrot.lane.b32.xlu0 %v6897_v14, %s6360_s21 }
 0xa4a   : > { %v1520_v23 = vpop.xlane.xlu0 %1519 }
 0xa4b   : > { %5932 = vrcp.f32 %v1520_v23 }
 0xa4e   : > { %v1531_v24 = vpop.permute.xlu0 %1530 }
 0xa4f   : > { %v1536_v25 = vsel %vm1073_vm2, %v1531_v24, 0 }
 0xa50   : > { %5538 = vmatpush3.bf16.msra.mxu0 %v1536_v25  ;;  %v5776_v25 = vld [vmem:[%s6818_s27] sm:$0xff]  }
 0xa51   : > { %5549 = vmatprep.subr.bf16.mxu0 %v6356_v33 }
 0xa55   : > { %v5933_v26 = vpop.eup %5932 }
 0xa56   : > { %v1526_v27 = vmul.f32 %v5933_v26, %v5929_v17  ;;  %v5777_v26 = vld [vmem:[%s6818_s27 + $0x8] sm:$0xff]  }
 0xa58   : > { %v1528_v29 = vpack.c.bf16 %v1526_v27, %v1526_v27  ;;  %v5778_v27 = vld [vmem:[%s6818_s27 + $0x10] sm:$0xff]  }
 0xa5a   : > { %5540 = vmatmul.mubr.msk.bf16.vlgmr.msra.gmra.mrb[16].mxu0 %vm1045_vm3, %v1528_v29 }
 0xa5b   : > { %5550 = vmatpush3.bf16.xpose.msra.mxu0 %v1645_v31  ;;  %5551 = vmatprep.mubr.msk.bf16.mxu0 %vm6357_vm0, %v6356_v33 }
 0xa5c   : > { %5561 = vmatprep.subr.bf16.mxu0 %v6356_v33 }
 0xa62   : > { %5552 = vmatmul.mubr.msk.bf16.vlgmr.msra.gmra.mrb[20].mxu0 %vm950_vm1, %v1638_v10 }
 0xa63   : > { %5563 = vmatprep.mubr.msk.bf16.mxu0 %vm6357_vm0, %v6356_v33 }
 0xa7f   : > { %v1523_v14 = vpop.xlane.xlu0 %1522 }
 0xa80   : > { %5934 = vrcp.f32 %v1523_v14  ;;  %v5780_v14 = vld [vmem:[%s6818_s27 + $0x20] sm:$0xff]  }
 0xa83   : > { %v1690_v35 = vpop.permute.xlu0 %1689 }
 0xa84   : > { %v1695_v37 = vsel %vm950_vm1, %v1690_v35, 0  ;;  %v5782_v35 = vld [vmem:[%s6818_s27 + $0x30] sm:$0xff]  }
 0xa87   : > { %v1688_v38 = vpop.permute.xlu0 %1687 }
 0xa8a   : > { %v5935_v32 = vpop.eup %5934 }
 0xa8b   : > { %v1527_v34 = vmul.f32 %v5935_v32, %v5931_v21 }
 0xa8d   : > { %v1529_v36 = vpack.c.bf16 %v1527_v34, %v1527_v34  ;;  %v5781_v34 = vld [vmem:[%s6818_s27 + $0x28] sm:$0xff]  }
 0xa8f   : > { %5546 = vmatmul.mubr.msk.bf16.vlgmr.msra.gmra.mrb[32].mxu1 %vm1045_vm3, %v1529_v36  ;;  %v5783_v36 = vld [vmem:[%s6818_s27 + $0x38] sm:$0xff]  }
 0xa90   : > { %5556 = vmatpush3.bf16.xpose.msra.mxu1 %v1695_v37  ;;  %5557 = vmatprep.mubr.msk.bf16.mxu1 %vm6357_vm0, %v6356_v33 }
 0xa91   : > { %5567 = vmatprep.subr.bf16.mxu1 %v6356_v33 }
 0xa97   : > { %5558 = vmatmul.mubr.msk.bf16.vlgmr.msra.gmra.mrb[36].mxu1 %vm950_vm1, %v1688_v38 }
 0xa98   : > { %5569 = vmatprep.mubr.msk.bf16.mxu1 %vm6357_vm0, %v6356_v33 }
 0xb2d   : > { %v1572_v39 = vpop.f32.mrb[16].mxu0 }
 0xb2e   : > { %v5541_v40 = vpop.f32.mrb[17].mxu0 }
 0xb2f   : > { %v1575_v41 = vpop.f32.mrb[18].mxu0 }
 0xb30   : > { %v5542_v42 = vpop.f32.mrb[19].mxu0 }
 0xb35   : > { %v1681_v43 = vpop.f32.mrb[20].mxu0 }
 0xb36   : > { %v1737_v44 = vmul.f32 0.17677669, %v1681_v43  ;;  %v5553_v45 = vpop.f32.mrb[21].mxu0 }
 0xb37   : > { %v1684_v47 = vpop.f32.mrb[22].mxu0 }
 0xb38   : > { %v5554_v48 = vpop.f32.mrb[23].mxu0  ;;  %v1739_v49 = vsel %vm1045_vm3, %v1737_v44, -inf }
 0xb39   : > { %1740 = vmax.xlane.f32.xlu1 %v1739_v49 }
 0xb62   : > { %v1620_v51 = vpop.f32.mrb[32].mxu1 }
 0xb63   : > { %v5547_v52 = vpop.f32.mrb[33].mxu1 }
 0xb64   : > { %v1623_v53 = vpop.f32.mrb[34].mxu1 }
 0xb65   : > { %v5548_v54 = vpop.f32.mrb[35].mxu1  ;;  %v2016_v53 = vld [vmem:[%s6820_s28] sm:$0xff] }
 0xb66   : > { %v2024_v54 = vld [vmem:[%s6820_s28 + $0x40] sm:$0xff] }
 0xb6a   : > { %v1731_v55 = vpop.f32.mrb[36].mxu1 }
 0xb6b   : > { %v1738_v56 = vmul.f32 0.17677669, %v1731_v55  ;;  %v5559_v57 = vpop.f32.mrb[37].mxu1  ;;  %v2017_v55 = vld [vmem:[%s6820_s28 + $0x8] sm:$0xff] }
 0xb6c   : > { %v1734_v61 = vpop.f32.mrb[38].mxu1  ;;  %v4964_v57 = vcombine.high %v2016_v53, %v2024_v54 }
 0xb6d   : > { %v5560_v62 = vpop.f32.mrb[39].mxu1  ;;  %v1742_v63 = vsel %vm1045_vm3, %v1738_v56, -inf  ;;  %v2025_v61 = vld [vmem:[%s6820_s28 + $0x48] sm:$0xff] }
 0xb6e   : > { %1743 = vmax.xlane.f32.xlu0 %v1742_v63  ;;  %v2032_v62 = vld [vmem:[%s6820_s28 + $0x80] sm:$0xff] }
 0xb6f   : > { %v2040_v63 = vld [vmem:[%s6820_s28 + $0xc0] sm:$0xff] }
 0xbc6   : > { %v1741_v0 = vpop.xlane.xlu1 %1740 }
 0xbc7   : > { %v1745_v1 = vsub.f32 %v1737_v44, %v1741_v0  ;;  %v4965_v0 = vcombine.low %v2017_v55, %v2025_v61 }
 0xbc9   : > { %v1747_v2 = vmul.f32 1.442695, %v1745_v1  ;;  %v4966_v1 = vcombine.high %v2017_v55, %v2025_v61  ;;  %v2136_v55 = vld [vmem:[%s6820_s28 + $0x3c0] sm:$0xff]  ;;  %v2137_v61 = vld [vmem:[%s6820_s28 + $0x3c8] sm:$0xff] }
 0xbcb   : > { %5936 = vpow2.f32 %v1747_v2  ;;  %v2033_v2 = vld [vmem:[%s6820_s28 + $0x88] sm:$0xff] }
 0xbd5   : > { %v5937_v3 = vpop.eup %5936 }
 0xbd6   : > { %v1751_v5 = vsel %vm1045_vm3, %v5937_v3, 0.0 }
 0xbd7   : > { %1752 = vadd.xlane.f32.xlu0 %v1751_v5 }
 0xbed   : > { %1763 = vrot.lane.b32.xlu0 %v6895_v13, %s6360_s21 }
 0xbf1   : > { %1397 = vrot.lane.b32.xlu0 %v6981_v60, %s6360_s21 }
 0xbf5   : > { %1630 = vrot.lane.b32.xlu0 %v1620_v51, %s6359_s1 }
 0xbfb   : > { %v1744_v6 = vpop.xlane.xlu0 %1743 }
 0xbfc   : > { %v1746_v7 = vsub.f32 %v1738_v56, %v1744_v6  ;;  %v4963_v56 = vcombine.low %v2016_v53, %v2024_v54  ;;  %v2128_v54 = vld [vmem:[%s6820_s28 + $0x380] sm:$0xff] }
 0xbfe   : > { %v1749_v8 = vmul.f32 1.442695, %v1746_v7 }
 0xc00   : > { %5938 = vpow2.f32 %v1749_v8 }
 0xc0a   : > { %v5939_v9 = vpop.eup %5938 }
 0xc0b   : > { %v1754_v12 = vsel %vm1045_vm3, %v5939_v9, 0.0 }
 0xc0c   : > { %1755 = vadd.xlane.f32.xlu1 %v1754_v12 }
 0xc1d   : > { %1811 = vrot.lane.b32.xlu1 %v6922_v46, %s6360_s21 }
 0xc21   : > { %1395 = vrot.lane.b32.xlu1 %v6979_v50, %s6360_s21 }
 0xc25   : > { %1628 = vrot.lane.b32.xlu1 %v1572_v39, %s6359_s1 }
 0xc64   : > { %v1753_v13 = vpop.xlane.xlu0 %1752 }
 0xc65   : > { %5940 = vrcp.f32 %v1753_v13 }
 0xc68   : > { %v1764_v60 = vpop.permute.xlu0 %1763 }
 0xc69   : > { %v1769_v15 = vsel %vm1073_vm2, %v1764_v60, 0 }
 0xc6a   : > { %5562 = vmatpush3.bf16.msra.mxu0 %v1769_v15 }
 0xc6b   : > { %5573 = vmatprep.subr.bf16.mxu0 %v6356_v33 }
 0xc6c   : > { %v1398_v16 = vpop.permute.xlu0 %1397 }
 0xc6d   : > { %1403 = vst.msk [vmem:[#allocation3 + $0x8] sm:$0xff] %vm1401_vm4, %v1398_v16 }
 0xc6f   : > { %v5941_v17 = vpop.eup %5940 }
 0xc70   : > { %v1759_v46 = vmul.f32 %v5941_v17, %v5937_v3  ;;  %v1631_v18 = vpop.permute.xlu0 %1630  ;;  %v2041_v3 = vld [vmem:[%s6820_s28 + $0xc8] sm:$0xff]  ;;  %v2048_v17 = vld [vmem:[%s6820_s28 + $0x100] sm:$0xff] }
 0xc71   : > { %1636 = vst.msk [vmem:[#allocation3 + $0x8] sm:$0xff] %vm1634_vm5, %v1631_v18  ;;  %v4982_v5 = vcombine.high %v2033_v2, %v2041_v3  ;;  %v4981_v6 = vcombine.low %v2033_v2, %v2041_v3  ;;  %v2049_v18 = vld [vmem:[%s6820_s28 + $0x108] sm:$0xff]  ;;  %v2019_v2 = vld [vmem:[%s6820_s28 + $0x18] sm:$0xff] }
 0xc72   : > { %v1761_v50 = vpack.c.bf16 %v1759_v46, %v1759_v46  ;;  %v2056_v46 = vld [vmem:[%s6820_s28 + $0x140] sm:$0xff] }
 0xc74   : > { %5564 = vmatmul.mubr.msk.bf16.vlgmr.msra.gmra.mrb[24].mxu0 %vm1045_vm3, %v1761_v50  ;;  %v4996_v50 = vcombine.high %v2048_v17, %v2056_v46 }
 0xc75   : > { %5589 = vmatprep.mubr.msk.bf16.mxu0 %vm6357_vm0, %v6356_v33  ;;  %5574 = vmatpush3.bf16.msra.mxu0 %v5776_v25  ;;  %v2073_v25 = vld [vmem:[%s6820_s28 + $0x1c8] sm:$0xff] }
 0xc76   : > { %5575 = vmatprep.subr.bf16.mxu0 %v6356_v33 }
 0xc79   : > { %5576 = vmatpush3.bf16.msra.mxu0 %v5777_v26 }
 0xc7a   : > { %5577 = vmatprep.subr.bf16.mxu0 %v6356_v33 }
 0xc7d   : > { %5578 = vmatpush3.bf16.msra.mxu0 %v5778_v27 }
 0xc7e   : > { %5579 = vmatprep.subr.bf16.mxu0 %v6356_v33 }
 0xc81   : > { %5580 = vmatpush3.bf16.msra.mxu0 %v5779_v28 }
 0xc82   : > { %5581 = vmatprep.subr.bf16.mxu0 %v6356_v33 }
 0xc85   : > { %5582 = vmatpush3.bf16.msra.mxu0 %v5780_v14 }
 0xc86   : > { %5583 = vmatprep.subr.bf16.mxu0 %v6356_v33 }
 0xc89   : > { %5584 = vmatpush3.bf16.msra.mxu0 %v5781_v34 }
 0xc8a   : > { %5585 = vmatprep.subr.bf16.mxu0 %v6356_v33 }
 0xc8d   : > { %5586 = vmatpush3.bf16.msra.mxu0 %v5782_v35 }
 0xc8e   : > { %5587 = vmatprep.subr.bf16.mxu0 %v6356_v33 }
 0xc91   : > { %5588 = vmatpush3.bf16.msra.mxu0 %v5783_v36 }
 0xc92   : > { %2911 = vmatprep.subr.bf16.mxu0 %v4966_v1  ;;  %v2018_v1 = vld [vmem:[%s6820_s28 + $0x10] sm:$0xff] }
 0xc99   : > { %v1756_v19 = vpop.xlane.xlu1 %1755 }
 0xc9a   : > { %5942 = vrcp.f32 %v1756_v19  ;;  %v2057_v19 = vld [vmem:[%s6820_s28 + $0x148] sm:$0xff] }
 0xc9d   : > { %v1812_v20 = vpop.permute.xlu1 %1811 }
 0xc9e   : > { %v1817_v4 = vsel %vm1073_vm2, %v1812_v20, 0  ;;  %v4995_v20 = vcombine.low %v2048_v17, %v2056_v46 }
 0xc9f   : > { %5568 = vmatpush3.bf16.msra.mxu1 %v1817_v4  ;;  %v4997_v4 = vcombine.low %v2049_v18, %v2057_v19 }
 0xca0   : > { %2868 = vmatprep.subr.bf16.mxu1 %v4964_v57  ;;  %v5076_v57 = vcombine.high %v2128_v54, %v2136_v55 }
 0xca1   : > { %v1396_v11 = vpop.permute.xlu1 %1395 }
 0xca2   : > { %1402 = vst.msk [vmem:[#allocation3] sm:$0xff] %vm1401_vm4, %v1396_v11  ;;  %v4998_v11 = vcombine.high %v2049_v18, %v2057_v19  ;;  %v4961_v18 = vld [vmem:[%s6826_s10] ss:$0 sm:$0xff] }
 0xca4   : > { %v5943_v21 = vpop.eup %5942 }
 0xca5   : > { %v1760_v22 = vmul.f32 %v5943_v21, %v5939_v9  ;;  %v1629_v23 = vpop.permute.xlu1 %1628  ;;  %v2064_v21 = vld [vmem:[%s6820_s28 + $0x180] sm:$0xff] }
 0xca6   : > { %1635 = vst.msk [vmem:[#allocation3] sm:$0xff] %vm1634_vm5, %v1629_v23  ;;  %v2065_v23 = vld [vmem:[%s6820_s28 + $0x188] sm:$0xff] }
 0xca7   : > { %v1762_v24 = vpack.c.bf16 %v1760_v22, %v1760_v22  ;;  %v2072_v22 = vld [vmem:[%s6820_s28 + $0x1c0] sm:$0xff]  ;;  %v5013_v27 = vcombine.low %v2065_v23, %v2073_v25  ;;  %v5014_v28 = vcombine.high %v2065_v23, %v2073_v25  ;;  %v2042_v23 = vld [vmem:[%s6820_s28 + $0xd0] sm:$0xff]  ;;  %v2043_v25 = vld [vmem:[%s6820_s28 + $0xd8] sm:$0xff] }
 0xca8   : > { %v5011_v26 = vcombine.low %v2064_v21, %v2072_v22 }
 0xca9   : > { %5570 = vmatmul.mubr.msk.bf16.vlgmr.msra.gmra.mrb[40].mxu1 %vm1045_vm3, %v1762_v24  ;;  %v5012_v24 = vcombine.high %v2064_v21, %v2072_v22  ;;  %v2034_v22 = vld [vmem:[%s6820_s28 + $0x90] sm:$0xff] }
 0xcaa   : > { %2900 = vmatprep.mubr.bf16.mxu1 %v6355_v30  ;;  %2869 = vmatpush1.bf16.msra.mxu1 %v4963_v56  ;;  %v2129_v56 = vld [vmem:[%s6820_s28 + $0x388] sm:$0xff] }
 0xd47   : > { %v1805_v29 = vpop.f32.mrb[24].mxu0 }
 0xd48   : > { %1861 = vrot.lane.b32.xlu1 %v1805_v29, %s6358_s12  ;;  %v5565_v31 = vpop.f32.mrb[25].mxu0  ;;  %v2080_v29 = vld [vmem:[%s6820_s28 + $0x200] sm:$0xff] }
 0xd49   : > { %v1808_v10 = vpop.f32.mrb[26].mxu0  ;;  %v2088_v31 = vld [vmem:[%s6820_s28 + $0x240] sm:$0xff] }
 0xd4a   : > { %v5566_v32 = vpop.f32.mrb[27].mxu0  ;;  %v2081_v10 = vld [vmem:[%s6820_s28 + $0x208] sm:$0xff]  ;;  %v5028_v14 = vcombine.high %v2080_v29, %v2088_v31  ;;  %v5027_v34 = vcombine.low %v2080_v29, %v2088_v31  ;;  %v2050_v31 = vld [vmem:[%s6820_s28 + $0x110] sm:$0xff] }
 0xd4b   : > { %v2089_v32 = vld [vmem:[%s6820_s28 + $0x248] sm:$0xff] }
 0xd4c   : > { %v5029_v35 = vcombine.low %v2081_v10, %v2089_v32  ;;  %v5030_v36 = vcombine.high %v2081_v10, %v2089_v32  ;;  %v2051_v10 = vld [vmem:[%s6820_s28 + $0x118] sm:$0xff]  ;;  %v4983_v32 = vcombine.low %v2034_v22, %v2042_v23 }
 0xd7c   : > { %v1853_v37 = vpop.f32.mrb[40].mxu1 }
 0xd7d   : > { %1863 = vrot.lane.b32.xlu0 %v1853_v37, %s6358_s12  ;;  %v5571_v38 = vpop.f32.mrb[41].mxu1  ;;  %v2096_v37 = vld [vmem:[%s6820_s28 + $0x280] sm:$0xff] }
 0xd7e   : > { %v1856_v39 = vpop.f32.mrb[42].mxu1  ;;  %v2104_v38 = vld [vmem:[%s6820_s28 + $0x2c0] sm:$0xff] }
 0xd7f   : > { %v5572_v40 = vpop.f32.mrb[43].mxu1  ;;  %v2097_v39 = vld [vmem:[%s6820_s28 + $0x288] sm:$0xff] }
 0xd80   : > { %v5044_v40 = vcombine.high %v2096_v37, %v2104_v38 }
 0xdba   : > { %v1862_v41 = vpop.permute.xlu1 %1861 }
 0xdbb   : > { %1868 = vst.msk [vmem:[#allocation3] sm:$0xff] %vm1867_vm6, %v1862_v41  ;;  %v2105_v41 = vld [vmem:[%s6820_s28 + $0x2c8] sm:$0xff] }
 0xdc2   : > { %v1870_v43 = vld [vmem:[#allocation3] sm:$0xff] }
 0xdef   : > { %v1864_v42 = vpop.permute.xlu0 %1863 }
 0xdf0   : > { %1869 = vst.msk [vmem:[#allocation3 + $0x8] sm:$0xff] %vm1867_vm6, %v1864_v42  ;;  %v5043_v42 = vcombine.low %v2096_v37, %v2104_v38  ;;  %v2066_v37 = vld [vmem:[%s6820_s28 + $0x190] sm:$0xff] }
 0xdf1   : > { %v2074_v38 = vld [vmem:[%s6820_s28 + $0x1d0] sm:$0xff] }
 0xdf7   : > { %v1871_v44 = vld [vmem:[#allocation3 + $0x8] sm:$0xff] }
 0xdf8   : > { %v1872_v45 = vpack.c.bf16 %v1871_v44, %v1870_v43  ;;  %v5045_v43 = vcombine.low %v2097_v39, %v2105_v41  ;;  %v5046_v44 = vcombine.high %v2097_v39, %v2105_v41  ;;  %v2067_v39 = vld [vmem:[%s6820_s28 + $0x198] sm:$0xff] }
 0xdfa   : > { %5590 = vmatmul.mubr.bf16.vlgmr.msra.gmra.mrb[28].mxu0 %v1872_v45  ;;  %v2112_v45 = vld [vmem:[%s6820_s28 + $0x300] sm:$0xff] }
 0xdfb   : > { %2943 = vmatprep.mubr.bf16.mxu0 %v6355_v30  ;;  %2912 = vmatpush1.bf16.msra.mxu0 %v4965_v0  ;;  %v5078_v0 = vcombine.high %v2129_v56, %v2137_v61 }
 0xdfc   : > { %2913 = vmatprep.subr.bf16.mxu0 %v4982_v5 }
 0xdff   : > { %2914 = vmatpush1.bf16.msra.mxu0 %v4981_v6 }
 0xe00   : > { %2915 = vmatprep.subr.bf16.mxu0 %v4998_v11  ;;  %v4962_v11 = vld [vmem:[%s6826_s10 + $0x1] ss:$0 sm:$0xff] }
 0xe03   : > { %2916 = vmatpush1.bf16.msra.mxu0 %v4997_v4 }
 0xe04   : > { %2917 = vmatprep.subr.bf16.mxu0 %v5014_v28  ;;  %v4984_v28 = vcombine.high %v2034_v22, %v2042_v23 }
 0xe07   : > { %2918 = vmatpush1.bf16.msra.mxu0 %v5013_v27 }
 0xe08   : > { %2919 = vmatprep.subr.bf16.mxu0 %v5030_v36 }
 0xe0b   : > { %2920 = vmatpush1.bf16.msra.mxu0 %v5029_v35 }
 0xe0c   : > { %2921 = vmatprep.subr.bf16.mxu0 %v5046_v44 }
 0xe0f   : > { %2922 = vmatpush1.bf16.msra.mxu0 %v5045_v43  ;;  %v5016_v43 = vcombine.high %v2066_v37, %v2074_v38 }
 0xecd   : > { %v1971_v33 = vpop.f32.mrb[28].mxu0 }
 0xece   : > { %v1972_v47 = vadd.f32 %v1971_v33, %v6867_v58  ;;  %v5591_v48 = vpop.f32.mrb[29].mxu0  ;;  %v4980_v58 = vcombine.high %v2032_v62, %v2040_v63  ;;  %v2120_v33 = vld [vmem:[%s6820_s28 + $0x340] sm:$0xff] }
 0xecf   : > { %v1974_v49 = vpop.f32.mrb[30].mxu0  ;;  %v5060_v48 = vcombine.high %v2112_v45, %v2120_v33 }
 0xed0   : > { %v1975_v51 = vadd.f32 %v1974_v49, %v6869_v59  ;;  %1980 = vadd.xlane.f32.xlu1 %v1972_v47  ;;  %v5592_v52 = vpop.f32.mrb[31].mxu0  ;;  %v4979_v59 = vcombine.low %v2032_v62, %v2040_v63  ;;  %2870 = vmatprep.subr.bf16.mxu1 %v4980_v58  ;;  %v2121_v49 = vld [vmem:[%s6820_s28 + $0x348] sm:$0xff]  ;;  %v5075_v62 = vcombine.low %v2128_v54, %v2136_v55  ;;  %v2026_v58 = vld [vmem:[%s6820_s28 + $0x50] sm:$0xff] }
 0xed1   : > { %v5077_v63 = vcombine.low %v2129_v56, %v2137_v61  ;;  %v4967_v3 = vcombine.low %v2018_v1, %v2026_v58  ;;  %v4968_v5 = vcombine.high %v2018_v1, %v2026_v58  ;;  %v2098_v54 = vld [vmem:[%s6820_s28 + $0x290] sm:$0xff]  ;;  %v2099_v56 = vld [vmem:[%s6820_s28 + $0x298] sm:$0xff] }
 0xed2   : > { %1982 = vadd.xlane.f32.xlu0 %v1975_v51  ;;  %2871 = vmatpush1.bf16.msra.mxu1 %v4979_v59  ;;  %v2027_v59 = vld [vmem:[%s6820_s28 + $0x58] sm:$0xff]  ;;  %v2106_v55 = vld [vmem:[%s6820_s28 + $0x2d0] sm:$0xff] }
 0xed3   : > { %2872 = vmatprep.subr.bf16.mxu1 %v4996_v50  ;;  %v4969_v6 = vcombine.low %v2019_v2, %v2027_v59  ;;  %v2114_v1 = vld [vmem:[%s6820_s28 + $0x310] sm:$0xff] }
 0xed4   : > { %v2122_v58 = vld [vmem:[%s6820_s28 + $0x350] sm:$0xff] }
 0xed6   : > { %2873 = vmatpush1.bf16.msra.mxu1 %v4995_v20 }
 0xed7   : > { %2874 = vmatprep.subr.bf16.mxu1 %v5012_v24  ;;  %v2035_v24 = vld [vmem:[%s6820_s28 + $0x98] sm:$0xff] }
 0xed8   : > { %v4986_v29 = vcombine.high %v2035_v24, %v2043_v25 }
 0xeda   : > { %2875 = vmatpush1.bf16.msra.mxu1 %v5011_v26 }
 0xedb   : > { %2876 = vmatprep.subr.bf16.mxu1 %v5028_v14  ;;  %v2059_v14 = vld [vmem:[%s6820_s28 + $0x158] sm:$0xff] }
 0xedc   : > { %v5002_v36 = vcombine.high %v2051_v10, %v2059_v14 }
 0xede   : > { %2877 = vmatpush1.bf16.msra.mxu1 %v5027_v34  ;;  %v4985_v34 = vcombine.low %v2035_v24, %v2043_v25  ;;  %v2036_v24 = vld [vmem:[%s6820_s28 + $0xa0] sm:$0xff] }
 0xedf   : > { %2878 = vmatprep.subr.bf16.mxu1 %v5044_v40  ;;  %v2075_v40 = vld [vmem:[%s6820_s28 + $0x1d8] sm:$0xff]  ;;  %v2044_v25 = vld [vmem:[%s6820_s28 + $0xe0] sm:$0xff] }
 0xee0   : > { %v5018_v44 = vcombine.high %v2067_v39, %v2075_v40 }
 0xee2   : > { %2879 = vmatpush1.bf16.msra.mxu1 %v5043_v42  ;;  %v5001_v42 = vcombine.low %v2051_v10, %v2059_v14  ;;  %v4988_v10 = vcombine.high %v2036_v24, %v2044_v25 }
 0xee3   : > { %2880 = vmatprep.subr.bf16.mxu1 %v5060_v48  ;;  %v2091_v48 = vld [vmem:[%s6820_s28 + $0x258] sm:$0xff] }
 0xf5d   : > { %v1981_v7 = vpop.xlane.xlu1 %1980 }
 0xf5e   : > { %v1985_v8 = vmul.f32 0.0078125, %v1981_v7  ;;  %v4970_v7 = vcombine.high %v2019_v2, %v2027_v59  ;;  %v2115_v2 = vld [vmem:[%s6820_s28 + $0x318] sm:$0xff] }
 0xf5f   : > { %v1983_v9 = vpop.xlane.xlu0 %1982 }
 0xf60   : > { %v7073_v12 = vsub.f32 %v1972_v47, %v1985_v8  ;;  %v1986_v13 = vmul.f32 0.0078125, %v1983_v9  ;;  %v2113_v47 = vld [vmem:[%s6820_s28 + $0x308] sm:$0xff] }
 0xf61   : > { %v5061_v52 = vcombine.low %v2113_v47, %v2121_v49  ;;  %v5062_v53 = vcombine.high %v2113_v47, %v2121_v49  ;;  %v2083_v47 = vld [vmem:[%s6820_s28 + $0x218] sm:$0xff]  ;;  %v5015_v49 = vcombine.low %v2066_v37, %v2074_v38  ;;  %v4987_v37 = vcombine.low %v2036_v24, %v2044_v25 }
 0xf62   : > { %v7075_v60 = vsub.f32 %v1975_v51, %v1986_v13  ;;  %v1989_v15 = vmul.f32 %v7073_v12, %v7073_v12  ;;  %v5059_v51 = vcombine.low %v2112_v45, %v2120_v33  ;;  %v2082_v45 = vld [vmem:[%s6820_s28 + $0x210] sm:$0xff] }
 0xf63   : > { %2923 = vmatprep.subr.bf16.mxu0 %v5062_v53  ;;  %v2090_v33 = vld [vmem:[%s6820_s28 + $0x250] sm:$0xff]  ;;  %v5034_v53 = vcombine.high %v2083_v47, %v2091_v48 }
 0xf64   : > { %1991 = vadd.xlane.f32.xlu0 %v1989_v15  ;;  %v1990_v16 = vmul.f32 %v7075_v60, %v7075_v60  ;;  %2881 = vmatpush1.bf16.msra.mxu1 %v5059_v51  ;;  %v5017_v51 = vcombine.low %v2067_v39, %v2075_v40  ;;  %v5031_v61 = vcombine.low %v2082_v45, %v2090_v33 }
 0xf65   : > { %2924 = vmatpush1.bf16.msra.mxu0 %v5061_v52  ;;  %2882 = vmatprep.subr.bf16.mxu1 %v5076_v57  ;;  %v5032_v52 = vcombine.high %v2082_v45, %v2090_v33  ;;  %v2107_v57 = vld [vmem:[%s6820_s28 + $0x2d8] sm:$0xff] }
 0xf66   : > { %1993 = vadd.xlane.f32.xlu1 %v1990_v16  ;;  %2925 = vmatprep.subr.bf16.mxu0 %v5078_v0  ;;  %v5050_v0 = vcombine.high %v2099_v56, %v2107_v57  ;;  %v5049_v59 = vcombine.low %v2099_v56, %v2107_v57 }
 0xf68   : > { %2883 = vmatpush1.bf16.msra.mxu1 %v5075_v62  ;;  %v5033_v62 = vcombine.low %v2083_v47, %v2091_v48 }
 0xf69   : > { %2926 = vmatpush1.bf16.msra.mxu0 %v5077_v63  ;;  %2954 = vmatprep.subr.bf16.mxu1 %v4968_v5  ;;  %v5048_v63 = vcombine.high %v2098_v54, %v2106_v55  ;;  %v5047_v5 = vcombine.low %v2098_v54, %v2106_v55 }
 0xf6a   : > { %2997 = vmatprep.subr.bf16.mxu0 %v4970_v7 }
 0xff1   : > { %v1992_v8 = vpop.xlane.xlu0 %1991 }
 0xff2   : > { %v1995_v9 = vmul.f32 0.0078125, %v1992_v8  ;;  %v2130_v8 = vld [vmem:[%s6820_s28 + $0x390] sm:$0xff] }
 0xff3   : > { %v1994_v13 = vpop.xlane.xlu1 %1993 }
 0xff4   : > { %v1997_v15 = vadd.f32 1e-06, %v1995_v9  ;;  %v1996_v16 = vmul.f32 0.0078125, %v1994_v13  ;;  %v2138_v9 = vld [vmem:[%s6820_s28 + $0x3d0] sm:$0xff]  ;;  %v2131_v13 = vld [vmem:[%s6820_s28 + $0x398] sm:$0xff] }
 0xff6   : > { %5944 = vrsqrt.f32 %v1997_v15  ;;  %v1998_v17 = vadd.f32 1e-06, %v1996_v16  ;;  %v2139_v15 = vld [vmem:[%s6820_s28 + $0x3d8] sm:$0xff]  ;;  %v5063_v16 = vcombine.low %v2114_v1, %v2122_v58 }
 0xff8   : > { %5946 = vrsqrt.f32 %v1998_v17 }
0x1000   : > { %v5945_v46 = vpop.eup %5944 }
0x1001   : > { %v2001_v50 = vmul.f32 %v5945_v46, %v7073_v12  ;;  %v5080_v46 = vcombine.high %v2130_v8, %v2138_v9 }
0x1002   : > { %v5947_v19 = vpop.eup %5946 }
0x1003   : > { %v2007_v20 = vmul.f32 %v4961_v18, %v2001_v50  ;;  %v2002_v4 = vmul.f32 %v5947_v19, %v7075_v60  ;;  %v2058_v60 = vld [vmem:[%s6820_s28 + $0x150] sm:$0xff]  ;;  %v2020_v50 = vld [vmem:[%s6820_s28 + $0x20] sm:$0xff] }
0x1004   : > { %v5000_v35 = vcombine.high %v2050_v31, %v2058_v60  ;;  %v4999_v41 = vcombine.low %v2050_v31, %v2058_v60  ;;  %v2028_v19 = vld [vmem:[%s6820_s28 + $0x60] sm:$0xff] }
0x1005   : > { %v2008_v21 = vmul.f32 %v4961_v18, %v2002_v4  ;;  %v7117_v26 = vadd.f32 %v4962_v11, %v2007_v20  ;;  %v5082_v18 = vcombine.high %v2131_v13, %v2139_v15  ;;  %v2021_v20 = vld [vmem:[%s6820_s28 + $0x28] sm:$0xff]  ;;  %v4972_v22 = vcombine.high %v2020_v50, %v2028_v19 }
0x1006   : > { %v2029_v4 = vld [vmem:[%s6820_s28 + $0x68] sm:$0xff]  ;;  %v4971_v31 = vcombine.low %v2020_v50, %v2028_v19 }
0x1007   : > { %v7119_v27 = vadd.f32 %v4962_v11, %v2008_v21  ;;  %v5079_v11 = vcombine.low %v2130_v8, %v2138_v9  ;;  %v5081_v21 = vcombine.low %v2131_v13, %v2139_v15  ;;  %v4974_v23 = vcombine.high %v2021_v20, %v2029_v4 }
0x1008   : > { %v4973_v60 = vcombine.low %v2021_v20, %v2029_v4 }
0x1009   : > { %v7123_v12 = vpack.c.bf16 %v7119_v27, %v7117_v26 }
0x100b   : > { %2901 = vmatmul.mubr.bf16.vlgmr.msra.gmra.mrb[44].mxu1 %v7123_v12  ;;  %2944 = vmatmul.mubr.bf16.vlgmr.msra.gmra.mrb[32].mxu0 %v7123_v12 }
0x100c   : > { %2955 = vmatpush1.bf16.msra.mxu1 %v4967_v3  ;;  %2998 = vmatpush1.bf16.msra.mxu0 %v4969_v6  ;;  %v2123_v3 = vld [vmem:[%s6820_s28 + $0x358] sm:$0xff]  ;;  %v5064_v6 = vcombine.high %v2114_v1, %v2122_v58 }
0x100d   : > { %2956 = vmatprep.subr.bf16.mxu1 %v4984_v28  ;;  %2999 = vmatprep.subr.bf16.mxu0 %v4986_v29  ;;  %v5066_v7 = vcombine.high %v2115_v2, %v2123_v3  ;;  %v5065_v17 = vcombine.low %v2115_v2, %v2123_v3  ;;  %v2037_v28 = vld [vmem:[%s6820_s28 + $0xa8] sm:$0xff] }
0x100e   : > { %2986 = vmatprep.mubr.bf16.mxu1 %v6355_v30  ;;  %3029 = vmatprep.mubr.bf16.mxu0 %v6355_v30  ;;  %v2045_v29 = vld [vmem:[%s6820_s28 + $0xe8] sm:$0xff] }
0x100f   : > { %v4990_v14 = vcombine.high %v2037_v28, %v2045_v29  ;;  %v4989_v38 = vcombine.low %v2037_v28, %v2045_v29 }
0x1010   : > { %2957 = vmatpush1.bf16.msra.mxu1 %v4983_v32  ;;  %3000 = vmatpush1.bf16.msra.mxu0 %v4985_v34  ;;  %v2052_v32 = vld [vmem:[%s6820_s28 + $0x120] sm:$0xff] }
0x1011   : > { %2958 = vmatprep.subr.bf16.mxu1 %v5000_v35  ;;  %3001 = vmatprep.subr.bf16.mxu0 %v5002_v36  ;;  %v2060_v34 = vld [vmem:[%s6820_s28 + $0x160] sm:$0xff]  ;;  %v2053_v35 = vld [vmem:[%s6820_s28 + $0x128] sm:$0xff] }
0x1012   : > { %v2061_v36 = vld [vmem:[%s6820_s28 + $0x168] sm:$0xff]  ;;  %v5004_v39 = vcombine.high %v2052_v32, %v2060_v34  ;;  %v5003_v45 = vcombine.low %v2052_v32, %v2060_v34 }
0x1013   : > { %v5006_v40 = vcombine.high %v2053_v35, %v2061_v36  ;;  %v5005_v33 = vcombine.low %v2053_v35, %v2061_v36 }
0x1014   : > { %2959 = vmatpush1.bf16.msra.mxu1 %v4999_v41  ;;  %3002 = vmatpush1.bf16.msra.mxu0 %v5001_v42  ;;  %v2068_v41 = vld [vmem:[%s6820_s28 + $0x1a0] sm:$0xff] }
0x1015   : > { %2960 = vmatprep.subr.bf16.mxu1 %v5016_v43  ;;  %3003 = vmatprep.subr.bf16.mxu0 %v5018_v44  ;;  %v2076_v42 = vld [vmem:[%s6820_s28 + $0x1e0] sm:$0xff]  ;;  %v2069_v43 = vld [vmem:[%s6820_s28 + $0x1a8] sm:$0xff] }
0x1016   : > { %v2077_v44 = vld [vmem:[%s6820_s28 + $0x1e8] sm:$0xff]  ;;  %v5020_v47 = vcombine.high %v2068_v41, %v2076_v42  ;;  %v5019_v54 = vcombine.low %v2068_v41, %v2076_v42 }
0x1017   : > { %v5022_v48 = vcombine.high %v2069_v43, %v2077_v44  ;;  %v5021_v55 = vcombine.low %v2069_v43, %v2077_v44 }
0x1018   : > { %2961 = vmatpush1.bf16.msra.mxu1 %v5015_v49  ;;  %3004 = vmatpush1.bf16.msra.mxu0 %v5017_v51  ;;  %v2084_v49 = vld [vmem:[%s6820_s28 + $0x220] sm:$0xff] }
0x1019   : > { %2962 = vmatprep.subr.bf16.mxu1 %v5032_v52  ;;  %3005 = vmatprep.subr.bf16.mxu0 %v5034_v53  ;;  %v2092_v51 = vld [vmem:[%s6820_s28 + $0x260] sm:$0xff]  ;;  %v2085_v52 = vld [vmem:[%s6820_s28 + $0x228] sm:$0xff] }
0x101a   : > { %v2093_v53 = vld [vmem:[%s6820_s28 + $0x268] sm:$0xff]  ;;  %v5036_v56 = vcombine.high %v2084_v49, %v2092_v51  ;;  %v5035_v1 = vcombine.low %v2084_v49, %v2092_v51 }
0x101b   : > { %v5038_v57 = vcombine.high %v2085_v52, %v2093_v53  ;;  %v5037_v58 = vcombine.low %v2085_v52, %v2093_v53 }
0x101c   : > { %2963 = vmatpush1.bf16.msra.mxu1 %v5031_v61  ;;  %3006 = vmatpush1.bf16.msra.mxu0 %v5033_v62  ;;  %v2100_v61 = vld [vmem:[%s6820_s28 + $0x2a0] sm:$0xff] }
0x101d   : > { %2964 = vmatprep.subr.bf16.mxu1 %v5048_v63  ;;  %3007 = vmatprep.subr.bf16.mxu0 %v5050_v0  ;;  %v2108_v62 = vld [vmem:[%s6820_s28 + $0x2e0] sm:$0xff]  ;;  %v2101_v63 = vld [vmem:[%s6820_s28 + $0x2a8] sm:$0xff] }
0x101e   : > { %v2109_v0 = vld [vmem:[%s6820_s28 + $0x2e8] sm:$0xff]  ;;  %v5052_v2 = vcombine.high %v2100_v61, %v2108_v62  ;;  %v5051_v8 = vcombine.low %v2100_v61, %v2108_v62 }
0x101f   : > { %v5054_v3 = vcombine.high %v2101_v63, %v2109_v0  ;;  %v5053_v9 = vcombine.low %v2101_v63, %v2109_v0  ;;  %v2102_v0 = vld [vmem:[%s6820_s28 + $0x2b0] sm:$0xff] }
0x1020   : > { %2965 = vmatpush1.bf16.msra.mxu1 %v5047_v5  ;;  %3008 = vmatpush1.bf16.msra.mxu0 %v5049_v59  ;;  %v2116_v5 = vld [vmem:[%s6820_s28 + $0x320] sm:$0xff] }
0x1021   : > { %2966 = vmatprep.subr.bf16.mxu1 %v5064_v6  ;;  %3009 = vmatprep.subr.bf16.mxu0 %v5066_v7  ;;  %v2124_v59 = vld [vmem:[%s6820_s28 + $0x360] sm:$0xff]  ;;  %v2117_v6 = vld [vmem:[%s6820_s28 + $0x328] sm:$0xff] }
0x1022   : > { %v2125_v7 = vld [vmem:[%s6820_s28 + $0x368] sm:$0xff]  ;;  %v5068_v13 = vcombine.high %v2116_v5, %v2124_v59  ;;  %v5067_v50 = vcombine.low %v2116_v5, %v2124_v59 }
0x1023   : > { %v5070_v15 = vcombine.high %v2117_v6, %v2125_v7  ;;  %v5069_v19 = vcombine.low %v2117_v6, %v2125_v7  ;;  %v2118_v7 = vld [vmem:[%s6820_s28 + $0x330] sm:$0xff] }
0x1024   : > { %2967 = vmatpush1.bf16.msra.mxu1 %v5063_v16  ;;  %3010 = vmatpush1.bf16.msra.mxu0 %v5065_v17  ;;  %v2132_v16 = vld [vmem:[%s6820_s28 + $0x3a0] sm:$0xff] }
0x1025   : > { %2968 = vmatprep.subr.bf16.mxu1 %v5080_v46  ;;  %3011 = vmatprep.subr.bf16.mxu0 %v5082_v18  ;;  %v2140_v17 = vld [vmem:[%s6820_s28 + $0x3e0] sm:$0xff]  ;;  %v2133_v46 = vld [vmem:[%s6820_s28 + $0x3a8] sm:$0xff] }
0x1026   : > { %v2141_v18 = vld [vmem:[%s6820_s28 + $0x3e8] sm:$0xff]  ;;  %v5084_v20 = vcombine.high %v2132_v16, %v2140_v17  ;;  %v5083_v24 = vcombine.low %v2132_v16, %v2140_v17 }
0x1027   : > { %v5086_v4 = vcombine.high %v2133_v46, %v2141_v18  ;;  %v5085_v25 = vcombine.low %v2133_v46, %v2141_v18  ;;  %v2134_v18 = vld [vmem:[%s6820_s28 + $0x3b0] sm:$0xff] }
0x1028   : > { %2969 = vmatpush1.bf16.msra.mxu1 %v5079_v11  ;;  %3012 = vmatpush1.bf16.msra.mxu0 %v5081_v21  ;;  %v2022_v11 = vld [vmem:[%s6820_s28 + $0x30] sm:$0xff] }
0x1029   : > { %3040 = vmatprep.subr.bf16.mxu1 %v4972_v22  ;;  %3083 = vmatprep.subr.bf16.mxu0 %v4974_v23  ;;  %v2030_v21 = vld [vmem:[%s6820_s28 + $0x70] sm:$0xff]  ;;  %v2023_v22 = vld [vmem:[%s6820_s28 + $0x38] sm:$0xff] }
0x102a   : > { %v2031_v23 = vld [vmem:[%s6820_s28 + $0x78] sm:$0xff]  ;;  %v4976_v28 = vcombine.high %v2022_v11, %v2030_v21  ;;  %v4975_v32 = vcombine.low %v2022_v11, %v2030_v21 }
0x102b   : > { %2987 = vmatmul.mubr.bf16.vlgmr.msra.gmra.mrb[48].mxu1 %v7123_v12  ;;  %3030 = vmatmul.mubr.bf16.vlgmr.msra.gmra.mrb[36].mxu0 %v7123_v12  ;;  %v4978_v29 = vcombine.high %v2023_v22, %v2031_v23  ;;  %v4977_v34 = vcombine.low %v2023_v22, %v2031_v23 }
0x102c   : > { %3041 = vmatpush1.bf16.msra.mxu1 %v4971_v31  ;;  %3084 = vmatpush1.bf16.msra.mxu0 %v4973_v60  ;;  %v2038_v31 = vld [vmem:[%s6820_s28 + $0xb0] sm:$0xff] }
0x102d   : > { %3042 = vmatprep.subr.bf16.mxu1 %v4988_v10  ;;  %3085 = vmatprep.subr.bf16.mxu0 %v4990_v14  ;;  %v2046_v60 = vld [vmem:[%s6820_s28 + $0xf0] sm:$0xff]  ;;  %v2039_v10 = vld [vmem:[%s6820_s28 + $0xb8] sm:$0xff] }
0x102e   : > { %3072 = vmatprep.mubr.bf16.mxu1 %v6355_v30  ;;  %3115 = vmatprep.mubr.bf16.mxu0 %v6355_v30  ;;  %v2047_v14 = vld [vmem:[%s6820_s28 + $0xf8] sm:$0xff]  ;;  %v4992_v35 = vcombine.high %v2038_v31, %v2046_v60  ;;  %v4991_v41 = vcombine.low %v2038_v31, %v2046_v60  ;;  %v5787_v31 = vld [vmem:[%s6824_s11 + $0x80] sm:$0xff]   ;;  %v5788_v60 = vld [vmem:[%s6824_s11 + $0x48] sm:$0xff]  }
0x102f   : > { %v4994_v36 = vcombine.high %v2039_v10, %v2047_v14  ;;  %v4993_v42 = vcombine.low %v2039_v10, %v2047_v14  ;;  %v5789_v10 = vld [vmem:[%s6824_s11 + $0xc8] sm:$0xff]  }
0x1030   : > { %3043 = vmatpush1.bf16.msra.mxu1 %v4987_v37  ;;  %3086 = vmatpush1.bf16.msra.mxu0 %v4989_v38  ;;  %v2054_v37 = vld [vmem:[%s6820_s28 + $0x130] sm:$0xff]  ;;  %v5790_v14 = vld [vmem:[%s6824_s11 + $0x8] sm:$0xff]  }
0x1031   : > { %3044 = vmatprep.subr.bf16.mxu1 %v5004_v39  ;;  %3087 = vmatprep.subr.bf16.mxu0 %v5006_v40  ;;  %v2062_v38 = vld [vmem:[%s6820_s28 + $0x170] sm:$0xff]  ;;  %v2055_v39 = vld [vmem:[%s6820_s28 + $0x138] sm:$0xff] }
0x1032   : > { %v2063_v40 = vld [vmem:[%s6820_s28 + $0x178] sm:$0xff]  ;;  %v5008_v43 = vcombine.high %v2054_v37, %v2062_v38  ;;  %v5007_v49 = vcombine.low %v2054_v37, %v2062_v38  ;;  %v5795_v37 = vld [vmem:[%s6824_s11 + $0x90] sm:$0xff]  }
0x1033   : > { %v5010_v44 = vcombine.high %v2055_v39, %v2063_v40  ;;  %v5009_v51 = vcombine.low %v2055_v39, %v2063_v40  ;;  %v5797_v38 = vld [vmem:[%s6824_s11 + $0xd8] sm:$0xff]  }
0x1034   : > { %3045 = vmatpush1.bf16.msra.mxu1 %v5003_v45  ;;  %3088 = vmatpush1.bf16.msra.mxu0 %v5005_v33  ;;  %v2070_v45 = vld [vmem:[%s6820_s28 + $0x1b0] sm:$0xff]  ;;  %v5798_v39 = vld [vmem:[%s6824_s11 + $0x18] sm:$0xff]  }
0x1035   : > { %3046 = vmatprep.subr.bf16.mxu1 %v5020_v47  ;;  %3089 = vmatprep.subr.bf16.mxu0 %v5022_v48  ;;  %v2078_v33 = vld [vmem:[%s6820_s28 + $0x1f0] sm:$0xff]  ;;  %v2071_v47 = vld [vmem:[%s6820_s28 + $0x1b8] sm:$0xff] }
0x1036   : > { %v2079_v48 = vld [vmem:[%s6820_s28 + $0x1f8] sm:$0xff]  ;;  %v5024_v52 = vcombine.high %v2070_v45, %v2078_v33  ;;  %v5023_v61 = vcombine.low %v2070_v45, %v2078_v33  ;;  %v5804_v45 = vld [vmem:[%s6824_s11 + $0x68] sm:$0xff]  }
0x1037   : > { %v5026_v53 = vcombine.high %v2071_v47, %v2079_v48  ;;  %v5799_v40 = vld [vmem:[%s6824_s11 + $0x98] sm:$0xff]   ;;  %v5805_v33 = vld [vmem:[%s6824_s11 + $0xe8] sm:$0xff]  }
0x1038   : > { %3047 = vmatpush1.bf16.msra.mxu1 %v5019_v54  ;;  %3090 = vmatpush1.bf16.msra.mxu0 %v5021_v55  ;;  %v2086_v54 = vld [vmem:[%s6820_s28 + $0x230] sm:$0xff] }
0x1039   : > { %3048 = vmatprep.subr.bf16.mxu1 %v5036_v56  ;;  %3091 = vmatprep.subr.bf16.mxu0 %v5038_v57  ;;  %v2094_v55 = vld [vmem:[%s6820_s28 + $0x270] sm:$0xff]  ;;  %v2087_v56 = vld [vmem:[%s6820_s28 + $0x238] sm:$0xff] }
0x103a   : > { %v2095_v57 = vld [vmem:[%s6820_s28 + $0x278] sm:$0xff]  ;;  %v5040_v62 = vcombine.high %v2086_v54, %v2094_v55 }
0x103b   : > { %v5042_v63 = vcombine.high %v2087_v56, %v2095_v57  ;;  %v5041_v5 = vcombine.low %v2087_v56, %v2095_v57  ;;  %v5814_v56 = vld [vmem:[%s6824_s11 + $0x38] sm:$0xff]  }
0x103c   : > { %3049 = vmatpush1.bf16.msra.mxu1 %v5035_v1  ;;  %3092 = vmatpush1.bf16.msra.mxu0 %v5037_v58  ;;  %v2110_v1 = vld [vmem:[%s6820_s28 + $0x2f0] sm:$0xff]  ;;  %v2103_v58 = vld [vmem:[%s6820_s28 + $0x2b8] sm:$0xff] }
0x103d   : > { %3050 = vmatprep.subr.bf16.mxu1 %v5052_v2  ;;  %3093 = vmatprep.subr.bf16.mxu0 %v5054_v3  ;;  %v2111_v2 = vld [vmem:[%s6820_s28 + $0x2f8] sm:$0xff]  ;;  %v5039_v3 = vcombine.low %v2086_v54, %v2094_v55  ;;  %v5056_v59 = vcombine.high %v2102_v0, %v2110_v1 }
0x103e   : > { %v5058_v6 = vcombine.high %v2103_v58, %v2111_v2  ;;  %v5057_v16 = vcombine.low %v2103_v58, %v2111_v2  ;;  %v5812_v54 = vld [vmem:[%s6824_s11 + $0x78] sm:$0xff]   ;;  %v7266_v58 = vld [vmem:[%s6822_s29] sm:$0xff] }
0x103f   : > { %v5813_v55 = vld [vmem:[%s6824_s11 + $0xf8] sm:$0xff]  }
0x1040   : > { %3051 = vmatpush1.bf16.msra.mxu1 %v5051_v8  ;;  %3094 = vmatpush1.bf16.msra.mxu0 %v5053_v9  ;;  %v2126_v8 = vld [vmem:[%s6820_s28 + $0x370] sm:$0xff]  ;;  %v2119_v9 = vld [vmem:[%s6820_s28 + $0x338] sm:$0xff] }
0x1041   : > { %3052 = vmatprep.subr.bf16.mxu1 %v5068_v13  ;;  %3095 = vmatprep.subr.bf16.mxu0 %v5070_v15  ;;  %v2127_v13 = vld [vmem:[%s6820_s28 + $0x378] sm:$0xff]  ;;  %v5055_v15 = vcombine.low %v2102_v0, %v2110_v1  ;;  %v5072_v17 = vcombine.high %v2118_v7, %v2126_v8 }
0x1042   : > { %v5074_v46 = vcombine.high %v2119_v9, %v2127_v13  ;;  %v5073_v11 = vcombine.low %v2119_v9, %v2127_v13  ;;  %v5815_v57 = vld [vmem:[%s6824_s11 + $0xb8] sm:$0xff]  }
0x1044   : > { %3053 = vmatpush1.bf16.msra.mxu1 %v5067_v50  ;;  %3096 = vmatpush1.bf16.msra.mxu0 %v5069_v19  ;;  %v2142_v50 = vld [vmem:[%s6820_s28 + $0x3f0] sm:$0xff]  ;;  %v2135_v19 = vld [vmem:[%s6820_s28 + $0x3b8] sm:$0xff] }
0x1045   : > { %3054 = vmatprep.subr.bf16.mxu1 %v5084_v20  ;;  %3097 = vmatprep.subr.bf16.mxu0 %v5086_v4  ;;  %v2143_v20 = vld [vmem:[%s6820_s28 + $0x3f8] sm:$0xff]  ;;  %v5071_v4 = vcombine.low %v2118_v7, %v2126_v8  ;;  %v5088_v21 = vcombine.high %v2134_v18, %v2142_v50  ;;  %v5087_v23 = vcombine.low %v2134_v18, %v2142_v50 }
0x1046   : > { %v5090_v22 = vcombine.high %v2135_v19, %v2143_v20 }
0x1048   : > { %3055 = vmatpush1.bf16.msra.mxu1 %v5083_v24  ;;  %3098 = vmatpush1.bf16.msra.mxu0 %v5085_v25  ;;  %v5089_v24 = vcombine.low %v2135_v19, %v2143_v20  ;;  %v5784_v25 = vld [vmem:[%s6824_s11 + $0x40] sm:$0xff]  }
0x1049   : > { %3126 = vmatprep.subr.bf16.mxu1 %v4976_v28  ;;  %3169 = vmatprep.subr.bf16.mxu0 %v4978_v29  ;;  %v5785_v28 = vld [vmem:[%s6824_s11 + $0xc0] sm:$0xff]  }
0x104a   : > { %v5786_v29 = vld [vmem:[%s6824_s11] sm:$0xff]  }
0x104b   : > { %3073 = vmatmul.mubr.bf16.vlgmr.msra.gmra.mrb[52].mxu1 %v7123_v12  ;;  %3116 = vmatmul.mubr.bf16.vlgmr.msra.gmra.mrb[40].mxu0 %v7123_v12 }
0x104c   : > { %3127 = vmatpush1.bf16.msra.mxu1 %v4975_v32  ;;  %3170 = vmatpush1.bf16.msra.mxu0 %v4977_v34  ;;  %v5791_v32 = vld [vmem:[%s6824_s11 + $0x88] sm:$0xff]   ;;  %v5792_v34 = vld [vmem:[%s6824_s11 + $0x50] sm:$0xff]  }
0x104d   : > { %3128 = vmatprep.subr.bf16.mxu1 %v4992_v35  ;;  %3171 = vmatprep.subr.bf16.mxu0 %v4994_v36  ;;  %v5793_v35 = vld [vmem:[%s6824_s11 + $0xd0] sm:$0xff]  }
0x104e   : > { %3158 = vmatprep.mubr.bf16.mxu1 %v6355_v30  ;;  %3201 = vmatprep.mubr.bf16.mxu0 %v6355_v30  ;;  %v5025_v30 = vcombine.low %v2071_v47, %v2079_v48  ;;  %v5794_v36 = vld [vmem:[%s6824_s11 + $0x10] sm:$0xff]   ;;  %v5806_v47 = vld [vmem:[%s6824_s11 + $0x28] sm:$0xff]  }
0x104f   : > { %v5807_v48 = vld [vmem:[%s6824_s11 + $0xa8] sm:$0xff]  }
0x1050   : > { %3129 = vmatpush1.bf16.msra.mxu1 %v4991_v41  ;;  %3172 = vmatpush1.bf16.msra.mxu0 %v4993_v42  ;;  %v5800_v41 = vld [vmem:[%s6824_s11 + $0x60] sm:$0xff]  }
0x1051   : > { %3130 = vmatprep.subr.bf16.mxu1 %v5008_v43  ;;  %3173 = vmatprep.subr.bf16.mxu0 %v5010_v44  ;;  %v5801_v42 = vld [vmem:[%s6824_s11 + $0xe0] sm:$0xff]  }
0x1052   : > { %v5802_v43 = vld [vmem:[%s6824_s11 + $0x20] sm:$0xff]  }
0x1053   : > { %v5803_v44 = vld [vmem:[%s6824_s11 + $0xa0] sm:$0xff]  }
0x1054   : > { %3131 = vmatpush1.bf16.msra.mxu1 %v5007_v49  ;;  %3174 = vmatpush1.bf16.msra.mxu0 %v5009_v51  ;;  %v5808_v49 = vld [vmem:[%s6824_s11 + $0x70] sm:$0xff]  }
0x1055   : > { %3132 = vmatprep.subr.bf16.mxu1 %v5024_v52  ;;  %3175 = vmatprep.subr.bf16.mxu0 %v5026_v53  ;;  %v5809_v51 = vld [vmem:[%s6824_s11 + $0xf0] sm:$0xff]  }
0x1056   : > { %v5810_v52 = vld [vmem:[%s6824_s11 + $0x30] sm:$0xff]  }
0x1057   : > { %v5811_v53 = vld [vmem:[%s6824_s11 + $0xb0] sm:$0xff]  }
0x1058   : > { %3133 = vmatpush1.bf16.msra.mxu1 %v5023_v61  ;;  %3176 = vmatpush1.bf16.msra.mxu0 %v5025_v30  ;;  %v5816_v61 = vld [vmem:[%s6824_s11 + $0x140] sm:$0xff]  }
0x1059   : > { %3134 = vmatprep.subr.bf16.mxu1 %v5040_v62  ;;  %3177 = vmatprep.subr.bf16.mxu0 %v5042_v63  ;;  %v5817_v30 = vld [vmem:[%s6824_s11 + $0x1c0] sm:$0xff]   ;;  %v2148_v62 = vlaneseq }
0x105b   : > { %v7261_v63 = vshrl.u32 %v2148_v62, 7 }
0x105c   : > { %3135 = vmatpush1.bf16.msra.mxu1 %v5039_v3  ;;  %3178 = vmatpush1.bf16.msra.mxu0 %v5041_v5 }
0x105d   : > { %3136 = vmatprep.subr.bf16.mxu1 %v5056_v59  ;;  %3179 = vmatprep.subr.bf16.mxu0 %v5058_v6  ;;  %v2150_v0 = vsub.s32 0, %v7261_v63  ;;  %v2158_v1 = vsub.s32 2, %v7261_v63  ;;  %v2154_v2 = vsub.s32 1, %v7261_v63  ;;  %v2162_v3 = vsub.s32 3, %v7261_v63 }
0x105e   : > { %v2178_v62 = vsub.s32 7, %v7261_v63 }
0x105f   : > { %v2151_v5 = vrot.slane %v7266_v58, %v2150_v0  ;;  %v2159_v59 = vrot.slane %v7266_v58, %v2158_v1  ;;  %v2155_v6 = vrot.slane %v7266_v58, %v2154_v2  ;;  %v2163_v7 = vrot.slane %v7266_v58, %v2162_v3 }
0x1060   : > { %3137 = vmatpush1.bf16.msra.mxu1 %v5055_v15  ;;  %3180 = vmatpush1.bf16.msra.mxu0 %v5057_v16 }
0x1061   : > { %3138 = vmatprep.subr.bf16.mxu1 %v5072_v17  ;;  %3181 = vmatprep.subr.bf16.mxu0 %v5074_v46 }
0x1064   : > { %3139 = vmatpush1.bf16.msra.mxu1 %v5071_v4  ;;  %3182 = vmatpush1.bf16.msra.mxu0 %v5073_v11 }
0x1065   : > { %3140 = vmatprep.subr.bf16.mxu1 %v5088_v21  ;;  %3183 = vmatprep.subr.bf16.mxu0 %v5090_v22 }
0x1068   : > { %3141 = vmatpush1.bf16.msra.mxu1 %v5087_v23  ;;  %3184 = vmatpush1.bf16.msra.mxu0 %v5089_v24 }
0x1069   : > { %5281 = vmatprep.subr.bf16.mxu1 %v5784_v25  ;;  %5303 = vmatprep.subr.bf16.mxu0 %v5785_v28 }
0x106b   : > { %3159 = vmatmul.mubr.bf16.vlgmr.msra.gmra.mrb[56].mxu1 %v7123_v12  ;;  %3202 = vmatmul.mubr.bf16.vlgmr.msra.gmra.mrb[44].mxu0 %v7123_v12  ;;  %v5796_v12 = vld [vmem:[%s6824_s11 + $0x58] sm:$0xff]  }
0x106c   : > { %5282 = vmatpush3.bf16.msra.mxu1 %v5786_v29  ;;  %5304 = vmatpush3.bf16.msra.mxu0 %v5787_v31 }
0x106d   : > { %5283 = vmatprep.subr.bf16.mxu1 %v5788_v60  ;;  %5305 = vmatprep.subr.bf16.mxu0 %v5789_v10 }
0x1070   : > { %5284 = vmatpush3.bf16.msra.mxu1 %v5790_v14  ;;  %5306 = vmatpush3.bf16.msra.mxu0 %v5791_v32 }
0x1071   : > { %5285 = vmatprep.subr.bf16.mxu1 %v5792_v34  ;;  %5307 = vmatprep.subr.bf16.mxu0 %v5793_v35 }
0x1074   : > { %5286 = vmatpush3.bf16.msra.mxu1 %v5794_v36  ;;  %5308 = vmatpush3.bf16.msra.mxu0 %v5795_v37  ;;  %v5818_v37 = vld [vmem:[%s6824_s11 + $0x100] sm:$0xff]  }
0x1075   : > { %5287 = vmatprep.subr.bf16.mxu1 %v5796_v12  ;;  %5309 = vmatprep.subr.bf16.mxu0 %v5797_v38  ;;  %v5819_v12 = vld [vmem:[%s6824_s11 + $0x180] sm:$0xff]   ;;  %v5820_v38 = vld [vmem:[%s6824_s11 + $0x148] sm:$0xff]  }
0x1078   : > { %5288 = vmatpush3.bf16.msra.mxu1 %v5798_v39  ;;  %5310 = vmatpush3.bf16.msra.mxu0 %v5799_v40  ;;  %v5821_v39 = vld [vmem:[%s6824_s11 + $0x1c8] sm:$0xff]  }
0x1079   : > { %5289 = vmatprep.subr.bf16.mxu1 %v5800_v41  ;;  %5311 = vmatprep.subr.bf16.mxu0 %v5801_v42  ;;  %v5822_v40 = vld [vmem:[%s6824_s11 + $0x108] sm:$0xff]   ;;  %v5824_v42 = vld [vmem:[%s6824_s11 + $0x150] sm:$0xff]  }
0x107a   : > { %v5823_v41 = vld [vmem:[%s6824_s11 + $0x188] sm:$0xff]  }
0x107c   : > { %5290 = vmatpush3.bf16.msra.mxu1 %v5802_v43  ;;  %5312 = vmatpush3.bf16.msra.mxu0 %v5803_v44  ;;  %v5825_v43 = vld [vmem:[%s6824_s11 + $0x1d0] sm:$0xff]  }
0x107d   : > { %5291 = vmatprep.subr.bf16.mxu1 %v5804_v45  ;;  %5313 = vmatprep.subr.bf16.mxu0 %v5805_v33  ;;  %v5826_v44 = vld [vmem:[%s6824_s11 + $0x110] sm:$0xff]   ;;  %v5828_v33 = vld [vmem:[%s6824_s11 + $0x158] sm:$0xff]  }
0x107e   : > { %v5827_v45 = vld [vmem:[%s6824_s11 + $0x190] sm:$0xff]  }
0x1080   : > { %5292 = vmatpush3.bf16.msra.mxu1 %v5806_v47  ;;  %5314 = vmatpush3.bf16.msra.mxu0 %v5807_v48  ;;  %v5829_v47 = vld [vmem:[%s6824_s11 + $0x1d8] sm:$0xff]  }
0x1081   : > { %5293 = vmatprep.subr.bf16.mxu1 %v5808_v49  ;;  %5315 = vmatprep.subr.bf16.mxu0 %v5809_v51  ;;  %v5830_v48 = vld [vmem:[%s6824_s11 + $0x118] sm:$0xff]   ;;  %v5832_v51 = vld [vmem:[%s6824_s11 + $0x160] sm:$0xff]  }
0x1082   : > { %v5831_v49 = vld [vmem:[%s6824_s11 + $0x198] sm:$0xff]  }
0x1084   : > { %5294 = vmatpush3.bf16.msra.mxu1 %v5810_v52  ;;  %5316 = vmatpush3.bf16.msra.mxu0 %v5811_v53  ;;  %v5833_v52 = vld [vmem:[%s6824_s11 + $0x1e0] sm:$0xff]  }
0x1085   : > { %5295 = vmatprep.subr.bf16.mxu1 %v5812_v54  ;;  %5317 = vmatprep.subr.bf16.mxu0 %v5813_v55  ;;  %v5834_v53 = vld [vmem:[%s6824_s11 + $0x120] sm:$0xff]   ;;  %v5836_v55 = vld [vmem:[%s6824_s11 + $0x168] sm:$0xff]  }
0x1086   : > { %v5835_v54 = vld [vmem:[%s6824_s11 + $0x1a0] sm:$0xff]  }
0x1088   : > { %5296 = vmatpush3.bf16.msra.mxu1 %v5814_v56  ;;  %5318 = vmatpush3.bf16.msra.mxu0 %v5815_v57  ;;  %v5837_v56 = vld [vmem:[%s6824_s11 + $0x1e8] sm:$0xff]   ;;  %v2166_v57 = vsub.s32 4, %v7261_v63 }
0x1089   : > { %5325 = vmatprep.subr.bf16.mxu1 %v5816_v61  ;;  %5347 = vmatprep.subr.bf16.mxu0 %v5817_v30  ;;  %v2174_v61 = vsub.s32 6, %v7261_v63  ;;  %v2170_v30 = vsub.s32 5, %v7261_v63 }
0x10de   : > { %v2902_v8 = vpop.f32.mrb[44].mxu1  ;;  %v2945_v9 = vpop.f32.mrb[32].mxu0 }
0x10df   : > { %v2903_v13 = vadd.f32 %v2902_v8, %v2151_v5  ;;  %v2946_v15 = vadd.f32 %v2945_v9, %v2159_v59  ;;  %v2904_v16 = vpop.f32.mrb[45].mxu1  ;;  %v2947_v17 = vpop.f32.mrb[33].mxu0  ;;  %v5840_v8 = vld [vmem:[%s6824_s11 + $0x170] sm:$0xff]  }
0x10e0   : > { %v2905_v46 = vadd.f32 %v2904_v16, %v2155_v6  ;;  %v2948_v18 = vadd.f32 %v2947_v17, %v2163_v7  ;;  %v2906_v50 = vpop.f32.mrb[46].mxu1  ;;  %v2949_v19 = vpop.f32.mrb[34].mxu0  ;;  %v5841_v9 = vld [vmem:[%s6824_s11 + $0x1f0] sm:$0xff]  }
0x10e1   : > { %v2907_v20 = vadd.f32 %v2906_v50, %v2151_v5  ;;  %v2950_v4 = vadd.f32 %v2949_v19, %v2159_v59  ;;  %v2908_v11 = vpop.f32.mrb[47].mxu1  ;;  %v2951_v21 = vpop.f32.mrb[35].mxu0  ;;  %v3212_v24 = vmax.f32 %v2903_v13, 0.0  ;;  %v3214_v25 = vmax.f32 %v2946_v15, 0.0  ;;  %v5838_v5 = vld [vmem:[%s6824_s11 + $0x128] sm:$0xff]  }
0x10e2   : > { %v2909_v22 = vadd.f32 %v2908_v11, %v2155_v6  ;;  %v2952_v23 = vadd.f32 %v2951_v21, %v2163_v7  ;;  %v3213_v31 = vmax.f32 %v2905_v46, 0.0  ;;  %v3215_v60 = vmax.f32 %v2948_v18, 0.0  ;;  %v5839_v59 = vld [vmem:[%s6824_s11 + $0x1a8] sm:$0xff]   ;;  %v5842_v46 = vld [vmem:[%s6824_s11 + $0x130] sm:$0xff]   ;;  %v5844_v11 = vld [vmem:[%s6824_s11 + $0x178] sm:$0xff]  }
0x10e3   : > { %v3228_v28 = vmax.f32 %v2907_v20, 0.0  ;;  %v3230_v29 = vmax.f32 %v2950_v4, 0.0  ;;  %v2167_v6 = vrot.slane %v7266_v58, %v2166_v57  ;;  %v2175_v7 = vrot.slane %v7266_v58, %v2174_v61  ;;  %v5843_v18 = vld [vmem:[%s6824_s11 + $0x1b0] sm:$0xff]   ;;  %v5845_v21 = vld [vmem:[%s6824_s11 + $0x1f8] sm:$0xff]  }
0x10e4   : > { %v3229_v10 = vmax.f32 %v2909_v22, 0.0  ;;  %v3231_v14 = vmax.f32 %v2952_v23, 0.0  ;;  %v2171_v13 = vrot.slane %v7266_v58, %v2170_v30  ;;  %v2179_v15 = vrot.slane %v7266_v58, %v2178_v62 }
0x10e5   : > { %v3244_v32 = vpack.c.bf16 %v3228_v28, %v3212_v24  ;;  %v3246_v34 = vpack.c.bf16 %v3230_v29, %v3214_v25 }
0x10e6   : > { %v3245_v35 = vpack.c.bf16 %v3229_v10, %v3213_v31  ;;  %v3247_v36 = vpack.c.bf16 %v3231_v14, %v3215_v60  ;;  %v5846_v14 = vld [vmem:[%s6824_s11 + $0x138] sm:$0xff]  }
0x10e8   : > { %4321 = vmatprep.mubr.bf16.mxu1 %v3245_v35  ;;  %4362 = vmatprep.mubr.bf16.mxu0 %v3247_v36 }
0x10e9   : > { %4322 = vmatmul.mubr.bf16.vlgmr.msra.gmra.mrb[60].mxu1 %v3244_v32  ;;  %4363 = vmatmul.mubr.bf16.vlgmr.msra.gmra.mrb[48].mxu0 %v3246_v34  ;;  %v5847_v32 = vld [vmem:[%s6824_s11 + $0x1b8] sm:$0xff]  }
0x10ea   : > { %5326 = vmatpush3.bf16.msra.mxu1 %v5818_v37  ;;  %5348 = vmatpush3.bf16.msra.mxu0 %v5819_v12  ;;  %v5848_v12 = vld [vmem:[%s6824_s11 + $0x240] sm:$0xff]  }
0x10eb   : > { %5327 = vmatprep.subr.bf16.mxu1 %v5820_v38  ;;  %5349 = vmatprep.subr.bf16.mxu0 %v5821_v39  ;;  %v5849_v38 = vld [vmem:[%s6824_s11 + $0x2c0] sm:$0xff]  }
0x10ee   : > { %5328 = vmatpush3.bf16.msra.mxu1 %v5822_v40  ;;  %5350 = vmatpush3.bf16.msra.mxu0 %v5823_v41 }
0x10ef   : > { %5329 = vmatprep.subr.bf16.mxu1 %v5824_v42  ;;  %5351 = vmatprep.subr.bf16.mxu0 %v5825_v43 }
0x10f2   : > { %5330 = vmatpush3.bf16.msra.mxu1 %v5826_v44  ;;  %5352 = vmatpush3.bf16.msra.mxu0 %v5827_v45 }
0x10f3   : > { %5331 = vmatprep.subr.bf16.mxu1 %v5828_v33  ;;  %5353 = vmatprep.subr.bf16.mxu0 %v5829_v47  ;;  %v5850_v47 = vld [vmem:[%s6824_s11 + $0x200] sm:$0xff]  }
0x10f6   : > { %5332 = vmatpush3.bf16.msra.mxu1 %v5830_v48  ;;  %5354 = vmatpush3.bf16.msra.mxu0 %v5831_v49  ;;  %v5851_v48 = vld [vmem:[%s6824_s11 + $0x280] sm:$0xff]   ;;  %v5852_v49 = vld [vmem:[%s6824_s11 + $0x248] sm:$0xff]  }
0x10f7   : > { %5333 = vmatprep.subr.bf16.mxu1 %v5832_v51  ;;  %5355 = vmatprep.subr.bf16.mxu0 %v5833_v52  ;;  %v5853_v51 = vld [vmem:[%s6824_s11 + $0x2c8] sm:$0xff]  }
0x10f8   : > { %v5854_v52 = vld [vmem:[%s6824_s11 + $0x208] sm:$0xff]  }
0x10fa   : > { %5334 = vmatpush3.bf16.msra.mxu1 %v5834_v53  ;;  %5356 = vmatpush3.bf16.msra.mxu0 %v5835_v54  ;;  %v5855_v53 = vld [vmem:[%s6824_s11 + $0x288] sm:$0xff]   ;;  %v5856_v54 = vld [vmem:[%s6824_s11 + $0x250] sm:$0xff]  }
0x10fb   : > { %5335 = vmatprep.subr.bf16.mxu1 %v5836_v55  ;;  %5357 = vmatprep.subr.bf16.mxu0 %v5837_v56  ;;  %v5857_v55 = vld [vmem:[%s6824_s11 + $0x2d0] sm:$0xff]  }
0x10fc   : > { %v5858_v56 = vld [vmem:[%s6824_s11 + $0x210] sm:$0xff]  }
0x10fe   : > { %v2988_v16 = vpop.f32.mrb[48].mxu1  ;;  %v3031_v17 = vpop.f32.mrb[36].mxu0  ;;  %5336 = vmatpush3.bf16.msra.mxu1 %v5838_v5  ;;  %5358 = vmatpush3.bf16.msra.mxu0 %v5839_v59  ;;  %v5859_v5 = vld [vmem:[%s6824_s11 + $0x290] sm:$0xff]   ;;  %v5860_v59 = vld [vmem:[%s6824_s11 + $0x258] sm:$0xff]  }
0x10ff   : > { %v2989_v50 = vadd.f32 %v2988_v16, %v2167_v6  ;;  %v3032_v19 = vadd.f32 %v3031_v17, %v2175_v7  ;;  %v2990_v20 = vpop.f32.mrb[49].mxu1  ;;  %v3033_v4 = vpop.f32.mrb[37].mxu0  ;;  %5337 = vmatprep.subr.bf16.mxu1 %v5840_v8  ;;  %5359 = vmatprep.subr.bf16.mxu0 %v5841_v9  ;;  %v5863_v8 = vld [vmem:[%s6824_s11 + $0x298] sm:$0xff]   ;;  %v5864_v9 = vld [vmem:[%s6824_s11 + $0x260] sm:$0xff]   ;;  %v5868_v17 = vld [vmem:[%s6824_s11 + $0x268] sm:$0xff]  }
0x1100   : > { %v2991_v22 = vadd.f32 %v2990_v20, %v2171_v13  ;;  %v3034_v23 = vadd.f32 %v3033_v4, %v2179_v15  ;;  %v2992_v24 = vpop.f32.mrb[50].mxu1  ;;  %v3035_v58 = vpop.f32.mrb[38].mxu0  ;;  %v5867_v16 = vld [vmem:[%s6824_s11 + $0x2a0] sm:$0xff]  }
0x1101   : > { %v2993_v25 = vadd.f32 %v2992_v24, %v2167_v6  ;;  %v3036_v28 = vadd.f32 %v3035_v58, %v2175_v7  ;;  %v2994_v29 = vpop.f32.mrb[51].mxu1  ;;  %v3037_v31 = vpop.f32.mrb[39].mxu0  ;;  %v3216_v34 = vmax.f32 %v2989_v50, 0.0  ;;  %v3218_v35 = vmax.f32 %v3032_v19, 0.0  ;;  %v5861_v6 = vld [vmem:[%s6824_s11 + $0x2d8] sm:$0xff]   ;;  %v5870_v50 = vld [vmem:[%s6824_s11 + $0x228] sm:$0xff]  }
0x1102   : > { %v2995_v60 = vadd.f32 %v2994_v29, %v2171_v13  ;;  %v3038_v10 = vadd.f32 %v3037_v31, %v2179_v15  ;;  %5338 = vmatpush3.bf16.msra.mxu1 %v5842_v46  ;;  %5360 = vmatpush3.bf16.msra.mxu0 %v5843_v18  ;;  %v3217_v39 = vmax.f32 %v2991_v22, 0.0  ;;  %v3219_v40 = vmax.f32 %v3034_v23, 0.0  ;;  %v5862_v7 = vld [vmem:[%s6824_s11 + $0x218] sm:$0xff]   ;;  %v5865_v13 = vld [vmem:[%s6824_s11 + $0x2e0] sm:$0xff]   ;;  %v5869_v46 = vld [vmem:[%s6824_s11 + $0x2e8] sm:$0xff]  }
0x1103   : > { %v3232_v36 = vmax.f32 %v2993_v25, 0.0  ;;  %v3234_v37 = vmax.f32 %v3036_v28, 0.0  ;;  %5339 = vmatprep.subr.bf16.mxu1 %v5844_v11  ;;  %5361 = vmatprep.subr.bf16.mxu0 %v5845_v21  ;;  %v5866_v15 = vld [vmem:[%s6824_s11 + $0x220] sm:$0xff]   ;;  %v7351_v18 = vld [vmem:[%s6822_s29 + $0x8] sm:$0xff]  ;;  %v5872_v11 = vld [vmem:[%s6824_s11 + $0x270] sm:$0xff]  }
0x1104   : > { %v3233_v41 = vmax.f32 %v2995_v60, 0.0  ;;  %v3235_v42 = vmax.f32 %v3038_v10, 0.0  ;;  %v5871_v19 = vld [vmem:[%s6824_s11 + $0x2a8] sm:$0xff]   ;;  %v2183_v20 = vrot.slane %v7351_v18, %v2150_v0  ;;  %v2191_v4 = vrot.slane %v7351_v18, %v2158_v1  ;;  %v5873_v21 = vld [vmem:[%s6824_s11 + $0x2f0] sm:$0xff]   ;;  %v5876_v60 = vld [vmem:[%s6824_s11 + $0x278] sm:$0xff]  }
0x1105   : > { %v3248_v43 = vpack.c.bf16 %v3232_v36, %v3216_v34  ;;  %v3250_v44 = vpack.c.bf16 %v3234_v37, %v3218_v35  ;;  %v2187_v22 = vrot.slane %v7351_v18, %v2154_v2  ;;  %v2195_v23 = vrot.slane %v7351_v18, %v2162_v3  ;;  %v5874_v0 = vld [vmem:[%s6824_s11 + $0x230] sm:$0xff]   ;;  %v5877_v2 = vld [vmem:[%s6824_s11 + $0x2f8] sm:$0xff]  }
0x1106   : > { %v3249_v45 = vpack.c.bf16 %v3233_v41, %v3217_v39  ;;  %v3251_v33 = vpack.c.bf16 %v3235_v42, %v3219_v40  ;;  %5340 = vmatpush3.bf16.msra.mxu1 %v5846_v14  ;;  %5362 = vmatpush3.bf16.msra.mxu0 %v5847_v32  ;;  %v5875_v25 = vld [vmem:[%s6824_s11 + $0x2b0] sm:$0xff]   ;;  %v5878_v39 = vld [vmem:[%s6824_s11 + $0x238] sm:$0xff]  }
0x1107   : > { %5369 = vmatprep.subr.bf16.mxu1 %v5848_v12  ;;  %5391 = vmatprep.subr.bf16.mxu0 %v5849_v38  ;;  %v5879_v40 = vld [vmem:[%s6824_s11 + $0x2b8] sm:$0xff]  }
0x1108   : > { %4403 = vmatprep.mubr.bf16.mxu1 %v3249_v45  ;;  %4444 = vmatprep.mubr.bf16.mxu0 %v3251_v33  ;;  %v5880_v45 = vld [vmem:[%s6824_s11 + $0x340] sm:$0xff]  }
0x1109   : > { %4404 = vmatmul.mubr.bf16.vlgmr.msra.gmra.mrb[64].mxu1 %v3248_v43  ;;  %4445 = vmatmul.mubr.bf16.vlgmr.msra.gmra.mrb[52].mxu0 %v3250_v44  ;;  %v5881_v33 = vld [vmem:[%s6824_s11 + $0x3c0] sm:$0xff]  }
0x110a   : > { %5370 = vmatpush3.bf16.msra.mxu1 %v5850_v47  ;;  %5392 = vmatpush3.bf16.msra.mxu0 %v5851_v48 }
0x110b   : > { %5371 = vmatprep.subr.bf16.mxu1 %v5852_v49  ;;  %5393 = vmatprep.subr.bf16.mxu0 %v5853_v51 }
0x110e   : > { %5372 = vmatpush3.bf16.msra.mxu1 %v5854_v52  ;;  %5394 = vmatpush3.bf16.msra.mxu0 %v5855_v53 }
0x110f   : > { %5373 = vmatprep.subr.bf16.mxu1 %v5856_v54  ;;  %5395 = vmatprep.subr.bf16.mxu0 %v5857_v55 }
0x1112   : > { %5374 = vmatpush3.bf16.msra.mxu1 %v5858_v56  ;;  %5396 = vmatpush3.bf16.msra.mxu0 %v5859_v5  ;;  %v5882_v56 = vld [vmem:[%s6824_s11 + $0x300] sm:$0xff]  }
0x1113   : > { %5375 = vmatprep.subr.bf16.mxu1 %v5860_v59  ;;  %5397 = vmatprep.subr.bf16.mxu0 %v5861_v6  ;;  %v5883_v5 = vld [vmem:[%s6824_s11 + $0x380] sm:$0xff]   ;;  %v5884_v59 = vld [vmem:[%s6824_s11 + $0x348] sm:$0xff]  }
0x1114   : > { %v5885_v6 = vld [vmem:[%s6824_s11 + $0x3c8] sm:$0xff]  }
0x1116   : > { %5376 = vmatpush3.bf16.msra.mxu1 %v5862_v7  ;;  %5398 = vmatpush3.bf16.msra.mxu0 %v5863_v8  ;;  %v5886_v7 = vld [vmem:[%s6824_s11 + $0x308] sm:$0xff]  }
0x1117   : > { %5377 = vmatprep.subr.bf16.mxu1 %v5864_v9  ;;  %5399 = vmatprep.subr.bf16.mxu0 %v5865_v13  ;;  %v5887_v8 = vld [vmem:[%s6824_s11 + $0x388] sm:$0xff]   ;;  %v5888_v9 = vld [vmem:[%s6824_s11 + $0x350] sm:$0xff]  }
0x1118   : > { %v5889_v13 = vld [vmem:[%s6824_s11 + $0x3d0] sm:$0xff]  }
0x111a   : > { %5378 = vmatpush3.bf16.msra.mxu1 %v5866_v15  ;;  %5400 = vmatpush3.bf16.msra.mxu0 %v5867_v16  ;;  %v5890_v15 = vld [vmem:[%s6824_s11 + $0x310] sm:$0xff]  }
0x111b   : > { %5379 = vmatprep.subr.bf16.mxu1 %v5868_v17  ;;  %5401 = vmatprep.subr.bf16.mxu0 %v5869_v46  ;;  %v5891_v16 = vld [vmem:[%s6824_s11 + $0x390] sm:$0xff]   ;;  %v5892_v17 = vld [vmem:[%s6824_s11 + $0x358] sm:$0xff]  }
0x111c   : > { %v5893_v46 = vld [vmem:[%s6824_s11 + $0x3d8] sm:$0xff]  }
0x111e   : > { %v3074_v24 = vpop.f32.mrb[52].mxu1  ;;  %v3117_v58 = vpop.f32.mrb[40].mxu0  ;;  %5380 = vmatpush3.bf16.msra.mxu1 %v5870_v50  ;;  %5402 = vmatpush3.bf16.msra.mxu0 %v5871_v19  ;;  %v5894_v50 = vld [vmem:[%s6824_s11 + $0x318] sm:$0xff]  }
0x111f   : > { %v3075_v28 = vadd.f32 %v3074_v24, %v2183_v20  ;;  %v3118_v1 = vadd.f32 %v3117_v58, %v2191_v4  ;;  %v3076_v29 = vpop.f32.mrb[53].mxu1  ;;  %v3119_v31 = vpop.f32.mrb[41].mxu0  ;;  %5381 = vmatprep.subr.bf16.mxu1 %v5872_v11  ;;  %5403 = vmatprep.subr.bf16.mxu0 %v5873_v21  ;;  %v5895_v19 = vld [vmem:[%s6824_s11 + $0x398] sm:$0xff]   ;;  %v5898_v11 = vld [vmem:[%s6824_s11 + $0x320] sm:$0xff]   ;;  %v5902_v24 = vld [vmem:[%s6824_s11 + $0x328] sm:$0xff]  }
0x1120   : > { %v3077_v10 = vadd.f32 %v3076_v29, %v2187_v22  ;;  %v3120_v14 = vadd.f32 %v3119_v31, %v2195_v23  ;;  %v3078_v32 = vpop.f32.mrb[54].mxu1  ;;  %v3121_v3 = vpop.f32.mrb[42].mxu0  ;;  %v5899_v21 = vld [vmem:[%s6824_s11 + $0x3a0] sm:$0xff]   ;;  %v5903_v58 = vld [vmem:[%s6824_s11 + $0x3a8] sm:$0xff]   ;;  %v2203_v29 = vrot.slane %v7351_v18, %v2170_v30  ;;  %v2211_v31 = vrot.slane %v7351_v18, %v2178_v62  ;;  %v5909_v30 = vld [vmem:[%s6824_s11 + $0x3f8] sm:$0xff]  }
0x1121   : > { %v3079_v34 = vadd.f32 %v3078_v32, %v2183_v20  ;;  %v3122_v35 = vadd.f32 %v3121_v3, %v2191_v4  ;;  %v3080_v36 = vpop.f32.mrb[55].mxu1  ;;  %v3123_v37 = vpop.f32.mrb[43].mxu0  ;;  %v3220_v41 = vmax.f32 %v3075_v28, 0.0  ;;  %v3222_v42 = vmax.f32 %v3118_v1, 0.0  ;;  %v5896_v20 = vld [vmem:[%s6824_s11 + $0x360] sm:$0xff]   ;;  %v5904_v28 = vld [vmem:[%s6824_s11 + $0x370] sm:$0xff]  }
0x1122   : > { %v3081_v12 = vadd.f32 %v3080_v36, %v2187_v22  ;;  %v3124_v38 = vadd.f32 %v3123_v37, %v2195_v23  ;;  %5382 = vmatpush3.bf16.msra.mxu1 %v5874_v0  ;;  %5404 = vmatpush3.bf16.msra.mxu0 %v5875_v25  ;;  %v3221_v47 = vmax.f32 %v3077_v10, 0.0  ;;  %v3223_v48 = vmax.f32 %v3120_v14, 0.0  ;;  %v5897_v4 = vld [vmem:[%s6824_s11 + $0x3e0] sm:$0xff]   ;;  %v5900_v22 = vld [vmem:[%s6824_s11 + $0x368] sm:$0xff]   ;;  %v5905_v1 = vld [vmem:[%s6824_s11 + $0x3f0] sm:$0xff]  }
0x1123   : > { %v3236_v43 = vmax.f32 %v3079_v34, 0.0  ;;  %v3238_v44 = vmax.f32 %v3122_v35, 0.0  ;;  %5383 = vmatprep.subr.bf16.mxu1 %v5876_v60  ;;  %5405 = vmatprep.subr.bf16.mxu0 %v5877_v2  ;;  %v5901_v23 = vld [vmem:[%s6824_s11 + $0x3e8] sm:$0xff]   ;;  %v2199_v0 = vrot.slane %v7351_v18, %v2166_v57  ;;  %v2207_v25 = vrot.slane %v7351_v18, %v2174_v61  ;;  %v5906_v57 = vld [vmem:[%s6824_s11 + $0x330] sm:$0xff]   ;;  %v5908_v34 = vld [vmem:[%s6824_s11 + $0x378] sm:$0xff]  }
0x1124   : > { %v3237_v49 = vmax.f32 %v3081_v12, 0.0  ;;  %v3239_v51 = vmax.f32 %v3124_v38, 0.0  ;;  %v5907_v10 = vld [vmem:[%s6824_s11 + $0x3b0] sm:$0xff]  }
0x1125   : > { %v3252_v52 = vpack.c.bf16 %v3236_v43, %v3220_v41  ;;  %v3254_v53 = vpack.c.bf16 %v3238_v44, %v3222_v42  ;;  %v5910_v41 = vld [vmem:[%s6824_s11 + $0x338] sm:$0xff]  }
0x1126   : > { %v3253_v54 = vpack.c.bf16 %v3237_v49, %v3221_v47  ;;  %v3255_v55 = vpack.c.bf16 %v3239_v51, %v3223_v48  ;;  %5384 = vmatpush3.bf16.msra.mxu1 %v5878_v39  ;;  %5406 = vmatpush3.bf16.msra.mxu0 %v5879_v40  ;;  %v5911_v42 = vld [vmem:[%s6824_s11 + $0x3b8] sm:$0xff]  }
0x1127   : > { %5413 = vmatprep.subr.bf16.mxu1 %v5880_v45  ;;  %5435 = vmatprep.subr.bf16.mxu0 %v5881_v33 }
0x1128   : > { %4485 = vmatprep.mubr.bf16.mxu1 %v3253_v54  ;;  %4526 = vmatprep.mubr.bf16.mxu0 %v3255_v55 }
0x1129   : > { %4486 = vmatmul.mubr.bf16.vlgmr.msra.gmra.mrb[68].mxu1 %v3252_v52  ;;  %4527 = vmatmul.mubr.bf16.vlgmr.msra.gmra.mrb[56].mxu0 %v3254_v53 }
0x112a   : > { %5414 = vmatpush3.bf16.msra.mxu1 %v5882_v56  ;;  %5436 = vmatpush3.bf16.msra.mxu0 %v5883_v5 }
0x112b   : > { %5415 = vmatprep.subr.bf16.mxu1 %v5884_v59  ;;  %5437 = vmatprep.subr.bf16.mxu0 %v5885_v6  ;;  %v5091_v59 = vld [vmem:[%s6826_s10 + $0x4] ss:$0 sm:$0xff] }
0x112e   : > { %5416 = vmatpush3.bf16.msra.mxu1 %v5886_v7  ;;  %5438 = vmatpush3.bf16.msra.mxu0 %v5887_v8 }
0x112f   : > { %5417 = vmatprep.subr.bf16.mxu1 %v5888_v9  ;;  %5439 = vmatprep.subr.bf16.mxu0 %v5889_v13 }
0x1132   : > { %5418 = vmatpush3.bf16.msra.mxu1 %v5890_v15  ;;  %5440 = vmatpush3.bf16.msra.mxu0 %v5891_v16 }
0x1133   : > { %5419 = vmatprep.subr.bf16.mxu1 %v5892_v17  ;;  %5441 = vmatprep.subr.bf16.mxu0 %v5893_v46 }
0x1136   : > { %5420 = vmatpush3.bf16.msra.mxu1 %v5894_v50  ;;  %5442 = vmatpush3.bf16.msra.mxu0 %v5895_v19 }
0x1137   : > { %5421 = vmatprep.subr.bf16.mxu1 %v5896_v20  ;;  %5443 = vmatprep.subr.bf16.mxu0 %v5897_v4 }
0x113a   : > { %5422 = vmatpush3.bf16.msra.mxu1 %v5898_v11  ;;  %5444 = vmatpush3.bf16.msra.mxu0 %v5899_v21 }
0x113b   : > { %5423 = vmatprep.subr.bf16.mxu1 %v5900_v22  ;;  %5445 = vmatprep.subr.bf16.mxu0 %v5901_v23 }
0x113e   : > { %v3160_v60 = vpop.f32.mrb[56].mxu1  ;;  %v3203_v2 = vpop.f32.mrb[44].mxu0  ;;  %5424 = vmatpush3.bf16.msra.mxu1 %v5902_v24  ;;  %5446 = vmatpush3.bf16.msra.mxu0 %v5903_v58 }
0x113f   : > { %v3161_v14 = vadd.f32 %v3160_v60, %v2199_v0  ;;  %v3204_v61 = vadd.f32 %v3203_v2, %v2207_v25  ;;  %v3162_v32 = vpop.f32.mrb[57].mxu1  ;;  %v3205_v3 = vpop.f32.mrb[45].mxu0  ;;  %5425 = vmatprep.subr.bf16.mxu1 %v5904_v28  ;;  %5447 = vmatprep.subr.bf16.mxu0 %v5905_v1 }
0x1140   : > { %v3163_v35 = vadd.f32 %v3162_v32, %v2203_v29  ;;  %v3206_v63 = vadd.f32 %v3205_v3, %v2211_v31  ;;  %v3164_v36 = vpop.f32.mrb[58].mxu1  ;;  %v3207_v62 = vpop.f32.mrb[46].mxu0 }
0x1141   : > { %v3165_v18 = vadd.f32 %v3164_v36, %v2199_v0  ;;  %v3208_v37 = vadd.f32 %v3207_v62, %v2207_v25  ;;  %v3166_v12 = vpop.f32.mrb[59].mxu1  ;;  %v3209_v38 = vpop.f32.mrb[47].mxu0  ;;  %v3224_v43 = vmax.f32 %v3161_v14, 0.0  ;;  %v3226_v44 = vmax.f32 %v3204_v61, 0.0 }
0x1142   : > { %v3167_v39 = vadd.f32 %v3166_v12, %v2203_v29  ;;  %v3210_v40 = vadd.f32 %v3209_v38, %v2211_v31  ;;  %5426 = vmatpush3.bf16.msra.mxu1 %v5906_v57  ;;  %5448 = vmatpush3.bf16.msra.mxu0 %v5907_v10  ;;  %v3225_v47 = vmax.f32 %v3163_v35, 0.0  ;;  %v3227_v48 = vmax.f32 %v3206_v63, 0.0 }
0x1143   : > { %v3240_v45 = vmax.f32 %v3165_v18, 0.0  ;;  %v3242_v33 = vmax.f32 %v3208_v37, 0.0  ;;  %5427 = vmatprep.subr.bf16.mxu1 %v5908_v34  ;;  %5449 = vmatprep.subr.bf16.mxu0 %v5909_v30 }
0x1144   : > { %v3241_v49 = vmax.f32 %v3167_v39, 0.0  ;;  %v3243_v51 = vmax.f32 %v3210_v40, 0.0 }
0x1145   : > { %v3256_v52 = vpack.c.bf16 %v3240_v45, %v3224_v43  ;;  %v3258_v53 = vpack.c.bf16 %v3242_v33, %v3226_v44 }
0x1146   : > { %v3257_v54 = vpack.c.bf16 %v3241_v49, %v3225_v47  ;;  %v3259_v55 = vpack.c.bf16 %v3243_v51, %v3227_v48  ;;  %5428 = vmatpush3.bf16.msra.mxu1 %v5910_v41  ;;  %5450 = vmatpush3.bf16.msra.mxu0 %v5911_v42 }
0x1148   : > { %4567 = vmatprep.mubr.bf16.mxu1 %v3257_v54  ;;  %4608 = vmatprep.mubr.bf16.mxu0 %v3259_v55 }
0x1149   : > { %4568 = vmatmul.mubr.bf16.vlgmr.msra.gmra.mrb[72].mxu1 %v3256_v52  ;;  %4609 = vmatmul.mubr.bf16.vlgmr.msra.gmra.mrb[60].mxu0 %v3258_v53 }
0x11bc   : > { %v5297_v56 = vpop.f32.mrb[60].mxu1  ;;  %v5319_v5 = vpop.f32.mrb[48].mxu0 }
0x11bd   : > { %v5298_v6 = vpop.f32.mrb[61].mxu1  ;;  %v5320_v7 = vpop.f32.mrb[49].mxu0 }
0x11be   : > { %v5299_v8 = vadd.f32 %v5298_v6, %v5297_v56  ;;  %v5321_v9 = vadd.f32 %v5320_v7, %v5319_v5  ;;  %v5300_v13 = vpop.f32.mrb[62].mxu1  ;;  %v5322_v15 = vpop.f32.mrb[50].mxu0 }
0x11bf   : > { %v5301_v16 = vpop.f32.mrb[63].mxu1  ;;  %v5323_v17 = vpop.f32.mrb[51].mxu0 }
0x11c0   : > { %v4324_v46 = vadd.f32 %v5299_v8, %v5091_v59  ;;  %v5302_v50 = vadd.f32 %v5301_v16, %v5300_v13  ;;  %v5324_v19 = vadd.f32 %v5323_v17, %v5322_v15 }
0x11c2   : > { %v4365_v20 = vadd.f32 %v5321_v9, %v4324_v46  ;;  %v4327_v4 = vadd.f32 %v5302_v50, %v5091_v59 }
0x11c4   : > { %v4368_v11 = vadd.f32 %v5324_v19, %v4327_v4 }
0x11dc   : > { %v5341_v21 = vpop.f32.mrb[64].mxu1  ;;  %v5363_v22 = vpop.f32.mrb[52].mxu0 }
0x11dd   : > { %v5342_v23 = vpop.f32.mrb[65].mxu1  ;;  %v5364_v24 = vpop.f32.mrb[53].mxu0 }
0x11de   : > { %v5343_v58 = vadd.f32 %v5342_v23, %v5341_v21  ;;  %v5365_v0 = vadd.f32 %v5364_v24, %v5363_v22  ;;  %v5344_v25 = vpop.f32.mrb[66].mxu1  ;;  %v5366_v28 = vpop.f32.mrb[54].mxu0  ;;  %v5220_v22 = vld [vmem:[%s6826_s10 + $0x2] ss:$0 sm:$0xff] }
0x11df   : > { %v5345_v1 = vpop.f32.mrb[67].mxu1  ;;  %v5367_v29 = vpop.f32.mrb[55].mxu0 }
0x11e0   : > { %v4406_v31 = vadd.f32 %v5343_v58, %v4365_v20  ;;  %v5346_v60 = vadd.f32 %v5345_v1, %v5344_v25  ;;  %v5368_v2 = vadd.f32 %v5367_v29, %v5366_v28  ;;  %v5221_v58 = vld [vmem:[%s6826_s10 + $0x3] ss:$0 sm:$0xff] }
0x11e2   : > { %v4447_v57 = vadd.f32 %v5365_v0, %v4406_v31  ;;  %v4409_v10 = vadd.f32 %v5346_v60, %v4368_v11 }
0x11e4   : > { %v4450_v14 = vadd.f32 %v5368_v2, %v4409_v10 }
0x11fc   : > { %v5385_v61 = vpop.f32.mrb[68].mxu1  ;;  %v5407_v32 = vpop.f32.mrb[56].mxu0 }
0x11fd   : > { %v5386_v3 = vpop.f32.mrb[69].mxu1  ;;  %v5408_v34 = vpop.f32.mrb[57].mxu0 }
0x11fe   : > { %v5387_v30 = vadd.f32 %v5386_v3, %v5385_v61  ;;  %v5409_v35 = vadd.f32 %v5408_v34, %v5407_v32  ;;  %v5388_v63 = vpop.f32.mrb[70].mxu1  ;;  %v5410_v36 = vpop.f32.mrb[58].mxu0 }
0x11ff   : > { %v5389_v62 = vpop.f32.mrb[71].mxu1  ;;  %v5411_v18 = vpop.f32.mrb[59].mxu0 }
0x1200   : > { %v4488_v37 = vadd.f32 %v5387_v30, %v4447_v57  ;;  %v5390_v12 = vadd.f32 %v5389_v62, %v5388_v63  ;;  %v5412_v38 = vadd.f32 %v5411_v18, %v5410_v36 }
0x1202   : > { %v4529_v39 = vadd.f32 %v5409_v35, %v4488_v37  ;;  %v4491_v40 = vadd.f32 %v5390_v12, %v4450_v14 }
0x1204   : > { %v4532_v41 = vadd.f32 %v5412_v38, %v4491_v40 }
0x121c   : > { %v5429_v42 = vpop.f32.mrb[72].mxu1  ;;  %v5451_v43 = vpop.f32.mrb[60].mxu0 }
0x121d   : > { %v5430_v44 = vpop.f32.mrb[73].mxu1  ;;  %v5452_v45 = vpop.f32.mrb[61].mxu0 }
0x121e   : > { %v5431_v33 = vadd.f32 %v5430_v44, %v5429_v42  ;;  %v5453_v47 = vadd.f32 %v5452_v45, %v5451_v43  ;;  %v5432_v48 = vpop.f32.mrb[74].mxu1  ;;  %v5454_v49 = vpop.f32.mrb[62].mxu0 }
0x121f   : > { %v5433_v51 = vpop.f32.mrb[75].mxu1  ;;  %v5455_v52 = vpop.f32.mrb[63].mxu0 }
0x1220   : > { %v4570_v53 = vadd.f32 %v5431_v33, %v4529_v39  ;;  %v5434_v54 = vadd.f32 %v5433_v51, %v5432_v48  ;;  %v5456_v55 = vadd.f32 %v5455_v52, %v5454_v49 }
0x1222   : > { %v4611_v56 = vadd.f32 %v5453_v47, %v4570_v53  ;;  %v4573_v5 = vadd.f32 %v5434_v54, %v4532_v41 }
0x1224   : > { %v4614_v59 = vadd.f32 %v5456_v55, %v4573_v5  ;;  %v4617_v6 = vadd.f32 %v4611_v56, %v7117_v26 }
0x1226   : > { %4621 = vadd.xlane.f32.xlu0 %v4617_v6  ;;  %v4618_v7 = vadd.f32 %v4614_v59, %v7119_v27 }
0x1228   : > { %4623 = vadd.xlane.f32.xlu1 %v4618_v7 }
0x12b3   : > { %v4622_v8 = vpop.xlane.xlu0 %4621 }
0x12b4   : > { %v4625_v9 = vmul.f32 0.0078125, %v4622_v8 }
0x12b5   : > { %v4624_v13 = vpop.xlane.xlu1 %4623 }
0x12b6   : > { %v4627_v15 = vsub.f32 %v4617_v6, %v4625_v9  ;;  %v4626_v16 = vmul.f32 0.0078125, %v4624_v13 }
0x12b8   : > { %v4628_v17 = vsub.f32 %v4618_v7, %v4626_v16  ;;  %v4629_v46 = vmul.f32 %v4627_v15, %v4627_v15 }
0x12ba   : > { %4631 = vadd.xlane.f32.xlu0 %v4629_v46  ;;  %v4630_v50 = vmul.f32 %v4628_v17, %v4628_v17 }
0x12bc   : > { %4633 = vadd.xlane.f32.xlu1 %v4630_v50 }
0x1347   : > { %v4632_v19 = vpop.xlane.xlu0 %4631 }
0x1348   : > { %v4635_v20 = vmul.f32 0.0078125, %v4632_v19 }
0x1349   : > { %v4634_v4 = vpop.xlane.xlu1 %4633 }
0x134a   : > { %v4637_v26 = vadd.f32 1e-06, %v4635_v20  ;;  %v4636_v11 = vmul.f32 0.0078125, %v4634_v4 }
0x134c   : > { %5948 = vrsqrt.f32 %v4637_v26  ;;  %v4638_v27 = vadd.f32 1e-06, %v4636_v11 }
0x134e   : > { %5950 = vrsqrt.f32 %v4638_v27 }
0x1356   : > { %v5949_v21 = vpop.eup %5948 }
0x1357   : > { %v4641_v23 = vmul.f32 %v5949_v21, %v4627_v15 }
0x1358   : > { %v5951_v24 = vpop.eup %5950 }
0x1359   : > { %v4647_v0 = vmul.f32 %v5220_v22, %v4641_v23  ;;  %v4642_v25 = vmul.f32 %v5951_v24, %v4628_v17  ;;  %4660 = sbr.rel (%p5222_p4) target bundleno = 4960 (0x1360), region = 108 }
0x135b   : > { %v4653_v28 = vadd.f32 %v5221_v58, %v4647_v0  ;;  %v4648_v1 = vmul.f32 %v5220_v22, %v4642_v25 }
0x135d   : > { %4655 = vst [vmem:[#allocation2] sm:$0xff] %v4653_v28  ;;  %v4654_v29 = vadd.f32 %v5221_v58, %v4648_v1  ;;  %4661 = vst [vmem:[#allocation18] sm:$0xff] (!%p5222_p4), %v4653_v28 }
0x135f   : > { %4656 = vst [vmem:[#allocation2 + $0x8] sm:$0xff] %v4654_v29  ;;  %4662 = vst [vmem:[#allocation18 + $0x8] sm:$0xff] (!%p5222_p4), %v4654_v29 }
0x1360 PF: > { %p5669_p13 = scmp.eq.s32.totalorder %s6448_s19, 1  ;;  %s6361_s5 = smov [#allocation18]  }
0x1361   : > { %s4672_s0 = sshll.u32 %s6361_s5, 4  ;;  %s4673_s0 = int_to_ptr.vmem [resolvable:$true] %s4672_s0 }
0x1362   : > { %s6244_s14 = scalar_lea.vmem %s4673_s0, 256  ;;  %p6251_p3 = scmp.lt.s32.totalorder %s4673_s0, %s4673_s0 }
0x1363   : > { %p6245_p8 = scmp.ne.s32.totalorder %s4673_s0, %s6244_s14  ;;  %p6252_p0 = scmp.lt.s32.totalorder %s6244_s14, %s6244_s14 }
0x1365   : > { %p6246_p5 = pnand %p6245_p8, %p5669_p13  ;;  %p6253_p6 = por %p6252_p0, %p6251_p3 }
0x1367   : > { %p6247_p12 = pneg %p6246_p5 }
0x1369   : > { %p6254_p1 = pnand %p6253_p6, %p6247_p12 }
0x136b   : > { %6257 = shalt.err (!%p6254_p1)
}
0x136c   : > { %s7550_s22 = sld [smem:[#allocation34_spill]] }
0x1372   : > { %s6258_s15 = scalar_lea.hbm %s7550_s22, 256 }
0x1373   : > { %p6259_p7 = scmp.ne.s32.totalorder %s7550_s22, %s6258_s15  ;;  %p6264_p9 = scmp.lt.u32.totalorder %s6258_s15, %s7550_s22 }
0x1375   : > { %p6260_p10 = pnand %p6259_p7, %p5669_p13 }
0x1377   : > { %p6261_p11 = pneg %p6260_p10 }
0x1379   : > { %p6266_p2 = pnand %p6264_p9, %p6261_p11 }
0x137b   : > { %6269 = shalt.err (!%p6266_p2)
}
0x137c   : > { %s6362_s26 = smov 128   ;;  %s6363_s27 = smov 8  }
0x137d   : > { %5625 = dma.vmem_to_hbm [thread:$0]  (%p5669_p13), %s4673_s0, 256, %s7550_s22, [#allocation6], %s6362_s26, %s6362_s26, %s6363_s27  }
0x137e   : > { %6311 = dma.done.wait (%p5669_p13), [#allocation6], 256  }
0x137f   : > { %6313 = vsyncadd (%p5669_p13), [#allocation6], 4294967040 }
0x1380 PF: > { %s24_s18 = sadd.s32 1, %s6336_s18   ;;  %s7551_s13 = sld [smem:[#allocation24_spill]] }
0x1381   : > { %p21_p4 = scmp.ge.s32.totalorder %s24_s18, 4   ;;  %s7552_s14 = sld [smem:[#allocation25_spill]] }
0x1382   : > { %s7553_s15 = sld [smem:[#allocation29_spill]]  ;;  %s7554_s11 = sld [smem:[#allocation28_spill]] }
0x1383   : > { %s7555_s16 = smov %s6332_s17  ;;  %23 = sbr.rel (!%p21_p4) target bundleno = 12 (0xc), region = 178 }
0x1388   : > { %s7556_s17 = smov %s7554_s11 }
0x138a   :  { %4688 = vsyncpa [#allocation5], 1 }
0x138b   :  { %4690 = vsyncpa [#allocation5 + $0x1], 1 }
0x138c   :  { %4691 = vsyncpa [#allocation8], 1 }
0x138d   :  { %4692 = vsyncpa [#allocation11], 1 }
0x138e   :  { %4693 = vsyncpa [#allocation6], 1 }
0x138f   :  { %4695 = vsyncpa [#allocation6 + $0x1], 1 }

</bundles_post_ra>
